<compile_context>
chip_gen: v7x
topology: tpu7x:2x2x1
jax: 0.10.0
libtpu: 0.0.40
codegen_flags: <defaults>
</compile_context>

<pallas_src>
import functools
import numpy as np
import jax
import jax.numpy as jnp
from jax.experimental import pallas as pl
from jax.experimental.pallas import tpu as pltpu


# ----------------------------------------------------------------------------
# Model dimensions (original / padded)
# ----------------------------------------------------------------------------
DIM_HIDDEN = 100     # GRU / node-state hidden
DIM_NODE = 4         # use_aig=False -> 4 node-type features
DIM_DS = 50          # DeepSet MLP hidden
DIM_MLP = 30         # classifier hidden
DIM_PRED = 1
TEMPERATURE = 0.01   # hard evaluator

HP = 128             # padded hidden        (100 -> 128)
FP = 128             # padded node features (4   -> 128)
DS = 128             # padded DeepSet hidden(50  -> 128)
MP = 128             # padded clf hidden    (30  -> 128)
G3 = 3 * HP          # concatenated GRU gates (r, z, n)
R = 8                # sublane replication of the pred row in the evaluator


# ----------------------------------------------------------------------------
# Pallas kernels
# ----------------------------------------------------------------------------
def _mlp2(h, w1, b1, w2, b2):
    t = jnp.maximum(jnp.dot(h, w1, preferred_element_type=jnp.float32) + b1, 0.0)
    return jnp.dot(t, w2, preferred_element_type=jnp.float32) + b2


def sweep_kernel(x0_ref, a_ref, at_ref, flev_ref, blev_ref,
                 fpw1, fpb1, fpw2, fpb2, fqw1, fqb1, fqw2, fqb2,
                 bpw1, bpb1, bpw2, bpb2, bqw1, bqb1, bqw2, bqb2,
                 fwih, fwhh, fbih, fbhh,
                 bwih, bwhh, bbih, bbhh,
                 pw_ref, pb_ref,
                 state_ref, x_ref,
                 *, num_rounds, num_lf, num_lb):
    """Full _gru_forward: all rounds + forward/backward level sweeps in VMEM."""

    def deepset(h, adj, pw1, pb1, pw2, pb2, qw1, qb1, qw2, qb2):
        # mlp_post( A @ mlp_pre(h) )
        pre = _mlp2(h, pw1[...], pb1[...], pw2[...], pb2[...])
        agg = jnp.dot(adj, pre, preferred_element_type=jnp.float32)
        return _mlp2(agg, qw1[...], qb1[...], qw2[...], qb2[...])

    def gru(x, h, wih, whh, bih, bhh):
        # Single-step nn.GRU cell; gates (r, z, n) concatenated on the lane axis.
        gi = jnp.dot(x, wih[...], preferred_element_type=jnp.float32) + bih[...]
        gh = jnp.dot(h, whh[...], preferred_element_type=jnp.float32) + bhh[...]
        r = jax.nn.sigmoid(gi[:, 0:HP] + gh[:, 0:HP])
        z = jax.nn.sigmoid(gi[:, HP:2 * HP] + gh[:, HP:2 * HP])
        n = jnp.tanh(gi[:, 2 * HP:3 * HP] + r * gh[:, 2 * HP:3 * HP])
        return (1.0 - z) * n + z * h

    def fwd_level(l, c):
        h = state_ref[...]
        msg = deepset(h, a_ref[...], fpw1, fpb1, fpw2, fpb2, fqw1, fqb1, fqw2, fqb2)
        hn = gru(x_ref[...], msg, fwih, fwhh, fbih, fbhh)   # GRU hidden = msg
        state_ref[...] = jnp.where(flev_ref[...] == l, hn, h)
        return c

    def bwd_level(l, c):
        h = state_ref[...]
        msg = deepset(h, at_ref[...], bpw1, bpb1, bpw2, bpb2, bqw1, bqb1, bqw2, bqb2)
        hn = gru(x_ref[...], msg, bwih, bwhh, bbih, bbhh)
        state_ref[...] = jnp.where(blev_ref[...] == l, hn, h)
        return c

    def round_body(r, c):
        @pl.when(r > 0)
        def _():
            x_ref[...] = (jnp.dot(state_ref[...], pw_ref[...],
                                  preferred_element_type=jnp.float32) + pb_ref[...])
        jax.lax.fori_loop(1, num_lf, fwd_level, 0)
        jax.lax.fori_loop(1, num_lb, bwd_level, 0)
        return c

    state_ref[...] = jnp.zeros_like(state_ref)
    x_ref[...] = x0_ref[...]
    jax.lax.fori_loop(0, num_rounds, round_body, 0)


def head_eval_kernel(ne_ref, a_ref, flev_ref, andm_ref, orm_ref, notm_ref,
                     cw1_ref, cb1_ref, cw2_ref, cb2_ref,
                     pred_ref,
                     *, num_lf, inv_temp):
    """literal_classifier MLP + the full hard-evaluator level loop.

    pred lives as a lane-dense (R, N_pad) sublane-replicated row in VMEM.
    Per-target reductions (soft-min/soft-max/NOT sums) are row @ mat^T matmuls.
    """
    # ---- forward_head: sigmoid( relu(ne @ W1 + b1) @ W2 + b2 ), literals only
    t = jnp.maximum(jnp.dot(ne_ref[...], cw1_ref[...],
                            preferred_element_type=jnp.float32) + cb1_ref[...], 0.0)
    # z[r, i] = sum_k cw2[r, k] * t[i, k]   (cw2 rows are identical replicas)
    z = jax.lax.dot_general(cw2_ref[...], t, (((1,), (1,)), ((), ())),
                            preferred_element_type=jnp.float32)          # (R, Np)
    lit = (flev_ref[...] == 0).astype(jnp.float32)                        # (1, Np)
    pred_ref[...] = jax.nn.sigmoid(z + cb2_ref[...]) * lit

    neg_inf = jnp.float32(-1e30)

    def rowdot(rows, mat):
        # out[r, i] = sum_j rows[r, j] * mat[i, j]   == rows @ mat^T (MXU)
        return jax.lax.dot_general(rows, mat, (((1,), (1,)), ((), ())),
                                   preferred_element_type=jnp.float32)

    def level_body(l, c):
        A = a_ref[...]                       # (Np, Np)  A[target, source]
        amask = A > 0.0
        p = pred_ref[...]                    # (R, Np)   identical rows
        logit_row = p[0:1, :] * jnp.float32(inv_temp)     # (1, Np)

        def masked_softmax(lrow):
            lm = jnp.where(amask, lrow, neg_inf)          # (Np, Np)
            m = jnp.max(lm, axis=-1, keepdims=True)
            e = jnp.where(amask, jnp.exp(lm - m), 0.0)
            s = jnp.sum(e, axis=-1, keepdims=True)
            return jnp.where(s > 0.0, e / s, 0.0)

        sm_pos = masked_softmax(logit_row)    # soft-max weights (OR gates)
        sm_neg = masked_softmax(-logit_row)   # soft-min weights (AND gates)

        t_and = rowdot(p, sm_neg)             # (R, Np)
        t_or = rowdot(p, sm_pos)
        t_not = rowdot(1.0 - p, A)
        msg = andm_ref[...] * t_and + orm_ref[...] * t_or + notm_ref[...] * t_not
        pred_ref[...] = jnp.where(flev_ref[...] == l, msg, p)
        return c

    jax.lax.fori_loop(1, num_lf, level_body, 0)


# ----------------------------------------------------------------------------
# Forward wrapper (two fused pallas_calls)
# ----------------------------------------------------------------------------
def dgdagrnn_forward(params, x0_pad, a_fwd, a_bwd, flev, blev,
                     and_row, or_row, not_row, *, num_rounds, num_lf, num_lb):
    npad = x0_pad.shape[0]
    flev_col = flev.reshape(npad, 1)
    blev_col = blev.reshape(npad, 1)
    flev_row = flev.reshape(1, npad)

    node_emb = pl.pallas_call(
        functools.partial(sweep_kernel, num_rounds=num_rounds,
                          num_lf=num_lf, num_lb=num_lb),
        out_shape=jax.ShapeDtypeStruct((npad, HP), jnp.float32),
        scratch_shapes=[pltpu.VMEM((npad, FP), jnp.float32)],   # x (projector output)
    )(x0_pad, a_fwd, a_bwd, flev_col, blev_col,
      *params['aggr_f_pre'], *params['aggr_f_post'],
      *params['aggr_b_pre'], *params['aggr_b_post'],
      *params['gru_f'], *params['gru_b'],
      params['proj_w'], params['proj_b'])

    pred_rows = pl.pallas_call(
        functools.partial(head_eval_kernel, num_lf=num_lf,
                          inv_temp=float(1.0 / TEMPERATURE)),
        out_shape=jax.ShapeDtypeStruct((R, npad), jnp.float32),
    )(node_emb, a_fwd, flev_row, and_row, or_row, not_row,
      params['clf_w1'], params['clf_b1'], params['clf_w2row'], params['clf_b2'])

    return node_emb, pred_rows


# ----------------------------------------------------------------------------
# Parameters (deterministic synthetic init, zero-padded to 128-aligned shapes)
# ----------------------------------------------------------------------------
def _pad(a, shape):
    out = jnp.zeros(shape, jnp.float32)
    return out.at[tuple(slice(0, s) for s in a.shape)].set(a.astype(jnp.float32))


def init_params(key):
    keys = iter(jax.random.split(key, 64))

    def nrm(shape, scale=0.1):
        return (scale * jax.random.normal(next(keys), shape)).astype(jnp.float32)

    def mlp_padded():
        # MLP(100 -> 50 -> 100), zero-padded to (128 -> 128 -> 128).
        return (_pad(nrm((DIM_HIDDEN, DIM_DS)), (HP, DS)),
                _pad(nrm((1, DIM_DS)), (1, DS)),
                _pad(nrm((DIM_DS, DIM_HIDDEN)), (DS, HP)),
                _pad(nrm((1, DIM_HIDDEN)), (1, HP)))

    def gru_padded():
        # nn.GRU(input=4, hidden=100) single step; gates (r, z, n) concatenated
        # on the lane axis, each gate block zero-padded 100 -> 128.
        wih = jnp.zeros((FP, G3), jnp.float32)
        whh = jnp.zeros((HP, G3), jnp.float32)
        bih = jnp.zeros((1, G3), jnp.float32)
        bhh = jnp.zeros((1, G3), jnp.float32)
        for g in range(3):
            c = g * HP
            wih = wih.at[:DIM_NODE, c:c + DIM_HIDDEN].set(nrm((DIM_NODE, DIM_HIDDEN)))
            whh = whh.at[:DIM_HIDDEN, c:c + DIM_HIDDEN].set(nrm((DIM_HIDDEN, DIM_HIDDEN)))
            bih = bih.at[:, c:c + DIM_HIDDEN].set(nrm((1, DIM_HIDDEN)))
            bhh = bhh.at[:, c:c + DIM_HIDDEN].set(nrm((1, DIM_HIDDEN)))
        return (wih, whh, bih, bhh)

    w2 = nrm((DIM_MLP, DIM_PRED))                          # (30, 1)
    return dict(
        aggr_f_pre=mlp_padded(), aggr_f_post=mlp_padded(),
        aggr_b_pre=mlp_padded(), aggr_b_post=mlp_padded(),
        gru_f=gru_padded(), gru_b=gru_padded(),
        proj_w=_pad(nrm((DIM_HIDDEN, DIM_NODE)), (HP, FP)),
        proj_b=_pad(nrm((1, DIM_NODE)), (1, FP)),
        clf_w1=_pad(nrm((DIM_HIDDEN, DIM_MLP)), (HP, MP)),
        clf_b1=_pad(nrm((1, DIM_MLP)), (1, MP)),
        # classifier 2nd layer as a sublane-replicated row (R, 128)
        clf_w2row=jnp.tile(_pad(w2.T, (1, MP)), (R, 1)),
        clf_b2=nrm((1, 1)),
    )


# ----------------------------------------------------------------------------
# Synthetic circuit graph + driver
# ----------------------------------------------------------------------------
if __name__ == "__main__":
    # Small circuit DAG, 8 nodes:
    #   0..3 literals (PIs), 4 = NOT(0), 5 = AND(1,2), 6 = OR(4,5), 7 = AND(6,3)
    N = 8
    NP = 128   # padded node count (lane-aligned)
    edges_src_dst = np.array([[0, 4], [1, 5], [2, 5], [4, 6], [5, 6], [6, 7], [3, 7]],
                             dtype=np.int32)

    # node feature one-hots: [literal, AND, OR, NOT]
    x0_np = np.zeros((N, DIM_NODE), dtype=np.float32)
    x0_np[0:4, 0] = 1.0   # literals
    x0_np[4, 3] = 1.0     # NOT
    x0_np[5, 1] = 1.0     # AND
    x0_np[6, 2] = 1.0     # OR
    x0_np[7, 1] = 1.0     # AND

    forward_level = np.array([0, 0, 0, 0, 1, 1, 2, 3], dtype=np.int32)
    backward_level = np.array([3, 3, 3, 1, 2, 2, 1, 0], dtype=np.int32)

    # dense adjacency: A_fwd[target, source]; transpose built ONCE at graph-build time
    A_np = np.zeros((NP, NP), dtype=np.float32)
    for s, d in edges_src_dst:
        A_np[d, s] = 1.0
    At_np = np.ascontiguousarray(A_np.T)

    x0_pad = np.zeros((NP, FP), dtype=np.float32)
    x0_pad[:N, :DIM_NODE] = x0_np

    # padded nodes get level -1 so they never match any real level (and lit mask 0)
    flev_pad = np.full((NP,), -1, dtype=np.int32)
    flev_pad[:N] = forward_level
    blev_pad = np.full((NP,), -1, dtype=np.int32)
    blev_pad[:N] = backward_level

    and_row = np.zeros((1, NP), np.float32); and_row[0, :N] = (x0_np[:, 1] == 1.0)
    or_row = np.zeros((1, NP), np.float32); or_row[0, :N] = (x0_np[:, 2] == 1.0)
    not_row = np.zeros((1, NP), np.float32); not_row[0, :N] = (x0_np[:, 3] == 1.0)

    num_lf = int(forward_level.max()) + 1
    num_lb = int(backward_level.max()) + 1

    params = init_params(jax.random.PRNGKey(0))

    node_emb, pred_rows = dgdagrnn_forward(
        params,
        jnp.asarray(x0_pad), jnp.asarray(A_np), jnp.asarray(At_np),
        jnp.asarray(flev_pad), jnp.asarray(blev_pad),
        jnp.asarray(and_row), jnp.asarray(or_row), jnp.asarray(not_row),
        num_rounds=2, num_lf=num_lf, num_lb=num_lb)

    # sat = pred at sink nodes (backward_level == 0)
    sink_idx = np.where(backward_level == 0)[0]
    sat = pred_rows[0, jnp.asarray(sink_idx)].reshape(-1, 1)
    sat = jax.block_until_ready(sat)

    sat_np = np.asarray(sat)
    assert sat_np.shape == (1, 1), f"unexpected output shape {sat_np.shape}"
    assert np.all(np.isfinite(sat_np)), "non-finite output"
    assert np.all((sat_np >= 0.0) & (sat_np <= 1.0)), "prediction out of [0,1]"
    print("KERNEL_OK")
</pallas_src>

<mosaic_0001>
module attributes {stable_mosaic.version = 11 : i64} {
  func.func @sweep_kernel(%arg0: memref<128x128xf32, #tpu.memory_space<vmem>>, %arg1: memref<128x128xf32, #tpu.memory_space<vmem>>, %arg2: memref<128x128xf32, #tpu.memory_space<vmem>>, %arg3: memref<128x1xi32, #tpu.memory_space<vmem>>, %arg4: memref<128x1xi32, #tpu.memory_space<vmem>>, %arg5: memref<128x128xf32, #tpu.memory_space<vmem>>, %arg6: memref<1x128xf32, #tpu.memory_space<vmem>>, %arg7: memref<128x128xf32, #tpu.memory_space<vmem>>, %arg8: memref<1x128xf32, #tpu.memory_space<vmem>>, %arg9: memref<128x128xf32, #tpu.memory_space<vmem>>, %arg10: memref<1x128xf32, #tpu.memory_space<vmem>>, %arg11: memref<128x128xf32, #tpu.memory_space<vmem>>, %arg12: memref<1x128xf32, #tpu.memory_space<vmem>>, %arg13: memref<128x128xf32, #tpu.memory_space<vmem>>, %arg14: memref<1x128xf32, #tpu.memory_space<vmem>>, %arg15: memref<128x128xf32, #tpu.memory_space<vmem>>, %arg16: memref<1x128xf32, #tpu.memory_space<vmem>>, %arg17: memref<128x128xf32, #tpu.memory_space<vmem>>, %arg18: memref<1x128xf32, #tpu.memory_space<vmem>>, %arg19: memref<128x128xf32, #tpu.memory_space<vmem>>, %arg20: memref<1x128xf32, #tpu.memory_space<vmem>>, %arg21: memref<128x384xf32, #tpu.memory_space<vmem>>, %arg22: memref<128x384xf32, #tpu.memory_space<vmem>>, %arg23: memref<1x384xf32, #tpu.memory_space<vmem>>, %arg24: memref<1x384xf32, #tpu.memory_space<vmem>>, %arg25: memref<128x384xf32, #tpu.memory_space<vmem>>, %arg26: memref<128x384xf32, #tpu.memory_space<vmem>>, %arg27: memref<1x384xf32, #tpu.memory_space<vmem>>, %arg28: memref<1x384xf32, #tpu.memory_space<vmem>>, %arg29: memref<128x128xf32, #tpu.memory_space<vmem>>, %arg30: memref<1x128xf32, #tpu.memory_space<vmem>>, %arg31: memref<128x128xf32, #tpu.memory_space<vmem>>, %arg32: memref<128x128xf32, #tpu.memory_space<vmem>>) attributes {dimension_semantics = [], scalar_prefetch = 0 : i64, scratch_operands = 1 : i64, tpu.core_type = #tpu.core_type<tc>} {
    %cst = arith.constant 0.000000e+00 : f32
    %0 = vector.broadcast %cst : f32 to vector<128x128xf32>
    %c0 = arith.constant 0 : index
    %c0_0 = arith.constant 0 : index
    %1 = vector.load %arg31[%c0, %c0_0] : memref<128x128xf32, #tpu.memory_space<vmem>>, vector<128x128xf32>
    tpu.vector_store %arg31[%c0, %c0_0], %0 {strides = array<i32>} : memref<128x128xf32, #tpu.memory_space<vmem>>, vector<128x128xf32>,
    %c0_1 = arith.constant 0 : index
    %c0_2 = arith.constant 0 : index
    %2 = vector.load %arg0[%c0_1, %c0_2] : memref<128x128xf32, #tpu.memory_space<vmem>>, vector<128x128xf32>
    %c0_3 = arith.constant 0 : index
    %c0_4 = arith.constant 0 : index
    %3 = vector.load %arg32[%c0_3, %c0_4] : memref<128x128xf32, #tpu.memory_space<vmem>>, vector<128x128xf32>
    tpu.vector_store %arg32[%c0_3, %c0_4], %2 {strides = array<i32>} : memref<128x128xf32, #tpu.memory_space<vmem>>, vector<128x128xf32>,
    %c0_i32 = arith.constant 0 : i32
    %c2_i32 = arith.constant 2 : i32
    %4 = arith.addi %c0_i32, %c2_i32 : i32
    %c1_i32 = arith.constant 1 : i32
    scf.for %arg33 = %c0_i32 to %4 step %c1_i32  : i32 {
      %c0_i32_6 = arith.constant 0 : i32
      %5 = arith.cmpi sgt, %arg33, %c0_i32_6 : i32
      %6 = arith.extui %5 : i1 to i32
      %c0_i32_7 = arith.constant 0 : i32
      %7 = arith.cmpi ne, %6, %c0_i32_7 : i32
      scf.if %7 {
        %c0_15 = arith.constant 0 : index
        %c0_16 = arith.constant 0 : index
        %10 = vector.load %arg31[%c0_15, %c0_16] : memref<128x128xf32, #tpu.memory_space<vmem>>, vector<128x128xf32>
        %c0_17 = arith.constant 0 : index
        %c0_18 = arith.constant 0 : index
        %11 = vector.load %arg29[%c0_17, %c0_18] : memref<128x128xf32, #tpu.memory_space<vmem>>, vector<128x128xf32>
        %cst_19 = arith.constant dense<0.000000e+00> : vector<128x128xf32>
        %12 = tpu.matmul %10, %11, %cst_19 {dimension_numbers = #tpu.dot_dimension_numbers<[1], [0], [0], [1], [0, 0, 1, 1], [], []>} : vector<128x128xf32>, vector<128x128xf32>, vector<128x128xf32> -> vector<128x128xf32>
        %c0_20 = arith.constant 0 : index
        %c0_21 = arith.constant 0 : index
        %13 = vector.load %arg30[%c0_20, %c0_21] : memref<1x128xf32, #tpu.memory_space<vmem>>, vector<1x128xf32>
        %14 = vector.broadcast %13 : vector<1x128xf32> to vector<128x128xf32>
        %15 = arith.addf %12, %14 : vector<128x128xf32>
        %c0_22 = arith.constant 0 : index
        %c0_23 = arith.constant 0 : index
        %16 = vector.load %arg32[%c0_22, %c0_23] : memref<128x128xf32, #tpu.memory_space<vmem>>, vector<128x128xf32>
        tpu.vector_store %arg32[%c0_22, %c0_23], %15 {strides = array<i32>} : memref<128x128xf32, #tpu.memory_space<vmem>>, vector<128x128xf32>,
      } else {
      }
      %c1_i32_8 = arith.constant 1 : i32
      %c3_i32 = arith.constant 3 : i32
      %8 = arith.addi %c1_i32_8, %c3_i32 : i32
      %c1_i32_9 = arith.constant 1 : i32
      scf.for %arg34 = %c1_i32_8 to %8 step %c1_i32_9  : i32 {
        %c0_15 = arith.constant 0 : index
        %c0_16 = arith.constant 0 : index
        %10 = vector.load %arg31[%c0_15, %c0_16] : memref<128x128xf32, #tpu.memory_space<vmem>>, vector<128x128xf32>
        %c0_17 = arith.constant 0 : index
        %c0_18 = arith.constant 0 : index
        %11 = vector.load %arg1[%c0_17, %c0_18] : memref<128x128xf32, #tpu.memory_space<vmem>>, vector<128x128xf32>
        %c0_19 = arith.constant 0 : index
        %c0_20 = arith.constant 0 : index
        %12 = vector.load %arg5[%c0_19, %c0_20] : memref<128x128xf32, #tpu.memory_space<vmem>>, vector<128x128xf32>
        %c0_21 = arith.constant 0 : index
        %c0_22 = arith.constant 0 : index
        %13 = vector.load %arg6[%c0_21, %c0_22] : memref<1x128xf32, #tpu.memory_space<vmem>>, vector<1x128xf32>
        %c0_23 = arith.constant 0 : index
        %c0_24 = arith.constant 0 : index
        %14 = vector.load %arg7[%c0_23, %c0_24] : memref<128x128xf32, #tpu.memory_space<vmem>>, vector<128x128xf32>
        %c0_25 = arith.constant 0 : index
        %c0_26 = arith.constant 0 : index
        %15 = vector.load %arg8[%c0_25, %c0_26] : memref<1x128xf32, #tpu.memory_space<vmem>>, vector<1x128xf32>
        %cst_27 = arith.constant dense<0.000000e+00> : vector<128x128xf32>
        %16 = tpu.matmul %10, %12, %cst_27 {dimension_numbers = #tpu.dot_dimension_numbers<[1], [0], [0], [1], [0, 0, 1, 1], [], []>} : vector<128x128xf32>, vector<128x128xf32>, vector<128x128xf32> -> vector<128x128xf32>
        %17 = vector.broadcast %13 : vector<1x128xf32> to vector<128x128xf32>
        %18 = arith.addf %16, %17 : vector<128x128xf32>
        %cst_28 = arith.constant 0.000000e+00 : f32
        %19 = vector.broadcast %cst_28 : f32 to vector<128x128xf32>
        %20 = arith.maximumf %18, %19 : vector<128x128xf32>
        %cst_29 = arith.constant dense<0.000000e+00> : vector<128x128xf32>
        %21 = tpu.matmul %20, %14, %cst_29 {dimension_numbers = #tpu.dot_dimension_numbers<[1], [0], [0], [1], [0, 0, 1, 1], [], []>} : vector<128x128xf32>, vector<128x128xf32>, vector<128x128xf32> -> vector<128x128xf32>
        %22 = vector.broadcast %15 : vector<1x128xf32> to vector<128x128xf32>
        %23 = arith.addf %21, %22 : vector<128x128xf32>
        %cst_30 = arith.constant dense<0.000000e+00> : vector<128x128xf32>
        %24 = tpu.matmul %11, %23, %cst_30 {dimension_numbers = #tpu.dot_dimension_numbers<[1], [0], [0], [1], [0, 0, 1, 1], [], []>} : vector<128x128xf32>, vector<128x128xf32>, vector<128x128xf32> -> vector<128x128xf32>
        %c0_31 = arith.constant 0 : index
        %c0_32 = arith.constant 0 : index
        %25 = vector.load %arg9[%c0_31, %c0_32] : memref<128x128xf32, #tpu.memory_space<vmem>>, vector<128x128xf32>
        %c0_33 = arith.constant 0 : index
        %c0_34 = arith.constant 0 : index
        %26 = vector.load %arg10[%c0_33, %c0_34] : memref<1x128xf32, #tpu.memory_space<vmem>>, vector<1x128xf32>
        %c0_35 = arith.constant 0 : index
        %c0_36 = arith.constant 0 : index
        %27 = vector.load %arg11[%c0_35, %c0_36] : memref<128x128xf32, #tpu.memory_space<vmem>>, vector<128x128xf32>
        %c0_37 = arith.constant 0 : index
        %c0_38 = arith.constant 0 : index
        %28 = vector.load %arg12[%c0_37, %c0_38] : memref<1x128xf32, #tpu.memory_space<vmem>>, vector<1x128xf32>
        %cst_39 = arith.constant dense<0.000000e+00> : vector<128x128xf32>
        %29 = tpu.matmul %24, %25, %cst_39 {dimension_numbers = #tpu.dot_dimension_numbers<[1], [0], [0], [1], [0, 0, 1, 1], [], []>} : vector<128x128xf32>, vector<128x128xf32>, vector<128x128xf32> -> vector<128x128xf32>
        %30 = vector.broadcast %26 : vector<1x128xf32> to vector<128x128xf32>
        %31 = arith.addf %29, %30 : vector<128x128xf32>
        %cst_40 = arith.constant 0.000000e+00 : f32
        %32 = vector.broadcast %cst_40 : f32 to vector<128x128xf32>
        %33 = arith.maximumf %31, %32 : vector<128x128xf32>
        %cst_41 = arith.constant dense<0.000000e+00> : vector<128x128xf32>
        %34 = tpu.matmul %33, %27, %cst_41 {dimension_numbers = #tpu.dot_dimension_numbers<[1], [0], [0], [1], [0, 0, 1, 1], [], []>} : vector<128x128xf32>, vector<128x128xf32>, vector<128x128xf32> -> vector<128x128xf32>
        %35 = vector.broadcast %28 : vector<1x128xf32> to vector<128x128xf32>
        %36 = arith.addf %34, %35 : vector<128x128xf32>
        %c0_42 = arith.constant 0 : index
        %c0_43 = arith.constant 0 : index
        %37 = vector.load %arg32[%c0_42, %c0_43] : memref<128x128xf32, #tpu.memory_space<vmem>>, vector<128x128xf32>
        %c0_44 = arith.constant 0 : index
        %c0_45 = arith.constant 0 : index
        %38 = vector.load %arg21[%c0_44, %c0_45] : memref<128x384xf32, #tpu.memory_space<vmem>>, vector<128x384xf32>
        %cst_46 = arith.constant dense<0.000000e+00> : vector<128x384xf32>
        %39 = tpu.matmul %37, %38, %cst_46 {dimension_numbers = #tpu.dot_dimension_numbers<[1], [0], [0], [1], [0, 0, 1, 1], [], []>} : vector<128x128xf32>, vector<128x384xf32>, vector<128x384xf32> -> vector<128x384xf32>
        %c0_47 = arith.constant 0 : index
        %c0_48 = arith.constant 0 : index
        %40 = vector.load %arg23[%c0_47, %c0_48] : memref<1x384xf32, #tpu.memory_space<vmem>>, vector<1x384xf32>
        %41 = vector.broadcast %40 : vector<1x384xf32> to vector<128x384xf32>
        %42 = arith.addf %39, %41 : vector<128x384xf32>
        %c0_49 = arith.constant 0 : index
        %c0_50 = arith.constant 0 : index
        %43 = vector.load %arg22[%c0_49, %c0_50] : memref<128x384xf32, #tpu.memory_space<vmem>>, vector<128x384xf32>
        %cst_51 = arith.constant dense<0.000000e+00> : vector<128x384xf32>
        %44 = tpu.matmul %36, %43, %cst_51 {dimension_numbers = #tpu.dot_dimension_numbers<[1], [0], [0], [1], [0, 0, 1, 1], [], []>} : vector<128x128xf32>, vector<128x384xf32>, vector<128x384xf32> -> vector<128x384xf32>
        %c0_52 = arith.constant 0 : index
        %c0_53 = arith.constant 0 : index
        %45 = vector.load %arg24[%c0_52, %c0_53] : memref<1x384xf32, #tpu.memory_space<vmem>>, vector<1x384xf32>
        %46 = vector.broadcast %45 : vector<1x384xf32> to vector<128x384xf32>
        %47 = arith.addf %44, %46 : vector<128x384xf32>
        %48 = vector.extract_strided_slice %42 {offsets = [0, 0], sizes = [128, 128], strides = [1, 1]} : vector<128x384xf32> to vector<128x128xf32>
        %49 = vector.extract_strided_slice %47 {offsets = [0, 0], sizes = [128, 128], strides = [1, 1]} : vector<128x384xf32> to vector<128x128xf32>
        %50 = arith.addf %48, %49 : vector<128x128xf32>
        %51 = arith.negf %50 : vector<128x128xf32>
        %52 = math.exp %51 : vector<128x128xf32>
        %cst_54 = arith.constant 1.000000e+00 : f32
        %53 = vector.broadcast %cst_54 : f32 to vector<128x128xf32>
        %54 = arith.addf %53, %52 : vector<128x128xf32>
        %55 = arith.divf %53, %54 : vector<128x128xf32>
        %56 = vector.extract_strided_slice %42 {offsets = [0, 128], sizes = [128, 128], strides = [1, 1]} : vector<128x384xf32> to vector<128x128xf32>
        %57 = vector.extract_strided_slice %47 {offsets = [0, 128], sizes = [128, 128], strides = [1, 1]} : vector<128x384xf32> to vector<128x128xf32>
        %58 = arith.addf %56, %57 : vector<128x128xf32>
        %59 = arith.negf %58 : vector<128x128xf32>
        %60 = math.exp %59 : vector<128x128xf32>
        %cst_55 = arith.constant 1.000000e+00 : f32
        %61 = vector.broadcast %cst_55 : f32 to vector<128x128xf32>
        %62 = arith.addf %61, %60 : vector<128x128xf32>
        %63 = arith.divf %61, %62 : vector<128x128xf32>
        %64 = vector.extract_strided_slice %42 {offsets = [0, 256], sizes = [128, 128], strides = [1, 1]} : vector<128x384xf32> to vector<128x128xf32>
        %65 = vector.extract_strided_slice %47 {offsets = [0, 256], sizes = [128, 128], strides = [1, 1]} : vector<128x384xf32> to vector<128x128xf32>
        %66 = arith.mulf %55, %65 : vector<128x128xf32>
        %67 = arith.addf %64, %66 : vector<128x128xf32>
        %68 = math.tanh %67 : vector<128x128xf32>
        %cst_56 = arith.constant 1.000000e+00 : f32
        %69 = vector.broadcast %cst_56 : f32 to vector<128x128xf32>
        %70 = arith.subf %69, %63 : vector<128x128xf32>
        %71 = arith.mulf %70, %68 : vector<128x128xf32>
        %72 = arith.mulf %63, %36 : vector<128x128xf32>
        %73 = arith.addf %71, %72 : vector<128x128xf32>
        %c0_57 = arith.constant 0 : index
        %c0_58 = arith.constant 0 : index
        %74 = vector.load %arg3[%c0_57, %c0_58] : memref<128x1xi32, #tpu.memory_space<vmem>>, vector<128x1xi32>
        %75 = vector.broadcast %arg34 : i32 to vector<128x1xi32>
        %76 = arith.cmpi eq, %74, %75 : vector<128x1xi32>
        %77 = vector.shape_cast %76 : vector<128x1xi1> to vector<128x1xi1>
        %78 = vector.broadcast %77 : vector<128x1xi1> to vector<128x128xi1>
        %79 = arith.select %78, %73, %10 : vector<128x128xi1>, vector<128x128xf32>
        %c0_59 = arith.constant 0 : index
        %c0_60 = arith.constant 0 : index
        %80 = vector.load %arg31[%c0_59, %c0_60] : memref<128x128xf32, #tpu.memory_space<vmem>>, vector<128x128xf32>
        tpu.vector_store %arg31[%c0_59, %c0_60], %79 {strides = array<i32>} : memref<128x128xf32, #tpu.memory_space<vmem>>, vector<128x128xf32>,
      }
      %c3_i32_10 = arith.constant 3 : i32
      %c1_i32_11 = arith.constant 1 : i32
      %c3_i32_12 = arith.constant 3 : i32
      %9 = arith.addi %c1_i32_11, %c3_i32_12 : i32
      %c1_i32_13 = arith.constant 1 : i32
      scf.for %arg34 = %c1_i32_11 to %9 step %c1_i32_13  : i32 {
        %c0_15 = arith.constant 0 : index
        %c0_16 = arith.constant 0 : index
        %10 = vector.load %arg31[%c0_15, %c0_16] : memref<128x128xf32, #tpu.memory_space<vmem>>, vector<128x128xf32>
        %c0_17 = arith.constant 0 : index
        %c0_18 = arith.constant 0 : index
        %11 = vector.load %arg2[%c0_17, %c0_18] : memref<128x128xf32, #tpu.memory_space<vmem>>, vector<128x128xf32>
        %c0_19 = arith.constant 0 : index
        %c0_20 = arith.constant 0 : index
        %12 = vector.load %arg13[%c0_19, %c0_20] : memref<128x128xf32, #tpu.memory_space<vmem>>, vector<128x128xf32>
        %c0_21 = arith.constant 0 : index
        %c0_22 = arith.constant 0 : index
        %13 = vector.load %arg14[%c0_21, %c0_22] : memref<1x128xf32, #tpu.memory_space<vmem>>, vector<1x128xf32>
        %c0_23 = arith.constant 0 : index
        %c0_24 = arith.constant 0 : index
        %14 = vector.load %arg15[%c0_23, %c0_24] : memref<128x128xf32, #tpu.memory_space<vmem>>, vector<128x128xf32>
        %c0_25 = arith.constant 0 : index
        %c0_26 = arith.constant 0 : index
        %15 = vector.load %arg16[%c0_25, %c0_26] : memref<1x128xf32, #tpu.memory_space<vmem>>, vector<1x128xf32>
        %cst_27 = arith.constant dense<0.000000e+00> : vector<128x128xf32>
        %16 = tpu.matmul %10, %12, %cst_27 {dimension_numbers = #tpu.dot_dimension_numbers<[1], [0], [0], [1], [0, 0, 1, 1], [], []>} : vector<128x128xf32>, vector<128x128xf32>, vector<128x128xf32> -> vector<128x128xf32>
        %17 = vector.broadcast %13 : vector<1x128xf32> to vector<128x128xf32>
        %18 = arith.addf %16, %17 : vector<128x128xf32>
        %cst_28 = arith.constant 0.000000e+00 : f32
        %19 = vector.broadcast %cst_28 : f32 to vector<128x128xf32>
        %20 = arith.maximumf %18, %19 : vector<128x128xf32>
        %cst_29 = arith.constant dense<0.000000e+00> : vector<128x128xf32>
        %21 = tpu.matmul %20, %14, %cst_29 {dimension_numbers = #tpu.dot_dimension_numbers<[1], [0], [0], [1], [0, 0, 1, 1], [], []>} : vector<128x128xf32>, vector<128x128xf32>, vector<128x128xf32> -> vector<128x128xf32>
        %22 = vector.broadcast %15 : vector<1x128xf32> to vector<128x128xf32>
        %23 = arith.addf %21, %22 : vector<128x128xf32>
        %cst_30 = arith.constant dense<0.000000e+00> : vector<128x128xf32>
        %24 = tpu.matmul %11, %23, %cst_30 {dimension_numbers = #tpu.dot_dimension_numbers<[1], [0], [0], [1], [0, 0, 1, 1], [], []>} : vector<128x128xf32>, vector<128x128xf32>, vector<128x128xf32> -> vector<128x128xf32>
        %c0_31 = arith.constant 0 : index
        %c0_32 = arith.constant 0 : index
        %25 = vector.load %arg17[%c0_31, %c0_32] : memref<128x128xf32, #tpu.memory_space<vmem>>, vector<128x128xf32>
        %c0_33 = arith.constant 0 : index
        %c0_34 = arith.constant 0 : index
        %26 = vector.load %arg18[%c0_33, %c0_34] : memref<1x128xf32, #tpu.memory_space<vmem>>, vector<1x128xf32>
        %c0_35 = arith.constant 0 : index
        %c0_36 = arith.constant 0 : index
        %27 = vector.load %arg19[%c0_35, %c0_36] : memref<128x128xf32, #tpu.memory_space<vmem>>, vector<128x128xf32>
        %c0_37 = arith.constant 0 : index
        %c0_38 = arith.constant 0 : index
        %28 = vector.load %arg20[%c0_37, %c0_38] : memref<1x128xf32, #tpu.memory_space<vmem>>, vector<1x128xf32>
        %cst_39 = arith.constant dense<0.000000e+00> : vector<128x128xf32>
        %29 = tpu.matmul %24, %25, %cst_39 {dimension_numbers = #tpu.dot_dimension_numbers<[1], [0], [0], [1], [0, 0, 1, 1], [], []>} : vector<128x128xf32>, vector<128x128xf32>, vector<128x128xf32> -> vector<128x128xf32>
        %30 = vector.broadcast %26 : vector<1x128xf32> to vector<128x128xf32>
        %31 = arith.addf %29, %30 : vector<128x128xf32>
        %cst_40 = arith.constant 0.000000e+00 : f32
        %32 = vector.broadcast %cst_40 : f32 to vector<128x128xf32>
        %33 = arith.maximumf %31, %32 : vector<128x128xf32>
        %cst_41 = arith.constant dense<0.000000e+00> : vector<128x128xf32>
        %34 = tpu.matmul %33, %27, %cst_41 {dimension_numbers = #tpu.dot_dimension_numbers<[1], [0], [0], [1], [0, 0, 1, 1], [], []>} : vector<128x128xf32>, vector<128x128xf32>, vector<128x128xf32> -> vector<128x128xf32>
        %35 = vector.broadcast %28 : vector<1x128xf32> to vector<128x128xf32>
        %36 = arith.addf %34, %35 : vector<128x128xf32>
        %c0_42 = arith.constant 0 : index
        %c0_43 = arith.constant 0 : index
        %37 = vector.load %arg32[%c0_42, %c0_43] : memref<128x128xf32, #tpu.memory_space<vmem>>, vector<128x128xf32>
        %c0_44 = arith.constant 0 : index
        %c0_45 = arith.constant 0 : index
        %38 = vector.load %arg25[%c0_44, %c0_45] : memref<128x384xf32, #tpu.memory_space<vmem>>, vector<128x384xf32>
        %cst_46 = arith.constant dense<0.000000e+00> : vector<128x384xf32>
        %39 = tpu.matmul %37, %38, %cst_46 {dimension_numbers = #tpu.dot_dimension_numbers<[1], [0], [0], [1], [0, 0, 1, 1], [], []>} : vector<128x128xf32>, vector<128x384xf32>, vector<128x384xf32> -> vector<128x384xf32>
        %c0_47 = arith.constant 0 : index
        %c0_48 = arith.constant 0 : index
        %40 = vector.load %arg27[%c0_47, %c0_48] : memref<1x384xf32, #tpu.memory_space<vmem>>, vector<1x384xf32>
        %41 = vector.broadcast %40 : vector<1x384xf32> to vector<128x384xf32>
        %42 = arith.addf %39, %41 : vector<128x384xf32>
        %c0_49 = arith.constant 0 : index
        %c0_50 = arith.constant 0 : index
        %43 = vector.load %arg26[%c0_49, %c0_50] : memref<128x384xf32, #tpu.memory_space<vmem>>, vector<128x384xf32>
        %cst_51 = arith.constant dense<0.000000e+00> : vector<128x384xf32>
        %44 = tpu.matmul %36, %43, %cst_51 {dimension_numbers = #tpu.dot_dimension_numbers<[1], [0], [0], [1], [0, 0, 1, 1], [], []>} : vector<128x128xf32>, vector<128x384xf32>, vector<128x384xf32> -> vector<128x384xf32>
        %c0_52 = arith.constant 0 : index
        %c0_53 = arith.constant 0 : index
        %45 = vector.load %arg28[%c0_52, %c0_53] : memref<1x384xf32, #tpu.memory_space<vmem>>, vector<1x384xf32>
        %46 = vector.broadcast %45 : vector<1x384xf32> to vector<128x384xf32>
        %47 = arith.addf %44, %46 : vector<128x384xf32>
        %48 = vector.extract_strided_slice %42 {offsets = [0, 0], sizes = [128, 128], strides = [1, 1]} : vector<128x384xf32> to vector<128x128xf32>
        %49 = vector.extract_strided_slice %47 {offsets = [0, 0], sizes = [128, 128], strides = [1, 1]} : vector<128x384xf32> to vector<128x128xf32>
        %50 = arith.addf %48, %49 : vector<128x128xf32>
        %51 = arith.negf %50 : vector<128x128xf32>
        %52 = math.exp %51 : vector<128x128xf32>
        %cst_54 = arith.constant 1.000000e+00 : f32
        %53 = vector.broadcast %cst_54 : f32 to vector<128x128xf32>
        %54 = arith.addf %53, %52 : vector<128x128xf32>
        %55 = arith.divf %53, %54 : vector<128x128xf32>
        %56 = vector.extract_strided_slice %42 {offsets = [0, 128], sizes = [128, 128], strides = [1, 1]} : vector<128x384xf32> to vector<128x128xf32>
        %57 = vector.extract_strided_slice %47 {offsets = [0, 128], sizes = [128, 128], strides = [1, 1]} : vector<128x384xf32> to vector<128x128xf32>
        %58 = arith.addf %56, %57 : vector<128x128xf32>
        %59 = arith.negf %58 : vector<128x128xf32>
        %60 = math.exp %59 : vector<128x128xf32>
        %cst_55 = arith.constant 1.000000e+00 : f32
        %61 = vector.broadcast %cst_55 : f32 to vector<128x128xf32>
        %62 = arith.addf %61, %60 : vector<128x128xf32>
        %63 = arith.divf %61, %62 : vector<128x128xf32>
        %64 = vector.extract_strided_slice %42 {offsets = [0, 256], sizes = [128, 128], strides = [1, 1]} : vector<128x384xf32> to vector<128x128xf32>
        %65 = vector.extract_strided_slice %47 {offsets = [0, 256], sizes = [128, 128], strides = [1, 1]} : vector<128x384xf32> to vector<128x128xf32>
        %66 = arith.mulf %55, %65 : vector<128x128xf32>
        %67 = arith.addf %64, %66 : vector<128x128xf32>
        %68 = math.tanh %67 : vector<128x128xf32>
        %cst_56 = arith.constant 1.000000e+00 : f32
        %69 = vector.broadcast %cst_56 : f32 to vector<128x128xf32>
        %70 = arith.subf %69, %63 : vector<128x128xf32>
        %71 = arith.mulf %70, %68 : vector<128x128xf32>
        %72 = arith.mulf %63, %36 : vector<128x128xf32>
        %73 = arith.addf %71, %72 : vector<128x128xf32>
        %c0_57 = arith.constant 0 : index
        %c0_58 = arith.constant 0 : index
        %74 = vector.load %arg4[%c0_57, %c0_58] : memref<128x1xi32, #tpu.memory_space<vmem>>, vector<128x1xi32>
        %75 = vector.broadcast %arg34 : i32 to vector<128x1xi32>
        %76 = arith.cmpi eq, %74, %75 : vector<128x1xi32>
        %77 = vector.shape_cast %76 : vector<128x1xi1> to vector<128x1xi1>
        %78 = vector.broadcast %77 : vector<128x1xi1> to vector<128x128xi1>
        %79 = arith.select %78, %73, %10 : vector<128x128xi1>, vector<128x128xf32>
        %c0_59 = arith.constant 0 : index
        %c0_60 = arith.constant 0 : index
        %80 = vector.load %arg31[%c0_59, %c0_60] : memref<128x128xf32, #tpu.memory_space<vmem>>, vector<128x128xf32>
        tpu.vector_store %arg31[%c0_59, %c0_60], %79 {strides = array<i32>} : memref<128x128xf32, #tpu.memory_space<vmem>>, vector<128x128xf32>,
      }
      %c3_i32_14 = arith.constant 3 : i32
    }
    %c2_i32_5 = arith.constant 2 : i32
    return
  }
}

</mosaic_0001>

<bundles_post_ra>
// kernel: tpu_custom_call.1
= control target key start
LH: loop header
LB: loop body
LE: loop exit
PB: predicated region body
PF: predicated region fallthrough
CT: control target
= control target key end

     0   :  { %s7918_s6 = smov 1   ;;  %s7919_s10 = smov 2   ;;  %s9247_s0 = inlined_call_operand.smem [shape: u32[32], index: -1, kind: input, shape index: {}] }
   0x1   :  { %s7981_s5 = sld [smem:[%s9247_s0]]   ;;  %s7920_s14 = smov 3  }
   0x2   :  { %s7986_s9 = sld [smem:[%s9247_s0 + %s7918_s6]]   ;;  %s7921_s18 = smov 4  }
   0x3   :  { %s7991_s13 = sld [smem:[%s9247_s0 + %s7919_s10]]   ;;  %s7922_s22 = smov 5  }
   0x4   :  { %s7996_s17 = sld [smem:[%s9247_s0 + %s7920_s14]]   ;;  %s7923_s26 = smov 6  }
   0x5   :  { %s8001_s21 = sld [smem:[%s9247_s0 + %s7921_s18]]   ;;  %s7924_s30 = smov 7  }
   0x6   :  { %s8006_s25 = sld [smem:[%s9247_s0 + %s7922_s22]]   ;;  %s7925_s4 = smov 8  }
   0x7   :  { %s8011_s29 = sld [smem:[%s9247_s0 + %s7923_s26]]   ;;  %s7926_s10 = smov 9  }
   0x8   :  { %9270 = sst [smem:[#allocation36_spill]] %s7986_s9  ;;  %s7927_s15 = smov 10  }
   0x9   :  { %s8016_s3 = sld [smem:[%s9247_s0 + %s7924_s30]]   ;;  %s7928_s20 = smov 11  }
   0xa   :  { %9271 = sst [smem:[#allocation37_spill]] %s7996_s17  ;;  %s7929_s26 = smov 12  }
   0xb   :  { %9272 = sst [smem:[#allocation38_spill]] %s8001_s21  ;;  %s7930_s1 = smov 13  }
   0xc   :  { %s8021_s8 = sld [smem:[%s9247_s0 + %s7925_s4]]   ;;  %s7931_s7 = smov 14  }
   0xd   :  { %9273 = sst [smem:[#allocation39_spill]] %s8011_s29  ;;  %s7933_s22 = smov 16  }
   0xe   :  { %s8026_s14 = sld [smem:[%s9247_s0 + %s7926_s10]]   ;;  %s7934_s28 = smov 17  }
   0xf   :  { %s8031_s19 = sld [smem:[%s9247_s0 + %s7927_s15]]   ;;  %s7932_s15 = smov 15  }
  0x10   :  { %s8036_s24 = sld [smem:[%s9247_s0 + %s7928_s20]]  }
  0x11   :  { %s8041_s30 = sld [smem:[%s9247_s0 + %s7929_s26]]  }
  0x12   :  { %9274 = sst [smem:[#allocation40_spill]] %s8021_s8 }
  0x13   :  { %s8046_s6 = sld [smem:[%s9247_s0 + %s7930_s1]]  }
  0x14   :  { %s8051_s12 = sld [smem:[%s9247_s0 + %s7931_s7]]   ;;  %s7935_s7 = smov 18  }
  0x15   :  { %9275 = sst [smem:[#allocation41_spill]] %s8031_s19 }
  0x16   :  { %s8056_s20 = sld [smem:[%s9247_s0 + %s7932_s15]]   ;;  %s7936_s15 = smov 19  }
  0x17   :  { %9276 = sst [smem:[#allocation42_spill]] %s8041_s30 }
  0x18   :  { %s8061_s27 = sld [smem:[%s9247_s0 + %s7933_s22]]   ;;  %s7937_s22 = smov 20  }
  0x19   :  { %s8066_s4 = sld [smem:[%s9247_s0 + %s7934_s28]]   ;;  %s7938_s28 = smov 21  }
  0x1a   :  { %9277 = sst [smem:[#allocation43_spill]] %s8051_s12 }
  0x1b   :  { %s8071_s21 = sld [smem:[%s9247_s0 + %s7935_s7]]   ;;  %s7939_s7 = smov 22  }
  0x1c   :  { %s8076_s12 = sld [smem:[%s9247_s0 + %s7936_s15]]   ;;  %s7940_s15 = smov 23  }
  0x1d   :  { %s8086_s30 = sld [smem:[%s9247_s0 + %s7938_s28]]   ;;  %s7942_s28 = smov 25  }
  0x1e   :  { %9278 = sst [smem:[#allocation44_spill]] %s8061_s27 }
  0x1f   :  { %s8081_s27 = sld [smem:[%s9247_s0 + %s7937_s22]]   ;;  %s7941_s22 = smov 24  }
  0x20   :  { %s8096_s17 = sld [smem:[%s9247_s0 + %s7940_s15]]   ;;  %s7944_s15 = smov 27  }
  0x21   :  { %9279 = sst [smem:[#allocation45_spill]] %s8071_s21 }
  0x22   :  { %s8091_s21 = sld [smem:[%s9247_s0 + %s7939_s7]]   ;;  %s7943_s7 = smov 26  }
  0x23   :  { %s8106_s19 = sld [smem:[%s9247_s0 + %s7942_s28]]   ;;  %s7946_s28 = smov 29  }
  0x24   :  { %s8111_s8 = sld [smem:[%s9247_s0 + %s7943_s7]]   ;;  %s7947_s7 = smov 30  }
  0x25   :  { %9280 = sst [smem:[#allocation46_spill]] %s8081_s27 }
  0x26   :  { %9281 = sst [smem:[#allocation47_spill]] %s8096_s17 }
  0x27   :  { %s8101_s27 = sld [smem:[%s9247_s0 + %s7941_s22]]   ;;  %s7945_s22 = smov 28  }
  0x28   :  { %s8116_s17 = sld [smem:[%s9247_s0 + %s7944_s15]]   ;;  %s7948_s15 = smov 31  }
  0x29   :  { %s8126_s9 = sld [smem:[%s9247_s0 + %s7946_s28]]  }
  0x2a   :  { %s8131_s29 = sld [smem:[%s9247_s0 + %s7947_s7]]  }
  0x2d   :  { %9282 = sst [smem:[#allocation48_spill]] %s8101_s27 }
  0x2e   :  { %9283 = sst [smem:[#allocation49_spill]] %s8116_s17 }
  0x2f   :  { %s8121_s27 = sld [smem:[%s9247_s0 + %s7945_s22]]  }
  0x30   :  { %s8136_s17 = sld [smem:[%s9247_s0 + %s7948_s15]]  }
  0x31   :  { %68 = vsyncpa [#allocation4], 0 }
  0x32   :  { %69 = vsyncpa [#allocation7], 0 }
  0x33   :  { %70 = vsyncpa [#allocation10], 0 }
  0x34   :  { %71 = vsyncpa [#allocation13], 0 }
  0x35   :  { %72 = vsyncpa [#allocation16], 0 }
  0x36   :  { %73 = vsyncpa [#allocation19], 0 }
  0x37   :  { %74 = vsyncpa [#allocation22], 0 }
  0x38   :  { %75 = vsyncpa [#allocation25], 0 }
  0x39   :  { %76 = vsyncpa [#allocation5], 0  ;;  %s7949_s22 = smov [#allocation6]   ;;  %s7950_s26 = smov [#allocation9]  }
  0x3a   :  { %s102_s23 = sshll.u32 %s7949_s22, 4  ;;  %s130_s28 = sshll.u32 %s7950_s26, 4  ;;  %s103_s23 = int_to_ptr.vmem [resolvable:$true] %s102_s23  ;;  %s8138_s28 = int_to_ptr.vmem [resolvable:$true] %s130_s28 }
  0x3b   :  { %s7546_s0 = scalar_lea.hbm %s8006_s25, 2048 }
  0x3c   :  { %p7547_p0 = scmp.ne.s32.totalorder %s8006_s25, %s7546_s0  ;;  %p7550_p1 = scmp.lt.u32.totalorder %s7546_s0, %s8006_s25 }
  0x3e   :  { %p7552_p2 = pnand %p7550_p1, %p7547_p0 }
  0x40   :  { %7555 = shalt.err (!%p7552_p2)
}
  0x41   :  { %s7556_s1 = scalar_lea.vmem %s103_s23, 2048  ;;  %p7561_p4 = scmp.lt.s32.totalorder %s103_s23, %s103_s23 }
  0x42   :  { %p7557_p3 = scmp.ne.s32.totalorder %s103_s23, %s7556_s1  ;;  %p7562_p5 = scmp.lt.s32.totalorder %s7556_s1, %s7556_s1 }
  0x44   :  { %p7563_p6 = por %p7562_p5, %p7561_p4 }
  0x46   :  { %p7564_p7 = pnand %p7563_p6, %p7557_p3 }
  0x48   :  { %7567 = shalt.err (!%p7564_p7)
}
  0x49   :  { %s7951_s2 = smov 128   ;;  %s7952_s7 = smov 8  }
  0x4a   :  { %108 = dma.hbm_to_vmem [thread:$0]  %s8006_s25, 2048, %s103_s23, [#allocation7], %s7951_s2, %s7951_s2, %s7952_s7  }
  0x4b   :  { %s7568_s10 = scalar_lea.hbm %s8026_s14, 2048 }
  0x4c   :  { %p7569_p8 = scmp.ne.s32.totalorder %s8026_s14, %s7568_s10  ;;  %p7572_p9 = scmp.lt.u32.totalorder %s7568_s10, %s8026_s14 }
  0x4e   :  { %p7574_p10 = pnand %p7572_p9, %p7569_p8 }
  0x50   :  { %7577 = shalt.err (!%p7574_p10)
}
  0x51   :  { %s7578_s11 = scalar_lea.vmem %s8138_s28, 2048  ;;  %p7583_p12 = scmp.lt.s32.totalorder %s8138_s28, %s8138_s28 }
  0x52   :  { %p7579_p11 = scmp.ne.s32.totalorder %s8138_s28, %s7578_s11  ;;  %p7584_p13 = scmp.lt.s32.totalorder %s7578_s11, %s7578_s11 }
  0x54   :  { %p7585_p0 = por %p7584_p13, %p7583_p12 }
  0x56   :  { %p7586_p1 = pnand %p7585_p0, %p7579_p11 }
  0x58   :  { %7589 = shalt.err (!%p7586_p1)
}
  0x59   :  { %136 = dma.hbm_to_vmem [thread:$0]  %s8026_s14, 2048, %s8138_s28, [#allocation10], %s7951_s2, %s7951_s2, %s7952_s7  }
  0x5a   :  { %s7953_s25 = smov [#allocation12]   ;;  %s7954_s16 = smov [#allocation15]  }
  0x5b   :  { %s158_s15 = sshll.u32 %s7953_s25, 4  ;;  %s186_s18 = sshll.u32 %s7954_s16, 4  ;;  %s159_s15 = int_to_ptr.vmem [resolvable:$true] %s158_s15  ;;  %s8159_s18 = int_to_ptr.vmem [resolvable:$true] %s186_s18 }
  0x5c   :  { %s7590_s22 = scalar_lea.hbm %s8046_s6, 2048 }
  0x5d   :  { %p7591_p2 = scmp.ne.s32.totalorder %s8046_s6, %s7590_s22  ;;  %p7594_p3 = scmp.lt.u32.totalorder %s7590_s22, %s8046_s6 }
  0x5f   :  { %p7596_p4 = pnand %p7594_p3, %p7591_p2 }
  0x61   :  { %7599 = shalt.err (!%p7596_p4)
}
  0x62   :  { %s7600_s23 = scalar_lea.vmem %s159_s15, 2048  ;;  %p7605_p6 = scmp.lt.s32.totalorder %s159_s15, %s159_s15 }
  0x63   :  { %p7601_p5 = scmp.ne.s32.totalorder %s159_s15, %s7600_s23  ;;  %p7606_p7 = scmp.lt.s32.totalorder %s7600_s23, %s7600_s23 }
  0x65   :  { %p7607_p8 = por %p7606_p7, %p7605_p6 }
  0x67   :  { %p7608_p9 = pnand %p7607_p8, %p7601_p5 }
  0x69   :  { %7611 = shalt.err (!%p7608_p9)
}
  0x6a   :  { %164 = dma.hbm_to_vmem [thread:$0]  %s8046_s6, 2048, %s159_s15, [#allocation13], %s7951_s2, %s7951_s2, %s7952_s7  }
  0x6b   :  { %s7612_s14 = scalar_lea.hbm %s8066_s4, 2048 }
  0x6c   :  { %p7613_p10 = scmp.ne.s32.totalorder %s8066_s4, %s7612_s14  ;;  %p7616_p11 = scmp.lt.u32.totalorder %s7612_s14, %s8066_s4 }
  0x6e   :  { %p7618_p12 = pnand %p7616_p11, %p7613_p10 }
  0x70   :  { %7621 = shalt.err (!%p7618_p12)
}
  0x71   :  { %s7622_s26 = scalar_lea.vmem %s8159_s18, 2048  ;;  %p7627_p0 = scmp.lt.s32.totalorder %s8159_s18, %s8159_s18 }
  0x72   :  { %p7623_p13 = scmp.ne.s32.totalorder %s8159_s18, %s7622_s26  ;;  %p7628_p1 = scmp.lt.s32.totalorder %s7622_s26, %s7622_s26 }
  0x74   :  { %p7629_p2 = por %p7628_p1, %p7627_p0 }
  0x76   :  { %p7630_p3 = pnand %p7629_p2, %p7623_p13 }
  0x78   :  { %7633 = shalt.err (!%p7630_p3)
}
  0x79   :  { %192 = dma.hbm_to_vmem [thread:$0]  %s8066_s4, 2048, %s8159_s18, [#allocation16], %s7951_s2, %s7951_s2, %s7952_s7  }
  0x7a   :  { %s7955_s6 = smov [#allocation18]   ;;  %s7634_s0 = scalar_lea.hbm %s8086_s30, 6144 }
  0x7b   :  { %s214_s28 = sshll.u32 %s7955_s6, 4  ;;  %p7635_p4 = scmp.ne.s32.totalorder %s8086_s30, %s7634_s0  ;;  %s215_s28 = int_to_ptr.vmem [resolvable:$true] %s214_s28 }
  0x7c   :  { %p7638_p5 = scmp.lt.u32.totalorder %s7634_s0, %s8086_s30 }
  0x7e   :  { %p7640_p6 = pnand %p7638_p5, %p7635_p4 }
  0x80   :  { %7643 = shalt.err (!%p7640_p6)
}
  0x81   :  { %s7644_s1 = scalar_lea.vmem %s215_s28, 6144  ;;  %p7649_p8 = scmp.lt.s32.totalorder %s215_s28, %s215_s28 }
  0x82   :  { %p7645_p7 = scmp.ne.s32.totalorder %s215_s28, %s7644_s1  ;;  %p7650_p9 = scmp.lt.s32.totalorder %s7644_s1, %s7644_s1 }
  0x84   :  { %p7651_p10 = por %p7650_p9, %p7649_p8 }
  0x86   :  { %p7652_p11 = pnand %p7651_p10, %p7645_p7 }
  0x88   :  { %7655 = shalt.err (!%p7652_p11)
}
  0x89   :  { %s7956_s10 = smov 384   ;;  %s7957_s4 = smov 24  }
  0x8a   :  { %220 = dma.hbm_to_vmem [thread:$0]  %s8086_s30, 6144, %s215_s28, [#allocation19], %s7956_s10, %s7956_s10, %s7957_s4  }
  0x8b   :  { %s7958_s11 = smov [#allocation21]   ;;  %s7959_s15 = smov [#allocation3]  }
  0x8c   :  { %s242_s25 = sshll.u32 %s7958_s11, 4  ;;  %s86_s16 = sshll.u32 %s7959_s15, 4  ;;  %s243_s25 = int_to_ptr.vmem [resolvable:$true] %s242_s25  ;;  %s87_s16 = int_to_ptr.vmem [resolvable:$true] %s86_s16 }
  0x8d   :  { %s7656_s18 = scalar_lea.hbm %s8106_s19, 6144 }
  0x8e   :  { %p7657_p12 = scmp.ne.s32.totalorder %s8106_s19, %s7656_s18  ;;  %p7660_p13 = scmp.lt.u32.totalorder %s7656_s18, %s8106_s19 }
  0x90   :  { %p7662_p0 = pnand %p7660_p13, %p7657_p12 }
  0x92   :  { %7665 = shalt.err (!%p7662_p0)
}
  0x93   :  { %s7666_s22 = scalar_lea.vmem %s243_s25, 6144  ;;  %p7671_p2 = scmp.lt.s32.totalorder %s243_s25, %s243_s25 }
  0x94   :  { %p7667_p1 = scmp.ne.s32.totalorder %s243_s25, %s7666_s22  ;;  %p7672_p3 = scmp.lt.s32.totalorder %s7666_s22, %s7666_s22 }
  0x96   :  { %p7673_p4 = por %p7672_p3, %p7671_p2 }
  0x98   :  { %p7674_p5 = pnand %p7673_p4, %p7667_p1 }
  0x9a   :  { %7677 = shalt.err (!%p7674_p5)
}
  0x9b   :  { %248 = dma.hbm_to_vmem [thread:$0]  %s8106_s19, 6144, %s243_s25, [#allocation22], %s7956_s10, %s7956_s10, %s7957_s4  }
  0x9c   :  { %s7678_s30 = scalar_lea.hbm %s7991_s13, 2048 }
  0x9d   :  { %p7679_p6 = scmp.ne.s32.totalorder %s7991_s13, %s7678_s30  ;;  %p7682_p7 = scmp.lt.u32.totalorder %s7678_s30, %s7991_s13 }
  0x9f   :  { %p7684_p8 = pnand %p7682_p7, %p7679_p6 }
  0xa1   :  { %7687 = shalt.err (!%p7684_p8)
}
  0xa2   :  { %s7688_s23 = scalar_lea.vmem %s87_s16, 2048  ;;  %p7693_p10 = scmp.lt.s32.totalorder %s87_s16, %s87_s16 }
  0xa3   :  { %p7689_p9 = scmp.ne.s32.totalorder %s87_s16, %s7688_s23  ;;  %p7694_p11 = scmp.lt.s32.totalorder %s7688_s23, %s7688_s23 }
  0xa5   :  { %p7695_p12 = por %p7694_p11, %p7693_p10 }
  0xa7   :  { %p7696_p13 = pnand %p7695_p12, %p7689_p9 }
  0xa9   :  { %7699 = shalt.err (!%p7696_p13)
}
  0xaa   :  { %92 = dma.hbm_to_vmem [thread:$0]  %s7991_s13, 2048, %s87_s16, [#allocation4], %s7951_s2, %s7951_s2, %s7952_s7  }
  0xab   :  { %s7960_s19 = smov [#allocation8]   ;;  %s7961_s26 = smov [#allocation11]  }
  0xac   :  { %s116_s14 = sshll.u32 %s7960_s19, 4  ;;  %s144_s6 = sshll.u32 %s7961_s26, 4  ;;  %s117_s14 = int_to_ptr.vmem [resolvable:$true] %s116_s14  ;;  %s145_s6 = int_to_ptr.vmem [resolvable:$true] %s144_s6 }
  0xad   :  { %s7700_s28 = scalar_lea.hbm %s8016_s3, 2048 }
  0xae   :  { %p7701_p0 = scmp.ne.s32.totalorder %s8016_s3, %s7700_s28  ;;  %p7704_p1 = scmp.lt.u32.totalorder %s7700_s28, %s8016_s3 }
  0xb0   :  { %p7706_p2 = pnand %p7704_p1, %p7701_p0 }
  0xb2   :  { %7709 = shalt.err (!%p7706_p2)
}
  0xb3   :  { %s7710_s0 = scalar_lea.vmem %s117_s14, 2048  ;;  %p7715_p4 = scmp.lt.s32.totalorder %s117_s14, %s117_s14 }
  0xb4   :  { %p7711_p3 = scmp.ne.s32.totalorder %s117_s14, %s7710_s0  ;;  %p7716_p5 = scmp.lt.s32.totalorder %s7710_s0, %s7710_s0 }
  0xb6   :  { %p7717_p6 = por %p7716_p5, %p7715_p4 }
  0xb8   :  { %p7718_p7 = pnand %p7717_p6, %p7711_p3 }
  0xba   :  { %7721 = shalt.err (!%p7718_p7)
}
  0xbb   :  { %122 = dma.hbm_to_vmem [thread:$0]  %s8016_s3, 2048, %s117_s14, [#allocation7], %s7951_s2, %s7951_s2, %s7952_s7  }
  0xbc   :  { %s7722_s13 = scalar_lea.hbm %s8036_s24, 2048 }
  0xbd   :  { %p7723_p8 = scmp.ne.s32.totalorder %s8036_s24, %s7722_s13  ;;  %p7726_p9 = scmp.lt.u32.totalorder %s7722_s13, %s8036_s24 }
  0xbf   :  { %p7728_p10 = pnand %p7726_p9, %p7723_p8 }
  0xc1   :  { %7731 = shalt.err (!%p7728_p10)
}
  0xc2   :  { %s7732_s1 = scalar_lea.vmem %s145_s6, 2048  ;;  %p7737_p12 = scmp.lt.s32.totalorder %s145_s6, %s145_s6 }
  0xc3   :  { %p7733_p11 = scmp.ne.s32.totalorder %s145_s6, %s7732_s1  ;;  %p7738_p13 = scmp.lt.s32.totalorder %s7732_s1, %s7732_s1 }
  0xc5   :  { %p7739_p0 = por %p7738_p13, %p7737_p12 }
  0xc7   :  { %p7740_p1 = pnand %p7739_p0, %p7733_p11 }
  0xc9   :  { %7743 = shalt.err (!%p7740_p1)
}
  0xca   :  { %150 = dma.hbm_to_vmem [thread:$0]  %s8036_s24, 2048, %s145_s6, [#allocation10], %s7951_s2, %s7951_s2, %s7952_s7  }
  0xcb   :  { %s7962_s3 = smov [#allocation14]   ;;  %s7963_s25 = smov [#allocation17]  }
  0xcc   :  { %s172_s11 = sshll.u32 %s7962_s3, 4  ;;  %s200_s15 = sshll.u32 %s7963_s25, 4  ;;  %s173_s11 = int_to_ptr.vmem [resolvable:$true] %s172_s11  ;;  %s201_s15 = int_to_ptr.vmem [resolvable:$true] %s200_s15 }
  0xcd   :  { %s7744_s16 = scalar_lea.hbm %s8056_s20, 2048 }
  0xce   :  { %p7745_p2 = scmp.ne.s32.totalorder %s8056_s20, %s7744_s16  ;;  %p7748_p3 = scmp.lt.u32.totalorder %s7744_s16, %s8056_s20 }
  0xd0   :  { %p7750_p4 = pnand %p7748_p3, %p7745_p2 }
  0xd2   :  { %7753 = shalt.err (!%p7750_p4)
}
  0xd3   :  { %s7754_s18 = scalar_lea.vmem %s173_s11, 2048  ;;  %p7759_p6 = scmp.lt.s32.totalorder %s173_s11, %s173_s11 }
  0xd4   :  { %p7755_p5 = scmp.ne.s32.totalorder %s173_s11, %s7754_s18  ;;  %p7760_p7 = scmp.lt.s32.totalorder %s7754_s18, %s7754_s18 }
  0xd6   :  { %p7761_p8 = por %p7760_p7, %p7759_p6 }
  0xd8   :  { %p7762_p9 = pnand %p7761_p8, %p7755_p5 }
  0xda   :  { %7765 = shalt.err (!%p7762_p9)
}
  0xdb   :  { %178 = dma.hbm_to_vmem [thread:$0]  %s8056_s20, 2048, %s173_s11, [#allocation13], %s7951_s2, %s7951_s2, %s7952_s7  }
  0xdc   :  { %s7766_s24 = scalar_lea.hbm %s8076_s12, 2048 }
  0xdd   :  { %p7767_p10 = scmp.ne.s32.totalorder %s8076_s12, %s7766_s24  ;;  %p7770_p11 = scmp.lt.u32.totalorder %s7766_s24, %s8076_s12 }
  0xdf   :  { %p7772_p12 = pnand %p7770_p11, %p7767_p10 }
  0xe1   :  { %7775 = shalt.err (!%p7772_p12)
}
  0xe2   :  { %s7776_s22 = scalar_lea.vmem %s201_s15, 2048  ;;  %p7781_p0 = scmp.lt.s32.totalorder %s201_s15, %s201_s15 }
  0xe3   :  { %p7777_p13 = scmp.ne.s32.totalorder %s201_s15, %s7776_s22  ;;  %p7782_p1 = scmp.lt.s32.totalorder %s7776_s22, %s7776_s22 }
  0xe5   :  { %p7783_p2 = por %p7782_p1, %p7781_p0 }
  0xe7   :  { %p7784_p3 = pnand %p7783_p2, %p7777_p13 }
  0xe9   :  { %7787 = shalt.err (!%p7784_p3)
}
  0xea   :  { %206 = dma.hbm_to_vmem [thread:$0]  %s8076_s12, 2048, %s201_s15, [#allocation16], %s7951_s2, %s7951_s2, %s7952_s7  }
  0xeb   :  { %s7964_s20 = smov [#allocation20]   ;;  %s7965_s23 = smov [#allocation23]  }
  0xec   :  { %s226_s30 = sshll.u32 %s7964_s20, 4  ;;  %s254_s19 = sshll.u32 %s7965_s23, 4  ;;  %s227_s30 = int_to_ptr.vmem [resolvable:$true] %s226_s30  ;;  %s255_s19 = int_to_ptr.vmem [resolvable:$true] %s254_s19 }
  0xed   :  { %s7788_s14 = scalar_lea.hbm %s8091_s21, 6144 }
  0xee   :  { %p7789_p4 = scmp.ne.s32.totalorder %s8091_s21, %s7788_s14  ;;  %p7792_p5 = scmp.lt.u32.totalorder %s7788_s14, %s8091_s21 }
  0xf0   :  { %p7794_p6 = pnand %p7792_p5, %p7789_p4 }
  0xf2   :  { %7797 = shalt.err (!%p7794_p6)
}
  0xf3   :  { %s7798_s26 = scalar_lea.vmem %s227_s30, 6144  ;;  %p7803_p8 = scmp.lt.s32.totalorder %s227_s30, %s227_s30 }
  0xf4   :  { %p7799_p7 = scmp.ne.s32.totalorder %s227_s30, %s7798_s26  ;;  %p7804_p9 = scmp.lt.s32.totalorder %s7798_s26, %s7798_s26 }
  0xf6   :  { %p7805_p10 = por %p7804_p9, %p7803_p8 }
  0xf8   :  { %p7806_p11 = pnand %p7805_p10, %p7799_p7 }
  0xfa   :  { %7809 = shalt.err (!%p7806_p11)
}
  0xfb   :  { %232 = dma.hbm_to_vmem [thread:$0]  %s8091_s21, 6144, %s227_s30, [#allocation19], %s7956_s10, %s7956_s10, %s7957_s4  }
  0xfc   :  { %s7810_s12 = scalar_lea.hbm %s8111_s8, 6144 }
  0xfd   :  { %p7811_p12 = scmp.ne.s32.totalorder %s8111_s8, %s7810_s12  ;;  %p7814_p13 = scmp.lt.u32.totalorder %s7810_s12, %s8111_s8 }
  0xff   :  { %p7816_p0 = pnand %p7814_p13, %p7811_p12 }
 0x101   :  { %7819 = shalt.err (!%p7816_p0)
}
 0x102   :  { %s7820_s6 = scalar_lea.vmem %s255_s19, 6144  ;;  %p7825_p2 = scmp.lt.s32.totalorder %s255_s19, %s255_s19 }
 0x103   :  { %p7821_p1 = scmp.ne.s32.totalorder %s255_s19, %s7820_s6  ;;  %p7826_p3 = scmp.lt.s32.totalorder %s7820_s6, %s7820_s6 }
 0x105   :  { %p7827_p4 = por %p7826_p3, %p7825_p2 }
 0x107   :  { %p7828_p5 = pnand %p7827_p4, %p7821_p1 }
 0x109   :  { %7831 = shalt.err (!%p7828_p5)
}
 0x10a   :  { %260 = dma.hbm_to_vmem [thread:$0]  %s8111_s8, 6144, %s255_s19, [#allocation22], %s7956_s10, %s7956_s10, %s7957_s4  }
 0x10b   :  { %s7966_s21 = smov [#allocation24]   ;;  %s7832_s0 = scalar_lea.hbm %s8126_s9, 2048 }
 0x10c   :  { %s270_s28 = sshll.u32 %s7966_s21, 4  ;;  %p7833_p6 = scmp.ne.s32.totalorder %s8126_s9, %s7832_s0  ;;  %s271_s28 = int_to_ptr.vmem [resolvable:$true] %s270_s28 }
 0x10d   :  { %p7836_p7 = scmp.lt.u32.totalorder %s7832_s0, %s8126_s9 }
 0x10f   :  { %p7838_p8 = pnand %p7836_p7, %p7833_p6 }
 0x111   :  { %7841 = shalt.err (!%p7838_p8)
}
 0x112   :  { %s7842_s13 = scalar_lea.vmem %s271_s28, 2048  ;;  %p7847_p10 = scmp.lt.s32.totalorder %s271_s28, %s271_s28 }
 0x113   :  { %p7843_p9 = scmp.ne.s32.totalorder %s271_s28, %s7842_s13  ;;  %p7848_p11 = scmp.lt.s32.totalorder %s7842_s13, %s7842_s13 }
 0x115   :  { %p7849_p12 = por %p7848_p11, %p7847_p10 }
 0x117   :  { %p7850_p13 = pnand %p7849_p12, %p7843_p9 }
 0x119   :  { %7853 = shalt.err (!%p7850_p13)
}
 0x11a   :  { %276 = dma.hbm_to_vmem [thread:$0]  %s8126_s9, 2048, %s271_s28, [#allocation25], %s7951_s2, %s7951_s2, %s7952_s7  }
 0x11b   :  { %7888 = dma.done.wait [#allocation4], 2048  }
 0x11c   :  { %7889 = vsyncadd [#allocation4], 4294965248 }
 0x11d   :  { %7890 = dma.done.wait [#allocation7], 4096  }
 0x11e   :  { %7891 = vsyncadd [#allocation7], 4294963200 }
 0x11f   :  { %7892 = dma.done.wait [#allocation10], 4096  }
 0x120   :  { %7893 = vsyncadd [#allocation10], 4294963200 }
 0x121   :  { %7894 = dma.done.wait [#allocation13], 4096  }
 0x122   :  { %7895 = vsyncadd [#allocation13], 4294963200 }
 0x123   :  { %7896 = dma.done.wait [#allocation16], 4096  }
 0x124   :  { %7897 = vsyncadd [#allocation16], 4294963200 }
 0x125   :  { %7898 = dma.done.wait [#allocation19], 12288  }
 0x126   :  { %7899 = vsyncadd [#allocation19], 4294955008 }
 0x127   :  { %7900 = dma.done.wait [#allocation22], 12288  }
 0x128   :  { %7901 = vsyncadd [#allocation22], 4294955008 }
 0x129   :  { %7902 = dma.done.wait [#allocation25], 2048  }
 0x12a   :  { %7903 = vsyncadd [#allocation25], 4294965248  ;;  %v7967_v0 = vmov 0.0   ;;  %v337_v1 = vld [vmem:[%s7981_s5] sm:$0xff]  ;;  %v338_v2 = vld [vmem:[%s7981_s5 + $0x8] sm:$0xff]  ;;  %s8266_s9 = smov 0  }
 0x12b   :  { %321 = vst [vmem:[#allocation26] sm:$0xff] %v7967_v0  ;;  %322 = vst [vmem:[#allocation26 + $0x8] sm:$0xff] %v7967_v0  ;;  %v339_v3 = vld [vmem:[%s7981_s5 + $0x10] sm:$0xff]  ;;  %v340_v4 = vld [vmem:[%s7981_s5 + $0x18] sm:$0xff] }
 0x12c   :  { %323 = vst [vmem:[#allocation26 + $0x10] sm:$0xff] %v7967_v0  ;;  %324 = vst [vmem:[#allocation26 + $0x18] sm:$0xff] %v7967_v0  ;;  %v341_v5 = vld [vmem:[%s7981_s5 + $0x20] sm:$0xff]  ;;  %v342_v6 = vld [vmem:[%s7981_s5 + $0x28] sm:$0xff] }
 0x12d   :  { %325 = vst [vmem:[#allocation26 + $0x20] sm:$0xff] %v7967_v0  ;;  %326 = vst [vmem:[#allocation26 + $0x28] sm:$0xff] %v7967_v0  ;;  %v343_v7 = vld [vmem:[%s7981_s5 + $0x30] sm:$0xff]  ;;  %v344_v8 = vld [vmem:[%s7981_s5 + $0x38] sm:$0xff] }
 0x12e   :  { %327 = vst [vmem:[#allocation26 + $0x30] sm:$0xff] %v7967_v0  ;;  %328 = vst [vmem:[#allocation26 + $0x38] sm:$0xff] %v7967_v0  ;;  %v345_v9 = vld [vmem:[%s7981_s5 + $0x40] sm:$0xff]  ;;  %v346_v10 = vld [vmem:[%s7981_s5 + $0x48] sm:$0xff] }
 0x12f   :  { %329 = vst [vmem:[#allocation26 + $0x40] sm:$0xff] %v7967_v0  ;;  %330 = vst [vmem:[#allocation26 + $0x48] sm:$0xff] %v7967_v0  ;;  %v347_v11 = vld [vmem:[%s7981_s5 + $0x50] sm:$0xff]  ;;  %v348_v12 = vld [vmem:[%s7981_s5 + $0x58] sm:$0xff] }
 0x130   :  { %331 = vst [vmem:[#allocation26 + $0x50] sm:$0xff] %v7967_v0  ;;  %332 = vst [vmem:[#allocation26 + $0x58] sm:$0xff] %v7967_v0  ;;  %v349_v13 = vld [vmem:[%s7981_s5 + $0x60] sm:$0xff]  ;;  %v350_v14 = vld [vmem:[%s7981_s5 + $0x68] sm:$0xff] }
 0x131   :  { %333 = vst [vmem:[#allocation26 + $0x60] sm:$0xff] %v7967_v0  ;;  %334 = vst [vmem:[#allocation26 + $0x68] sm:$0xff] %v7967_v0  ;;  %v351_v15 = vld [vmem:[%s7981_s5 + $0x70] sm:$0xff]  ;;  %v352_v16 = vld [vmem:[%s7981_s5 + $0x78] sm:$0xff] }
 0x132   :  { %335 = vst [vmem:[#allocation26 + $0x70] sm:$0xff] %v7967_v0  ;;  %336 = vst [vmem:[#allocation26 + $0x78] sm:$0xff] %v7967_v0 }
 0x133   :  { %353 = vst [vmem:[#allocation2] sm:$0xff] %v337_v1  ;;  %354 = vst [vmem:[#allocation2 + $0x8] sm:$0xff] %v338_v2 }
 0x134   :  { %355 = vst [vmem:[#allocation2 + $0x10] sm:$0xff] %v339_v3  ;;  %356 = vst [vmem:[#allocation2 + $0x18] sm:$0xff] %v340_v4 }
 0x135   :  { %357 = vst [vmem:[#allocation2 + $0x20] sm:$0xff] %v341_v5  ;;  %358 = vst [vmem:[#allocation2 + $0x28] sm:$0xff] %v342_v6 }
 0x136   :  { %359 = vst [vmem:[#allocation2 + $0x30] sm:$0xff] %v343_v7  ;;  %360 = vst [vmem:[#allocation2 + $0x38] sm:$0xff] %v344_v8 }
 0x137   :  { %361 = vst [vmem:[#allocation2 + $0x40] sm:$0xff] %v345_v9  ;;  %362 = vst [vmem:[#allocation2 + $0x48] sm:$0xff] %v346_v10 }
 0x138   :  { %363 = vst [vmem:[#allocation2 + $0x50] sm:$0xff] %v347_v11  ;;  %364 = vst [vmem:[#allocation2 + $0x58] sm:$0xff] %v348_v12 }
 0x139   :  { %365 = vst [vmem:[#allocation2 + $0x60] sm:$0xff] %v349_v13  ;;  %366 = vst [vmem:[#allocation2 + $0x68] sm:$0xff] %v350_v14 }
 0x13a   :  { %367 = vst [vmem:[#allocation2 + $0x70] sm:$0xff] %v351_v15  ;;  %368 = vst [vmem:[#allocation2 + $0x78] sm:$0xff] %v352_v16 }
 0x13b LB: > { %p4901_p0 = scmp.le.s32.totalorder %s7908_s9, 0  ;;  %s7908_s9 = sphi %s8266_s9, %s374_s9  }
 0x13c   : > { %v395_v17 = vld [vmem:[#allocation24] sm:$0xff] (!%p4901_p0)  ;;  %v396_v18 = vld [vmem:[#allocation24 + $0x8] sm:$0xff] (!%p4901_p0)  ;;  %v397_v19 = vld [vmem:[#allocation24 + $0x10] sm:$0xff] (!%p4901_p0) }
 0x13d   : > { %378 = sbr.rel (%p4901_p0) target bundleno = 579 (0x243), region = 192  ;;  %v6295_v20 = vpack.c.bf16 (!%p4901_p0), %v396_v18, %v395_v17  ;;  %v398_v21 = vld [vmem:[#allocation24 + $0x18] sm:$0xff] (!%p4901_p0)  ;;  %v399_v23 = vld [vmem:[#allocation24 + $0x20] sm:$0xff] (!%p4901_p0)  ;;  %v400_v24 = vld [vmem:[#allocation24 + $0x28] sm:$0xff] (!%p4901_p0) }
 0x13e   : > { %v6299_v22 = vpack.c.bf16 (!%p4901_p0), %v398_v21, %v397_v19  ;;  %v6303_v25 = vpack.c.bf16 (!%p4901_p0), %v400_v24, %v399_v23  ;;  %v379_v26 = vld [vmem:[#allocation26] sm:$0xff] (!%p4901_p0)  ;;  %v401_v28 = vld [vmem:[#allocation24 + $0x30] sm:$0xff] (!%p4901_p0)  ;;  %v402_v29 = vld [vmem:[#allocation24 + $0x38] sm:$0xff] (!%p4901_p0) }
 0x13f   : > { %6296 = vmatprep.subr.bf16.mxu0 (!%p4901_p0), %v6295_v20  ;;  %6903 = vmatprep.subr.bf16.mxu1 (!%p4901_p0), %v6295_v20  ;;  %v387_v27 = vld [vmem:[#allocation26 + $0x40] sm:$0xff] (!%p4901_p0)  ;;  %v6307_v30 = vpack.c.bf16 (!%p4901_p0), %v402_v29, %v401_v28  ;;  %v404_v32 = vld [vmem:[#allocation24 + $0x48] sm:$0xff] (!%p4901_p0)  ;;  %v405_v34 = vld [vmem:[#allocation24 + $0x50] sm:$0xff] (!%p4901_p0) }
 0x140   : > { %6298 = vmatpush3.bf16.msra.mxu0 (!%p4901_p0), %v6295_v20  ;;  %6911 = vmatpush3.bf16.msra.mxu1 (!%p4901_p0), %v6295_v20  ;;  %v403_v31 = vld [vmem:[#allocation24 + $0x40] sm:$0xff] (!%p4901_p0)  ;;  %v406_v35 = vld [vmem:[#allocation24 + $0x58] sm:$0xff] (!%p4901_p0)  ;;  %v408_v38 = vld [vmem:[#allocation24 + $0x68] sm:$0xff] (!%p4901_p0) }
 0x141   : > { %6300 = vmatprep.subr.bf16.mxu0 (!%p4901_p0), %v6299_v22  ;;  %6904 = vmatprep.subr.bf16.mxu1 (!%p4901_p0), %v6299_v22  ;;  %v6311_v33 = vpack.c.bf16 (!%p4901_p0), %v404_v32, %v403_v31  ;;  %v6315_v36 = vpack.c.bf16 (!%p4901_p0), %v406_v35, %v405_v34  ;;  %v407_v37 = vld [vmem:[#allocation24 + $0x60] sm:$0xff] (!%p4901_p0)  ;;  %v409_v40 = vld [vmem:[#allocation24 + $0x70] sm:$0xff] (!%p4901_p0)  ;;  %v410_v41 = vld [vmem:[#allocation24 + $0x78] sm:$0xff] (!%p4901_p0) }
 0x142   : > { %5487 = vmatprep.mubr.f32.mxu0 (!%p4901_p0), %v379_v26  ;;  %5499 = vmatprep.mubr.f32.mxu1 (!%p4901_p0), %v387_v27  ;;  %v6319_v39 = vpack.c.bf16 (!%p4901_p0), %v408_v38, %v407_v37  ;;  %v6323_v42 = vpack.c.bf16 (!%p4901_p0), %v410_v41, %v409_v40  ;;  %v380_v43 = vld [vmem:[#allocation26 + $0x8] sm:$0xff] (!%p4901_p0)  ;;  %v381_v45 = vld [vmem:[#allocation26 + $0x10] sm:$0xff] (!%p4901_p0)  ;;  %v382_v47 = vld [vmem:[#allocation26 + $0x18] sm:$0xff] (!%p4901_p0) }
 0x143   : > { %v388_v44 = vld [vmem:[#allocation26 + $0x48] sm:$0xff] (!%p4901_p0)  ;;  %v389_v46 = vld [vmem:[#allocation26 + $0x50] sm:$0xff] (!%p4901_p0)  ;;  %v390_v48 = vld [vmem:[#allocation26 + $0x58] sm:$0xff] (!%p4901_p0) }
 0x144   : > { %6302 = vmatpush3.bf16.msra.mxu0 %v6299_v22  ;;  %6912 = vmatpush3.bf16.msra.mxu1 %v6299_v22  ;;  %v383_v49 = vld [vmem:[#allocation26 + $0x20] sm:$0xff]  ;;  %v384_v51 = vld [vmem:[#allocation26 + $0x28] sm:$0xff]  ;;  %v385_v53 = vld [vmem:[#allocation26 + $0x30] sm:$0xff] }
 0x145   : > { %6304 = vmatprep.subr.bf16.mxu0 %v6303_v25  ;;  %6905 = vmatprep.subr.bf16.mxu1 %v6303_v25  ;;  %v391_v50 = vld [vmem:[#allocation26 + $0x60] sm:$0xff]  ;;  %v392_v52 = vld [vmem:[#allocation26 + $0x68] sm:$0xff]  ;;  %v393_v54 = vld [vmem:[#allocation26 + $0x70] sm:$0xff] }
 0x146   : > { %v386_v55 = vld [vmem:[#allocation26 + $0x38] sm:$0xff]  ;;  %v4902_v57 = vld [vmem:[%s8131_s29] ss:$0 sm:$0xff] }
 0x147   : > { %v394_v56 = vld [vmem:[#allocation26 + $0x78] sm:$0xff] }
 0x148   : > { %6306 = vmatpush3.bf16.msra.mxu0 %v6303_v25  ;;  %6913 = vmatpush3.bf16.msra.mxu1 %v6303_v25 }
 0x149   : > { %6308 = vmatprep.subr.bf16.mxu0 %v6307_v30  ;;  %6906 = vmatprep.subr.bf16.mxu1 %v6307_v30 }
 0x14c   : > { %6310 = vmatpush3.bf16.msra.mxu0 %v6307_v30  ;;  %6914 = vmatpush3.bf16.msra.mxu1 %v6307_v30 }
 0x14d   : > { %6312 = vmatprep.subr.bf16.mxu0 %v6311_v33  ;;  %6907 = vmatprep.subr.bf16.mxu1 %v6311_v33 }
 0x150   : > { %6314 = vmatpush3.bf16.msra.mxu0 %v6311_v33  ;;  %6915 = vmatpush3.bf16.msra.mxu1 %v6311_v33 }
 0x151   : > { %6316 = vmatprep.subr.bf16.mxu0 %v6315_v36  ;;  %6908 = vmatprep.subr.bf16.mxu1 %v6315_v36 }
 0x154   : > { %6318 = vmatpush3.bf16.msra.mxu0 %v6315_v36  ;;  %6916 = vmatpush3.bf16.msra.mxu1 %v6315_v36 }
 0x155   : > { %6320 = vmatprep.subr.bf16.mxu0 %v6319_v39  ;;  %6909 = vmatprep.subr.bf16.mxu1 %v6319_v39 }
 0x158   : > { %6322 = vmatpush3.bf16.msra.mxu0 %v6319_v39  ;;  %6917 = vmatpush3.bf16.msra.mxu1 %v6319_v39 }
 0x159   : > { %6324 = vmatprep.subr.bf16.mxu0 %v6323_v42  ;;  %6910 = vmatprep.subr.bf16.mxu1 %v6323_v42 }
 0x15c   : > { %6326 = vmatpush3.bf16.msra.mxu0 %v6323_v42  ;;  %6918 = vmatpush3.bf16.msra.mxu1 %v6323_v42 }
 0x15f   : > { %5488 = vmatmul.mubr.f32.vlgmr.msra.gmra.mrb[0].mxu0 %v380_v43  ;;  %5500 = vmatmul.mubr.f32.vlgmr.msra.gmra.mrb[0].mxu1 %v388_v44 }
 0x160   : > { %5490 = vmatprep.mubr.f32.mxu0 %v381_v45  ;;  %5502 = vmatprep.mubr.f32.mxu1 %v389_v46 }
 0x163   : > { %5491 = vmatmul.mubr.f32.gmra.mrb[2].mxu0 %v382_v47  ;;  %5503 = vmatmul.mubr.f32.gmra.mrb[2].mxu1 %v390_v48 }
 0x164   : > { %5493 = vmatprep.mubr.f32.mxu0 %v383_v49  ;;  %5505 = vmatprep.mubr.f32.mxu1 %v391_v50 }
 0x167   : > { %5494 = vmatmul.mubr.f32.gmra.mrb[4].mxu0 %v384_v51  ;;  %5506 = vmatmul.mubr.f32.gmra.mrb[4].mxu1 %v392_v52 }
 0x168   : > { %5496 = vmatprep.mubr.f32.mxu0 %v385_v53  ;;  %5508 = vmatprep.mubr.f32.mxu1 %v393_v54 }
 0x16b   : > { %5497 = vmatmul.mubr.f32.gmra.mrb[6].mxu0 %v386_v55  ;;  %5509 = vmatmul.mubr.f32.gmra.mrb[6].mxu1 %v394_v56 }
 0x232   : > { %v5489_v58 = vpop.f32.mrb[0].mxu0  ;;  %v5501_v59 = vpop.f32.mrb[0].mxu1 }
 0x233   : > { %v490_v60 = vadd.f32 %v5489_v58, %v4902_v57  ;;  %v530_v61 = vadd.f32 %v5501_v59, %v4902_v57  ;;  %v484_v62 = vpop.f32.mrb[1].mxu0  ;;  %v524_v63 = vpop.f32.mrb[1].mxu1 }
 0x234   : > { %v485_v0 = vadd.f32 %v4902_v57, %v484_v62  ;;  %v525_v1 = vadd.f32 %v4902_v57, %v524_v63 }
 0x235   : > { %564 = vst [vmem:[#allocation2 + $0x8] sm:$0xff] %v490_v60  ;;  %572 = vst [vmem:[#allocation2 + $0x48] sm:$0xff] %v530_v61 }
 0x236   : > { %563 = vst [vmem:[#allocation2] sm:$0xff] %v485_v0  ;;  %571 = vst [vmem:[#allocation2 + $0x40] sm:$0xff] %v525_v1  ;;  %v5492_v2 = vpop.f32.mrb[2].mxu0  ;;  %v5504_v3 = vpop.f32.mrb[2].mxu1 }
 0x237   : > { %v500_v4 = vadd.f32 %v5492_v2, %v4902_v57  ;;  %v540_v5 = vadd.f32 %v5504_v3, %v4902_v57  ;;  %v494_v6 = vpop.f32.mrb[3].mxu0  ;;  %v534_v7 = vpop.f32.mrb[3].mxu1 }
 0x238   : > { %v495_v8 = vadd.f32 %v4902_v57, %v494_v6  ;;  %v535_v9 = vadd.f32 %v4902_v57, %v534_v7 }
 0x239   : > { %566 = vst [vmem:[#allocation2 + $0x18] sm:$0xff] %v500_v4  ;;  %574 = vst [vmem:[#allocation2 + $0x58] sm:$0xff] %v540_v5 }
 0x23a   : > { %565 = vst [vmem:[#allocation2 + $0x10] sm:$0xff] %v495_v8  ;;  %573 = vst [vmem:[#allocation2 + $0x50] sm:$0xff] %v535_v9  ;;  %v5495_v10 = vpop.f32.mrb[4].mxu0  ;;  %v5507_v11 = vpop.f32.mrb[4].mxu1 }
 0x23b   : > { %v510_v12 = vadd.f32 %v5495_v10, %v4902_v57  ;;  %v550_v13 = vadd.f32 %v5507_v11, %v4902_v57  ;;  %v504_v14 = vpop.f32.mrb[5].mxu0  ;;  %v544_v15 = vpop.f32.mrb[5].mxu1 }
 0x23c   : > { %v505_v16 = vadd.f32 %v4902_v57, %v504_v14  ;;  %v545_v17 = vadd.f32 %v4902_v57, %v544_v15 }
 0x23d   : > { %568 = vst [vmem:[#allocation2 + $0x28] sm:$0xff] %v510_v12  ;;  %576 = vst [vmem:[#allocation2 + $0x68] sm:$0xff] %v550_v13 }
 0x23e   : > { %567 = vst [vmem:[#allocation2 + $0x20] sm:$0xff] %v505_v16  ;;  %575 = vst [vmem:[#allocation2 + $0x60] sm:$0xff] %v545_v17  ;;  %v5498_v18 = vpop.f32.mrb[6].mxu0  ;;  %v5510_v19 = vpop.f32.mrb[6].mxu1 }
 0x23f   : > { %v520_v20 = vadd.f32 %v5498_v18, %v4902_v57  ;;  %v560_v21 = vadd.f32 %v5510_v19, %v4902_v57  ;;  %v514_v22 = vpop.f32.mrb[7].mxu0  ;;  %v554_v23 = vpop.f32.mrb[7].mxu1 }
 0x240   : > { %v515_v24 = vadd.f32 %v4902_v57, %v514_v22  ;;  %v555_v25 = vadd.f32 %v4902_v57, %v554_v23 }
 0x241   : > { %570 = vst [vmem:[#allocation2 + $0x38] sm:$0xff] %v520_v20  ;;  %578 = vst [vmem:[#allocation2 + $0x78] sm:$0xff] %v560_v21 }
 0x242   : > { %569 = vst [vmem:[#allocation2 + $0x30] sm:$0xff] %v515_v24  ;;  %577 = vst [vmem:[#allocation2 + $0x70] sm:$0xff] %v555_v25 }
 0x243 PF: > { %s8273_s5 = smov 1  }
 0x244 LB: >> { %v617_v26 = vld [vmem:[#allocation6] sm:$0xff]  ;;  %v618_v27 = vld [vmem:[#allocation6 + $0x8] sm:$0xff]  ;;  %v619_v28 = vld [vmem:[#allocation6 + $0x10] sm:$0xff]  ;;  %s9284_s8 = sld [smem:[#allocation39_spill]]  ;;  %s9285_s10 = sld [smem:[#allocation36_spill]]  ;;  %s7912_s5 = sphi %s8273_s5, %s584_s5  }
 0x245   : >> { %v6327_v29 = vpack.c.bf16 %v618_v27, %v617_v26  ;;  %v620_v30 = vld [vmem:[#allocation6 + $0x18] sm:$0xff]  ;;  %v621_v32 = vld [vmem:[#allocation6 + $0x20] sm:$0xff]  ;;  %v622_v33 = vld [vmem:[#allocation6 + $0x28] sm:$0xff]  ;;  %s9286_s4 = sld [smem:[#allocation40_spill]]  ;;  %s9287_s1 = sld [smem:[#allocation41_spill]] }
 0x246   : >> { %v6331_v31 = vpack.c.bf16 %v620_v30, %v619_v28  ;;  %v6335_v34 = vpack.c.bf16 %v622_v33, %v621_v32  ;;  %v585_v35 = vld [vmem:[#allocation26] sm:$0xff]  ;;  %v623_v36 = vld [vmem:[#allocation6 + $0x30] sm:$0xff]  ;;  %v624_v37 = vld [vmem:[#allocation6 + $0x38] sm:$0xff]  ;;  %s9288_s3 = sld [smem:[#allocation37_spill]]  ;;  %s9289_s11 = sld [smem:[#allocation42_spill]] }
 0x247   : >> { %6328 = vmatprep.subr.bf16.mxu0 %v6327_v29  ;;  %5543 = vmatprep.mubr.f32.mxu0 %v585_v35  ;;  %v6339_v38 = vpack.c.bf16 %v624_v37, %v623_v36  ;;  %v625_v39 = vld [vmem:[#allocation6 + $0x40] sm:$0xff]  ;;  %v626_v40 = vld [vmem:[#allocation6 + $0x48] sm:$0xff]  ;;  %v636_v43 = vld [vmem:[#allocation8 + $0x10] sm:$0xff]  ;;  %s9295_s25 = sld [smem:[#allocation47_spill]]  ;;  %s9296_s15 = sld [smem:[#allocation48_spill]] }
 0x248   : >> { %6330 = vmatpush3.bf16.msra.mxu0 %v6327_v29  ;;  %v634_v41 = vld [vmem:[#allocation8] sm:$0xff]  ;;  %v635_v42 = vld [vmem:[#allocation8 + $0x8] sm:$0xff]  ;;  %v637_v44 = vld [vmem:[#allocation8 + $0x18] sm:$0xff]  ;;  %v6343_v47 = vpack.c.bf16 %v626_v40, %v625_v39 }
 0x249   : >> { %6332 = vmatprep.subr.bf16.mxu0 %v6331_v31  ;;  %v6359_v45 = vpack.c.bf16 %v635_v42, %v634_v41  ;;  %v6363_v46 = vpack.c.bf16 %v637_v44, %v636_v43  ;;  %v638_v48 = vld [vmem:[#allocation8 + $0x20] sm:$0xff]  ;;  %v639_v49 = vld [vmem:[#allocation8 + $0x28] sm:$0xff]  ;;  %v627_v50 = vld [vmem:[#allocation6 + $0x50] sm:$0xff] }
 0x24a   : >> { %v628_v51 = vld [vmem:[#allocation6 + $0x58] sm:$0xff]  ;;  %v6367_v52 = vpack.c.bf16 %v639_v49, %v638_v48  ;;  %v640_v54 = vld [vmem:[#allocation8 + $0x30] sm:$0xff]  ;;  %v629_v56 = vld [vmem:[#allocation6 + $0x60] sm:$0xff] }
 0x24b   : >> { %6360 = vmatprep.subr.bf16.mxu1 %v6359_v45  ;;  %v6347_v53 = vpack.c.bf16 %v628_v51, %v627_v50  ;;  %v641_v55 = vld [vmem:[#allocation8 + $0x38] sm:$0xff]  ;;  %v630_v57 = vld [vmem:[#allocation6 + $0x68] sm:$0xff]  ;;  %v642_v60 = vld [vmem:[#allocation8 + $0x40] sm:$0xff] }
 0x24c   : >> { %6334 = vmatpush3.bf16.msra.mxu0 %v6331_v31  ;;  %6362 = vmatpush3.bf16.msra.mxu1 %v6359_v45  ;;  %v6371_v58 = vpack.c.bf16 %v641_v55, %v640_v54  ;;  %v6351_v59 = vpack.c.bf16 %v630_v57, %v629_v56  ;;  %v643_v61 = vld [vmem:[#allocation8 + $0x48] sm:$0xff]  ;;  %v631_v62 = vld [vmem:[#allocation6 + $0x70] sm:$0xff]  ;;  %v632_v63 = vld [vmem:[#allocation6 + $0x78] sm:$0xff] }
 0x24d   : >> { %6336 = vmatprep.subr.bf16.mxu0 %v6335_v34  ;;  %6364 = vmatprep.subr.bf16.mxu1 %v6363_v46  ;;  %v6375_v0 = vpack.c.bf16 %v643_v61, %v642_v60  ;;  %v6355_v1 = vpack.c.bf16 %v632_v63, %v631_v62  ;;  %v644_v2 = vld [vmem:[#allocation8 + $0x50] sm:$0xff]  ;;  %v645_v3 = vld [vmem:[#allocation8 + $0x58] sm:$0xff]  ;;  %v646_v5 = vld [vmem:[#allocation8 + $0x60] sm:$0xff] }
 0x24e   : >> { %v6379_v4 = vpack.c.bf16 %v645_v3, %v644_v2  ;;  %v647_v6 = vld [vmem:[#allocation8 + $0x68] sm:$0xff]  ;;  %v587_v9 = vld [vmem:[#allocation26 + $0x10] sm:$0xff]  ;;  %v588_v10 = vld [vmem:[#allocation26 + $0x18] sm:$0xff] }
 0x24f   : >> { %v586_v7 = vld [vmem:[#allocation26 + $0x8] sm:$0xff]  ;;  %v6383_v8 = vpack.c.bf16 %v647_v6, %v646_v5  ;;  %v589_v11 = vld [vmem:[#allocation26 + $0x20] sm:$0xff]  ;;  %v591_v13 = vld [vmem:[#allocation26 + $0x30] sm:$0xff] }
 0x250   : >> { %6338 = vmatpush3.bf16.msra.mxu0 %v6335_v34  ;;  %6366 = vmatpush3.bf16.msra.mxu1 %v6363_v46  ;;  %v590_v12 = vld [vmem:[#allocation26 + $0x28] sm:$0xff]  ;;  %v592_v14 = vld [vmem:[#allocation26 + $0x38] sm:$0xff]  ;;  %v593_v15 = vld [vmem:[#allocation26 + $0x40] sm:$0xff] }
 0x251   : >> { %6340 = vmatprep.subr.bf16.mxu0 %v6339_v38  ;;  %6368 = vmatprep.subr.bf16.mxu1 %v6367_v52  ;;  %v594_v16 = vld [vmem:[#allocation26 + $0x48] sm:$0xff]  ;;  %v595_v17 = vld [vmem:[#allocation26 + $0x50] sm:$0xff]  ;;  %v596_v18 = vld [vmem:[#allocation26 + $0x58] sm:$0xff] }
 0x252   : >> { %v597_v19 = vld [vmem:[#allocation26 + $0x60] sm:$0xff]  ;;  %v598_v20 = vld [vmem:[#allocation26 + $0x68] sm:$0xff]  ;;  %v599_v21 = vld [vmem:[#allocation26 + $0x70] sm:$0xff] }
 0x253   : >> { %v600_v22 = vld [vmem:[#allocation26 + $0x78] sm:$0xff]  ;;  %v648_v23 = vld [vmem:[#allocation8 + $0x70] sm:$0xff]  ;;  %v4903_v26 = vld [vmem:[%s9284_s8] ss:$0 sm:$0xff] }
 0x254   : >> { %6342 = vmatpush3.bf16.msra.mxu0 %v6339_v38  ;;  %6370 = vmatpush3.bf16.msra.mxu1 %v6367_v52  ;;  %v649_v24 = vld [vmem:[#allocation8 + $0x78] sm:$0xff] }
 0x255   : >> { %6344 = vmatprep.subr.bf16.mxu0 %v6343_v47  ;;  %6372 = vmatprep.subr.bf16.mxu1 %v6371_v58  ;;  %v6387_v25 = vpack.c.bf16 %v649_v24, %v648_v23  ;;  %v1122_v24 = vld [vmem:[#allocation9 + $0x40] sm:$0xff] }
 0x258   : >> { %6346 = vmatpush3.bf16.msra.mxu0 %v6343_v47  ;;  %6374 = vmatpush3.bf16.msra.mxu1 %v6371_v58 }
 0x259   : >> { %6348 = vmatprep.subr.bf16.mxu0 %v6347_v53  ;;  %6376 = vmatprep.subr.bf16.mxu1 %v6375_v0 }
 0x25c   : >> { %6350 = vmatpush3.bf16.msra.mxu0 %v6347_v53  ;;  %6378 = vmatpush3.bf16.msra.mxu1 %v6375_v0 }
 0x25d   : >> { %6352 = vmatprep.subr.bf16.mxu0 %v6351_v59  ;;  %6380 = vmatprep.subr.bf16.mxu1 %v6379_v4 }
 0x260   : >> { %6354 = vmatpush3.bf16.msra.mxu0 %v6351_v59  ;;  %6382 = vmatpush3.bf16.msra.mxu1 %v6379_v4 }
 0x261   : >> { %6356 = vmatprep.subr.bf16.mxu0 %v6355_v1  ;;  %6384 = vmatprep.subr.bf16.mxu1 %v6383_v8 }
 0x264   : >> { %6358 = vmatpush3.bf16.msra.mxu0 %v6355_v1  ;;  %6386 = vmatpush3.bf16.msra.mxu1 %v6383_v8 }
 0x265   : >> { %6388 = vmatprep.subr.bf16.mxu1 %v6387_v25 }
 0x267   : >> { %5544 = vmatmul.mubr.f32.vlgmr.msra.gmra.mrb[0].mxu0 %v586_v7 }
 0x268   : >> { %5546 = vmatprep.mubr.f32.mxu0 %v587_v9  ;;  %6390 = vmatpush3.bf16.msra.mxu1 %v6387_v25  ;;  %v1123_v25 = vld [vmem:[#allocation9 + $0x48] sm:$0xff] }
 0x26b   : >> { %5547 = vmatmul.mubr.f32.gmra.mrb[2].mxu0 %v588_v10 }
 0x26c   : >> { %5549 = vmatprep.mubr.f32.mxu0 %v589_v11  ;;  %v601_v11 = vld [vmem:[%s9285_s10] sm:$0xff] }
 0x26f   : >> { %5550 = vmatmul.mubr.f32.gmra.mrb[4].mxu0 %v590_v12  ;;  %v1114_v12 = vld [vmem:[#allocation9] sm:$0xff] }
 0x270   : >> { %5552 = vmatprep.mubr.f32.mxu0 %v591_v13  ;;  %v1115_v13 = vld [vmem:[#allocation9 + $0x8] sm:$0xff] }
 0x273   : >> { %5553 = vmatmul.mubr.f32.gmra.mrb[6].mxu0 %v592_v14  ;;  %v1116_v14 = vld [vmem:[#allocation9 + $0x10] sm:$0xff] }
 0x274   : >> { %5555 = vmatprep.mubr.f32.mxu0 %v593_v15  ;;  %v6423_v15 = vpack.c.bf16 %v1115_v13, %v1114_v12  ;;  %v602_v13 = vld [vmem:[%s9285_s10 + $0x8] sm:$0xff] }
 0x276   : >> { %6424 = vmatprep.subr.bf16.mxu1 %v6423_v15 }
 0x277   : >> { %5556 = vmatmul.mubr.f32.gmra.mrb[8].mxu0 %v594_v16  ;;  %v1117_v16 = vld [vmem:[#allocation9 + $0x18] sm:$0xff] }
 0x278   : >> { %5558 = vmatprep.mubr.f32.mxu0 %v595_v17  ;;  %v6427_v17 = vpack.c.bf16 %v1117_v16, %v1116_v14  ;;  %v603_v14 = vld [vmem:[%s9285_s10 + $0x10] sm:$0xff]  ;;  %v605_v16 = vld [vmem:[%s9285_s10 + $0x20] sm:$0xff] }
 0x27b   : >> { %5559 = vmatmul.mubr.f32.gmra.mrb[10].mxu0 %v596_v18  ;;  %v1118_v18 = vld [vmem:[#allocation9 + $0x20] sm:$0xff] }
 0x27c   : >> { %5561 = vmatprep.mubr.f32.mxu0 %v597_v19  ;;  %v1119_v19 = vld [vmem:[#allocation9 + $0x28] sm:$0xff] }
 0x27f   : >> { %5562 = vmatmul.mubr.f32.gmra.mrb[12].mxu0 %v598_v20  ;;  %v6431_v20 = vpack.c.bf16 %v1119_v19, %v1118_v18  ;;  %v607_v18 = vld [vmem:[%s9285_s10 + $0x30] sm:$0xff]  ;;  %v608_v19 = vld [vmem:[%s9285_s10 + $0x38] sm:$0xff] }
 0x280   : >> { %5564 = vmatprep.mubr.f32.mxu0 %v599_v21  ;;  %v1120_v21 = vld [vmem:[#allocation9 + $0x30] sm:$0xff] }
 0x283   : >> { %5565 = vmatmul.mubr.f32.gmra.mrb[14].mxu0 %v600_v22  ;;  %v1121_v22 = vld [vmem:[#allocation9 + $0x38] sm:$0xff] }
 0x284   : >> { %5655 = vmatprep.mubr.f32.mxu0 %v601_v11  ;;  %v6435_v23 = vpack.c.bf16 %v1121_v22, %v1120_v21  ;;  %v610_v21 = vld [vmem:[%s9285_s10 + $0x48] sm:$0xff]  ;;  %v611_v22 = vld [vmem:[%s9285_s10 + $0x50] sm:$0xff] }
 0x33a   : >> { %v5545_v27 = vpop.f32.mrb[0].mxu0 }
 0x33b   : >> { %v729_v28 = vadd.f32 %v5545_v27, %v4903_v26  ;;  %v723_v29 = vpop.f32.mrb[1].mxu0  ;;  %v1124_v27 = vld [vmem:[#allocation9 + $0x50] sm:$0xff] }
 0x33c   : >> { %v724_v30 = vadd.f32 %v4903_v26, %v723_v29 }
 0x33d   : >> { %v803_v33 = vmax.f32 %v729_v28, 0.0  ;;  %v1125_v28 = vld [vmem:[#allocation9 + $0x58] sm:$0xff] }
 0x33e   : >> { %v5548_v31 = vpop.f32.mrb[2].mxu0  ;;  %v802_v32 = vmax.f32 %v724_v30, 0.0  ;;  %v6443_v29 = vpack.c.bf16 %v1125_v28, %v1124_v27  ;;  %v1126_v30 = vld [vmem:[#allocation9 + $0x60] sm:$0xff]  ;;  %v616_v27 = vld [vmem:[%s9285_s10 + $0x78] sm:$0xff] }
 0x33f   : >> { %v739_v34 = vadd.f32 %v5548_v31, %v4903_v26  ;;  %v733_v35 = vpop.f32.mrb[3].mxu0  ;;  %v1127_v31 = vld [vmem:[#allocation9 + $0x68] sm:$0xff]  ;;  %v1131_v28 = vld [vmem:[#allocation11] sm:$0xff] }
 0x340   : >> { %v734_v36 = vadd.f32 %v4903_v26, %v733_v35  ;;  %5599 = vmatprep.mubr.f32.mxu1 %v802_v32  ;;  %v6447_v32 = vpack.c.bf16 %v1127_v31, %v1126_v30  ;;  %v1133_v30 = vld [vmem:[#allocation11 + $0x10] sm:$0xff] }
 0x341   : >> { %5600 = vmatmul.mubr.f32.vlgmr.msra.gmra.mrb[0].mxu1 %v803_v33  ;;  %v805_v39 = vmax.f32 %v739_v34, 0.0  ;;  %v1128_v33 = vld [vmem:[#allocation9 + $0x70] sm:$0xff]  ;;  %v1129_v34 = vld [vmem:[#allocation9 + $0x78] sm:$0xff] }
 0x342   : >> { %v804_v37 = vmax.f32 %v734_v36, 0.0  ;;  %v5551_v38 = vpop.f32.mrb[4].mxu0  ;;  %6426 = vmatpush3.bf16.msra.mxu1 %v6423_v15  ;;  %v6451_v35 = vpack.c.bf16 %v1129_v34, %v1128_v33  ;;  %v4904_v36 = vld [vmem:[%s9286_s4] ss:$0 sm:$0xff]  ;;  %v604_v15 = vld [vmem:[%s9285_s10 + $0x18] sm:$0xff] }
 0x343   : >> { %v749_v40 = vadd.f32 %v5551_v38, %v4903_v26  ;;  %v743_v41 = vpop.f32.mrb[5].mxu0  ;;  %6428 = vmatprep.subr.bf16.mxu1 %v6427_v17  ;;  %v1135_v34 = vld [vmem:[#allocation11 + $0x20] sm:$0xff] }
 0x344   : >> { %v744_v42 = vadd.f32 %v4903_v26, %v743_v41  ;;  %5602 = vmatprep.mubr.f32.mxu1 %v804_v37 }
 0x345   : >> { %5603 = vmatmul.mubr.f32.gmra.mrb[2].mxu1 %v805_v39  ;;  %v807_v45 = vmax.f32 %v749_v40, 0.0 }
 0x346   : >> { %v806_v43 = vmax.f32 %v744_v42, 0.0  ;;  %v5554_v44 = vpop.f32.mrb[6].mxu0  ;;  %6430 = vmatpush3.bf16.msra.mxu1 %v6427_v17  ;;  %v606_v17 = vld [vmem:[%s9285_s10 + $0x28] sm:$0xff] }
 0x347   : >> { %v759_v46 = vadd.f32 %v5554_v44, %v4903_v26  ;;  %v753_v47 = vpop.f32.mrb[7].mxu0  ;;  %6432 = vmatprep.subr.bf16.mxu1 %v6431_v20 }
 0x348   : >> { %v754_v48 = vadd.f32 %v4903_v26, %v753_v47  ;;  %5605 = vmatprep.mubr.f32.mxu1 %v806_v43 }
 0x349   : >> { %5606 = vmatmul.mubr.f32.gmra.mrb[4].mxu1 %v807_v45  ;;  %v809_v51 = vmax.f32 %v759_v46, 0.0 }
 0x34a   : >> { %v808_v49 = vmax.f32 %v754_v48, 0.0  ;;  %v5557_v50 = vpop.f32.mrb[8].mxu0  ;;  %6434 = vmatpush3.bf16.msra.mxu1 %v6431_v20  ;;  %v609_v20 = vld [vmem:[%s9285_s10 + $0x40] sm:$0xff] }
 0x34b   : >> { %v769_v52 = vadd.f32 %v5557_v50, %v4903_v26  ;;  %v763_v53 = vpop.f32.mrb[9].mxu0  ;;  %6436 = vmatprep.subr.bf16.mxu1 %v6435_v23 }
 0x34c   : >> { %v764_v54 = vadd.f32 %v4903_v26, %v763_v53  ;;  %5608 = vmatprep.mubr.f32.mxu1 %v808_v49 }
 0x34d   : >> { %5609 = vmatmul.mubr.f32.gmra.mrb[6].mxu1 %v809_v51  ;;  %v811_v57 = vmax.f32 %v769_v52, 0.0 }
 0x34e   : >> { %v810_v55 = vmax.f32 %v764_v54, 0.0  ;;  %v5560_v56 = vpop.f32.mrb[10].mxu0  ;;  %6438 = vmatpush3.bf16.msra.mxu1 %v6435_v23  ;;  %v612_v23 = vld [vmem:[%s9285_s10 + $0x58] sm:$0xff] }
 0x34f   : >> { %v779_v58 = vadd.f32 %v5560_v56, %v4903_v26  ;;  %v773_v59 = vpop.f32.mrb[11].mxu0 }
 0x350   : >> { %v774_v60 = vadd.f32 %v4903_v26, %v773_v59  ;;  %5611 = vmatprep.mubr.f32.mxu1 %v810_v55 }
 0x351   : >> { %5612 = vmatmul.mubr.f32.gmra.mrb[8].mxu1 %v811_v57  ;;  %v813_v63 = vmax.f32 %v779_v58, 0.0 }
 0x352   : >> { %v812_v61 = vmax.f32 %v774_v60, 0.0  ;;  %v5563_v62 = vpop.f32.mrb[12].mxu0 }
 0x353   : >> { %v789_v0 = vadd.f32 %v5563_v62, %v4903_v26  ;;  %v783_v1 = vpop.f32.mrb[13].mxu0 }
 0x354   : >> { %v784_v2 = vadd.f32 %v4903_v26, %v783_v1  ;;  %5614 = vmatprep.mubr.f32.mxu1 %v812_v61 }
 0x355   : >> { %5615 = vmatmul.mubr.f32.gmra.mrb[10].mxu1 %v813_v63  ;;  %v815_v5 = vmax.f32 %v789_v0, 0.0 }
 0x356   : >> { %v814_v3 = vmax.f32 %v784_v2, 0.0  ;;  %v5566_v4 = vpop.f32.mrb[14].mxu0 }
 0x357   : >> { %v799_v6 = vadd.f32 %v5566_v4, %v4903_v26  ;;  %v793_v7 = vpop.f32.mrb[15].mxu0 }
 0x358   : >> { %v794_v8 = vadd.f32 %v4903_v26, %v793_v7  ;;  %5617 = vmatprep.mubr.f32.mxu1 %v814_v3  ;;  %v6439_v26 = vpack.c.bf16 %v1123_v25, %v1122_v24  ;;  %v613_v24 = vld [vmem:[%s9285_s10 + $0x60] sm:$0xff]  ;;  %v614_v25 = vld [vmem:[%s9285_s10 + $0x68] sm:$0xff] }
 0x359   : >> { %5618 = vmatmul.mubr.f32.gmra.mrb[12].mxu1 %v815_v5  ;;  %v817_v10 = vmax.f32 %v799_v6, 0.0 }
 0x35a   : >> { %v816_v9 = vmax.f32 %v794_v8, 0.0  ;;  %6440 = vmatprep.subr.bf16.mxu1 %v6439_v26 }
 0x35b   : >> { %6442 = vmatpush3.bf16.msra.mxu1 %v6439_v26  ;;  %v615_v26 = vld [vmem:[%s9285_s10 + $0x70] sm:$0xff] }
 0x35c   : >> { %5620 = vmatprep.mubr.f32.mxu1 %v816_v9  ;;  %6444 = vmatprep.subr.bf16.mxu1 %v6443_v29 }
 0x35d   : >> { %5621 = vmatmul.mubr.f32.gmra.mrb[14].mxu1 %v817_v10 }
 0x35f   : >> { %6446 = vmatpush3.bf16.msra.mxu1 %v6443_v29  ;;  %v1132_v29 = vld [vmem:[#allocation11 + $0x8] sm:$0xff] }
 0x360   : >> { %6448 = vmatprep.subr.bf16.mxu1 %v6447_v32  ;;  %v6455_v31 = vpack.c.bf16 %v1132_v29, %v1131_v28  ;;  %v1507_v28 = vld [vmem:[#allocation18 + $0xc8] sm:$0xff]  ;;  %v1510_v29 = vld [vmem:[#allocation18 + $0xe0] sm:$0xff] }
 0x363   : >> { %6450 = vmatpush3.bf16.msra.mxu1 %v6447_v32  ;;  %v1134_v32 = vld [vmem:[#allocation11 + $0x18] sm:$0xff] }
 0x364   : >> { %6452 = vmatprep.subr.bf16.mxu1 %v6451_v35  ;;  %v6459_v33 = vpack.c.bf16 %v1134_v32, %v1133_v30  ;;  %v1484_v30 = vld [vmem:[#allocation18 + $0x10] sm:$0xff]  ;;  %v1487_v32 = vld [vmem:[#allocation18 + $0x28] sm:$0xff] }
 0x367   : >> { %6454 = vmatpush3.bf16.msra.mxu1 %v6451_v35  ;;  %v1136_v35 = vld [vmem:[#allocation11 + $0x28] sm:$0xff] }
 0x414   : >> { %v5601_v37 = vpop.f32.mrb[0].mxu1 }
 0x415   : >> { %v896_v38 = vadd.f32 %v5601_v37, %v4904_v36  ;;  %v890_v39 = vpop.f32.mrb[1].mxu1  ;;  %v1137_v37 = vld [vmem:[#allocation11 + $0x30] sm:$0xff] }
 0x416   : >> { %v891_v40 = vadd.f32 %v4904_v36, %v890_v39 }
 0x418   : >> { %v6391_v41 = vpack.c.bf16 %v896_v38, %v891_v40  ;;  %v5604_v42 = vpop.f32.mrb[2].mxu1  ;;  %v1138_v38 = vld [vmem:[#allocation11 + $0x38] sm:$0xff]  ;;  %v1139_v40 = vld [vmem:[#allocation11 + $0x40] sm:$0xff] }
 0x419   : >> { %v906_v43 = vadd.f32 %v5604_v42, %v4904_v36  ;;  %v900_v44 = vpop.f32.mrb[3].mxu1  ;;  %v6467_v39 = vpack.c.bf16 %v1138_v38, %v1137_v37  ;;  %v1513_v37 = vld [vmem:[#allocation18 + $0xf8] sm:$0xff]  ;;  %v1516_v38 = vld [vmem:[#allocation18 + $0x110] sm:$0xff] }
 0x41a   : >> { %v901_v45 = vadd.f32 %v4904_v36, %v900_v44  ;;  %6392 = vmatprep.subr.bf16.mxu0 %v6391_v41  ;;  %v1142_v44 = vld [vmem:[#allocation11 + $0x58] sm:$0xff] }
 0x41b   : >> { %6394 = vmatpush3.bf16.msra.mxu0 %v6391_v41  ;;  %v1140_v41 = vld [vmem:[#allocation11 + $0x48] sm:$0xff] }
 0x41c   : >> { %v6395_v46 = vpack.c.bf16 %v906_v43, %v901_v45  ;;  %v5607_v47 = vpop.f32.mrb[4].mxu1  ;;  %v6471_v42 = vpack.c.bf16 %v1140_v41, %v1139_v40  ;;  %v1141_v43 = vld [vmem:[#allocation11 + $0x50] sm:$0xff]  ;;  %v6507_v40 = vpack.c.bf16 %v1516_v38, %v1513_v37 }
 0x41d   : >> { %v916_v48 = vadd.f32 %v5607_v47, %v4904_v36  ;;  %v910_v49 = vpop.f32.mrb[5].mxu1  ;;  %v6475_v45 = vpack.c.bf16 %v1142_v44, %v1141_v43  ;;  %v1144_v47 = vld [vmem:[#allocation11 + $0x68] sm:$0xff]  ;;  %v1512_v41 = vld [vmem:[#allocation18 + $0xf0] sm:$0xff]  ;;  %v1522_v44 = vld [vmem:[#allocation18 + $0x140] sm:$0xff] }
 0x41e   : >> { %v911_v50 = vadd.f32 %v4904_v36, %v910_v49  ;;  %6396 = vmatprep.subr.bf16.mxu0 %v6395_v46  ;;  %v1519_v43 = vld [vmem:[#allocation18 + $0x128] sm:$0xff] }
 0x41f   : >> { %6398 = vmatpush3.bf16.msra.mxu0 %v6395_v46  ;;  %v1143_v46 = vld [vmem:[#allocation11 + $0x60] sm:$0xff] }
 0x420   : >> { %v6399_v51 = vpack.c.bf16 %v916_v48, %v911_v50  ;;  %v5610_v52 = vpop.f32.mrb[6].mxu1  ;;  %v6479_v48 = vpack.c.bf16 %v1144_v47, %v1143_v46  ;;  %v6511_v46 = vpack.c.bf16 %v1522_v44, %v1519_v43  ;;  %v1518_v47 = vld [vmem:[#allocation18 + $0x120] sm:$0xff]  ;;  %v8324_v43 = vld [vmem:[#allocation2 + $0x30] sm:$0xff] }
 0x421   : >> { %v926_v53 = vadd.f32 %v5610_v52, %v4904_v36  ;;  %v920_v54 = vpop.f32.mrb[7].mxu1 }
 0x422   : >> { %v921_v55 = vadd.f32 %v4904_v36, %v920_v54  ;;  %6400 = vmatprep.subr.bf16.mxu0 %v6399_v51 }
 0x423   : >> { %6402 = vmatpush3.bf16.msra.mxu0 %v6399_v51 }
 0x424   : >> { %v6403_v56 = vpack.c.bf16 %v926_v53, %v921_v55  ;;  %v5613_v57 = vpop.f32.mrb[8].mxu1 }
 0x425   : >> { %v936_v58 = vadd.f32 %v5613_v57, %v4904_v36  ;;  %v930_v59 = vpop.f32.mrb[9].mxu1 }
 0x426   : >> { %v931_v60 = vadd.f32 %v4904_v36, %v930_v59  ;;  %6404 = vmatprep.subr.bf16.mxu0 %v6403_v56 }
 0x427   : >> { %6406 = vmatpush3.bf16.msra.mxu0 %v6403_v56 }
 0x428   : >> { %v6407_v61 = vpack.c.bf16 %v936_v58, %v931_v60  ;;  %v5616_v62 = vpop.f32.mrb[10].mxu1 }
 0x429   : >> { %v946_v63 = vadd.f32 %v5616_v62, %v4904_v36  ;;  %v940_v0 = vpop.f32.mrb[11].mxu1 }
 0x42a   : >> { %v941_v1 = vadd.f32 %v4904_v36, %v940_v0  ;;  %6408 = vmatprep.subr.bf16.mxu0 %v6407_v61 }
 0x42b   : >> { %6410 = vmatpush3.bf16.msra.mxu0 %v6407_v61 }
 0x42c   : >> { %v6411_v2 = vpack.c.bf16 %v946_v63, %v941_v1  ;;  %v5619_v3 = vpop.f32.mrb[12].mxu1  ;;  %v1145_v1 = vld [vmem:[#allocation11 + $0x70] sm:$0xff] }
 0x42d   : >> { %v956_v4 = vadd.f32 %v5619_v3, %v4904_v36  ;;  %v950_v5 = vpop.f32.mrb[13].mxu1 }
 0x42e   : >> { %v951_v6 = vadd.f32 %v4904_v36, %v950_v5  ;;  %6412 = vmatprep.subr.bf16.mxu0 %v6411_v2  ;;  %v1486_v5 = vld [vmem:[#allocation18 + $0x20] sm:$0xff] }
 0x42f   : >> { %6414 = vmatpush3.bf16.msra.mxu0 %v6411_v2  ;;  %v1146_v2 = vld [vmem:[#allocation11 + $0x78] sm:$0xff] }
 0x430   : >> { %v6415_v7 = vpack.c.bf16 %v956_v4, %v951_v6  ;;  %v5622_v8 = vpop.f32.mrb[14].mxu1  ;;  %v6483_v3 = vpack.c.bf16 %v1146_v2, %v1145_v1  ;;  %v1483_v4 = vld [vmem:[#allocation18 + $0x8] sm:$0xff]  ;;  %v1482_v6 = vld [vmem:[#allocation18] sm:$0xff]  ;;  %v1859_v2 = vld [vmem:[#allocation20 + $0x30] sm:$0xff] }
 0x431   : >> { %v966_v9 = vadd.f32 %v5622_v8, %v4904_v36  ;;  %v960_v10 = vpop.f32.mrb[15].mxu1  ;;  %v1485_v8 = vld [vmem:[#allocation18 + $0x18] sm:$0xff] }
 0x432   : >> { %v961_v11 = vadd.f32 %v4904_v36, %v960_v10  ;;  %6416 = vmatprep.subr.bf16.mxu0 %v6415_v7  ;;  %v6463_v36 = vpack.c.bf16 %v1136_v35, %v1135_v34  ;;  %v1492_v10 = vld [vmem:[#allocation18 + $0x50] sm:$0xff]  ;;  %v1506_v34 = vld [vmem:[#allocation18 + $0xc0] sm:$0xff]  ;;  %v1509_v35 = vld [vmem:[#allocation18 + $0xd8] sm:$0xff] }
 0x433   : >> { %6418 = vmatpush3.bf16.msra.mxu0 %v6415_v7  ;;  %v6487_v7 = vpack.c.bf16 %v1486_v5, %v1483_v4  ;;  %v1866_v4 = vld [vmem:[#allocation20 + $0x68] sm:$0xff]  ;;  %v1869_v5 = vld [vmem:[#allocation20 + $0x80] sm:$0xff] }
 0x434   : >> { %v6419_v12 = vpack.c.bf16 %v966_v9, %v961_v11  ;;  %v1489_v9 = vld [vmem:[#allocation18 + $0x38] sm:$0xff]  ;;  %v7968_v11 = vmov 0.0  }
 0x435   : >> { %6488 = vmatprep.subr.bf16.mxu1 %v6487_v7 }
 0x436   : >> { %6420 = vmatprep.subr.bf16.mxu0 %v6419_v12 }
 0x437   : >> { %6422 = vmatpush3.bf16.msra.mxu0 %v6419_v12  ;;  %v6489_v12 = vpack.c.bf16 %v1485_v8, %v1482_v6  ;;  %v8304_v6 = vld [vmem:[#allocation2 + $0x8] sm:$0xff]  ;;  %v6559_v8 = vpack.c.bf16 %v1869_v5, %v1866_v4 }
 0x438   : >> { %6456 = vmatprep.subr.bf16.mxu0 %v6455_v31 }
 0x43a   : >> { %5656 = vmatmul.mubr.f32.vlgmr.msra.gmra.mrb[16].mxu0 %v602_v13  ;;  %v6491_v13 = vpack.c.bf16 %v1492_v10, %v1489_v9  ;;  %v1865_v9 = vld [vmem:[#allocation20 + $0x60] sm:$0xff]  ;;  %v1868_v10 = vld [vmem:[#allocation20 + $0x78] sm:$0xff] }
 0x43b   : >> { %5658 = vmatprep.mubr.f32.mxu0 %v603_v14  ;;  %6458 = vmatpush3.bf16.msra.mxu0 %v6455_v31  ;;  %v1488_v14 = vld [vmem:[#allocation18 + $0x30] sm:$0xff] }
 0x43c   : >> { %6460 = vmatprep.subr.bf16.mxu0 %v6459_v33 }
 0x43e   : >> { %5659 = vmatmul.mubr.f32.gmra.mrb[18].mxu0 %v604_v15  ;;  %v1491_v15 = vld [vmem:[#allocation18 + $0x48] sm:$0xff] }
 0x43f   : >> { %5661 = vmatprep.mubr.f32.mxu0 %v605_v16  ;;  %6462 = vmatpush3.bf16.msra.mxu0 %v6459_v33  ;;  %v1495_v16 = vld [vmem:[#allocation18 + $0x68] sm:$0xff]  ;;  %v6503_v33 = vpack.c.bf16 %v1510_v29, %v1507_v28  ;;  %v8316_v28 = vld [vmem:[#allocation2 + $0x20] sm:$0xff] }
 0x440   : >> { %6464 = vmatprep.subr.bf16.mxu0 %v6463_v36 }
 0x442   : >> { %5662 = vmatmul.mubr.f32.gmra.mrb[20].mxu0 %v606_v17  ;;  %v1498_v17 = vld [vmem:[#allocation18 + $0x80] sm:$0xff] }
 0x443   : >> { %5664 = vmatprep.mubr.f32.mxu0 %v607_v18  ;;  %6466 = vmatpush3.bf16.msra.mxu0 %v6463_v36  ;;  %v6493_v18 = vpack.c.bf16 %v1491_v15, %v1488_v14  ;;  %v8297_v36 = vpack.c.bf16 %v1487_v32, %v1484_v30  ;;  %v8308_v14 = vld [vmem:[#allocation2 + $0x10] sm:$0xff]  ;;  %v6561_v15 = vpack.c.bf16 %v1868_v10, %v1865_v9  ;;  %v1886_v32 = vld [vmem:[#allocation20 + $0x108] sm:$0xff] }
 0x444   : >> { %6468 = vmatprep.subr.bf16.mxu0 %v6467_v39  ;;  %v1496_v9 = vld [vmem:[#allocation18 + $0x70] sm:$0xff]  ;;  %v1499_v10 = vld [vmem:[#allocation18 + $0x88] sm:$0xff] }
 0x446   : >> { %5665 = vmatmul.mubr.f32.gmra.mrb[22].mxu0 %v608_v19  ;;  %v6495_v19 = vpack.c.bf16 %v1498_v17, %v1495_v16  ;;  %v1871_v17 = vld [vmem:[#allocation20 + $0x90] sm:$0xff] }
 0x447   : >> { %5667 = vmatprep.mubr.f32.mxu0 %v609_v20  ;;  %6470 = vmatpush3.bf16.msra.mxu0 %v6467_v39  ;;  %v1494_v20 = vld [vmem:[#allocation18 + $0x60] sm:$0xff]  ;;  %v6505_v39 = vpack.c.bf16 %v1509_v35, %v1506_v34  ;;  %v8320_v35 = vld [vmem:[#allocation2 + $0x28] sm:$0xff] }
 0x448   : >> { %6472 = vmatprep.subr.bf16.mxu0 %v6471_v42  ;;  %v1893_v34 = vld [vmem:[#allocation20 + $0x140] sm:$0xff] }
 0x44a   : >> { %5668 = vmatmul.mubr.f32.gmra.mrb[24].mxu0 %v610_v21  ;;  %v1497_v21 = vld [vmem:[#allocation18 + $0x78] sm:$0xff] }
 0x44b   : >> { %5670 = vmatprep.mubr.f32.mxu0 %v611_v22  ;;  %6474 = vmatpush3.bf16.msra.mxu0 %v6471_v42  ;;  %v1501_v22 = vld [vmem:[#allocation18 + $0x98] sm:$0xff]  ;;  %v1515_v42 = vld [vmem:[#allocation18 + $0x108] sm:$0xff] }
 0x44c   : >> { %6476 = vmatprep.subr.bf16.mxu0 %v6475_v45 }
 0x44e   : >> { %5671 = vmatmul.mubr.f32.gmra.mrb[26].mxu0 %v612_v23  ;;  %v1504_v23 = vld [vmem:[#allocation18 + $0xb0] sm:$0xff] }
 0x44f   : >> { %5673 = vmatprep.mubr.f32.mxu0 %v613_v24  ;;  %6478 = vmatpush3.bf16.msra.mxu0 %v6475_v45  ;;  %v6497_v24 = vpack.c.bf16 %v1497_v21, %v1494_v20  ;;  %v6509_v45 = vpack.c.bf16 %v1515_v42, %v1512_v41  ;;  %v1881_v20 = vld [vmem:[#allocation20 + $0xe0] sm:$0xff]  ;;  %v8312_v21 = vld [vmem:[#allocation2 + $0x18] sm:$0xff]  ;;  %v1899_v42 = vld [vmem:[#allocation20 + $0x170] sm:$0xff] }
 0x450   : >> { %6480 = vmatprep.subr.bf16.mxu0 %v6479_v48  ;;  %v1896_v41 = vld [vmem:[#allocation20 + $0x158] sm:$0xff] }
 0x452   : >> { %5674 = vmatmul.mubr.f32.gmra.mrb[28].mxu0 %v614_v25  ;;  %v6499_v25 = vpack.c.bf16 %v1504_v23, %v1501_v22 }
 0x453   : >> { %5676 = vmatprep.mubr.f32.mxu0 %v615_v26  ;;  %6482 = vmatpush3.bf16.msra.mxu0 %v6479_v48  ;;  %v1500_v26 = vld [vmem:[#allocation18 + $0x90] sm:$0xff]  ;;  %v1521_v48 = vld [vmem:[#allocation18 + $0x138] sm:$0xff] }
 0x454   : >> { %6484 = vmatprep.subr.bf16.mxu0 %v6483_v3 }
 0x456   : >> { %5677 = vmatmul.mubr.f32.gmra.mrb[30].mxu0 %v616_v27  ;;  %v1503_v27 = vld [vmem:[#allocation18 + $0xa8] sm:$0xff] }
 0x457   : >> { %6486 = vmatpush3.bf16.msra.mxu0 %v6483_v3  ;;  %v6501_v31 = vpack.c.bf16 %v1503_v27, %v1500_v26  ;;  %v1862_v3 = vld [vmem:[#allocation20 + $0x48] sm:$0xff]  ;;  %v1884_v26 = vld [vmem:[#allocation20 + $0xf8] sm:$0xff]  ;;  %v1887_v27 = vld [vmem:[#allocation20 + $0x110] sm:$0xff] }
 0x458   : >> { %6520 = vmatprep.subr.bf16.mxu0 %v8297_v36  ;;  %v6557_v7 = vpack.c.bf16 %v1862_v3, %v1859_v2  ;;  %v6571_v30 = vpack.c.bf16 %v1887_v27, %v1884_v26 }
 0x50d   : >> { %v5657_v49 = vpop.f32.mrb[16].mxu0 }
 0x50e   : >> { %v1035_v50 = vpop.f32.mrb[17].mxu0 }
 0x50f   : >> { %5711 = vmatprep.mubr.f32.mxu1 %v1035_v50  ;;  %v1528_v50 = vld [vmem:[#allocation18 + $0x170] sm:$0xff] }
 0x510   : >> { %5712 = vmatmul.mubr.f32.vlgmr.msra.gmra.mrb[16].mxu1 %v5657_v49  ;;  %v1525_v49 = vld [vmem:[#allocation18 + $0x158] sm:$0xff] }
 0x511   : >> { %v5660_v51 = vpop.f32.mrb[18].mxu0  ;;  %6490 = vmatpush1.bf16.msra.mxu1 %v6489_v12  ;;  %v1872_v12 = vld [vmem:[#allocation20 + $0x98] sm:$0xff] }
 0x512   : >> { %v1045_v52 = vpop.f32.mrb[19].mxu0  ;;  %6492 = vmatprep.subr.bf16.mxu1 %v6491_v13  ;;  %v1875_v13 = vld [vmem:[#allocation20 + $0xb0] sm:$0xff] }
 0x513   : >> { %5714 = vmatprep.mubr.f32.mxu1 %v1045_v52  ;;  %v6515_v52 = vpack.c.bf16 %v1528_v50, %v1525_v49  ;;  %v6563_v16 = vpack.c.bf16 %v1875_v13, %v1872_v12  ;;  %v8332_v50 = vld [vmem:[#allocation2 + $0x40] sm:$0xff] }
 0x514   : >> { %5715 = vmatmul.mubr.f32.gmra.mrb[18].mxu1 %v5660_v51  ;;  %v6513_v51 = vpack.c.bf16 %v1521_v48, %v1518_v47  ;;  %v1898_v47 = vld [vmem:[#allocation20 + $0x168] sm:$0xff]  ;;  %v8328_v48 = vld [vmem:[#allocation2 + $0x38] sm:$0xff] }
 0x515   : >> { %v5663_v53 = vpop.f32.mrb[20].mxu0  ;;  %6494 = vmatpush1.bf16.msra.mxu1 %v6493_v18  ;;  %v1874_v18 = vld [vmem:[#allocation20 + $0xa8] sm:$0xff] }
 0x516   : >> { %v1055_v54 = vpop.f32.mrb[21].mxu0  ;;  %6496 = vmatprep.subr.bf16.mxu1 %v6495_v19  ;;  %v1878_v19 = vld [vmem:[#allocation20 + $0xc8] sm:$0xff]  ;;  %v6565_v22 = vpack.c.bf16 %v1874_v18, %v1871_v17  ;;  %v6527_v18 = vpack.c.bf16 %v1499_v10, %v1496_v9 }
 0x517   : >> { %5717 = vmatprep.mubr.f32.mxu1 %v1055_v54  ;;  %v1527_v54 = vld [vmem:[#allocation18 + $0x168] sm:$0xff]  ;;  %v6567_v23 = vpack.c.bf16 %v1881_v20, %v1878_v19  ;;  %v1502_v20 = vld [vmem:[#allocation18 + $0xa0] sm:$0xff] }
 0x518   : >> { %5718 = vmatmul.mubr.f32.gmra.mrb[20].mxu1 %v5663_v53  ;;  %v1524_v53 = vld [vmem:[#allocation18 + $0x150] sm:$0xff] }
 0x519   : >> { %v5666_v55 = vpop.f32.mrb[22].mxu0  ;;  %6498 = vmatpush1.bf16.msra.mxu1 %v6497_v24  ;;  %v1877_v24 = vld [vmem:[#allocation20 + $0xc0] sm:$0xff] }
 0x51a   : >> { %v1065_v56 = vpop.f32.mrb[23].mxu0  ;;  %6500 = vmatprep.subr.bf16.mxu1 %v6499_v25  ;;  %v1880_v25 = vld [vmem:[#allocation20 + $0xd8] sm:$0xff] }
 0x51b   : >> { %5720 = vmatprep.mubr.f32.mxu1 %v1065_v56  ;;  %v1857_v56 = vld [vmem:[#allocation20 + $0x20] sm:$0xff]  ;;  %v6569_v29 = vpack.c.bf16 %v1880_v25, %v1877_v24 }
 0x51c   : >> { %5721 = vmatmul.mubr.f32.gmra.mrb[22].mxu1 %v5666_v55  ;;  %v1854_v55 = vld [vmem:[#allocation20 + $0x8] sm:$0xff] }
 0x51d   : >> { %v5669_v57 = vpop.f32.mrb[24].mxu0  ;;  %6502 = vmatpush1.bf16.msra.mxu1 %v6501_v31  ;;  %v1883_v31 = vld [vmem:[#allocation20 + $0xf0] sm:$0xff] }
 0x51e   : >> { %v1075_v58 = vpop.f32.mrb[25].mxu0  ;;  %6504 = vmatprep.subr.bf16.mxu1 %v6503_v33  ;;  %v1890_v33 = vld [vmem:[#allocation20 + $0x128] sm:$0xff]  ;;  %v6573_v37 = vpack.c.bf16 %v1886_v32, %v1883_v31 }
 0x51f   : >> { %5723 = vmatprep.mubr.f32.mxu1 %v1075_v58  ;;  %v6551_v58 = vpack.c.bf16 %v1857_v56, %v1854_v55  ;;  %v6575_v38 = vpack.c.bf16 %v1893_v34, %v1890_v33  ;;  %v8352_v55 = vld [vmem:[#allocation2 + $0x68] sm:$0xff]  ;;  %v8356_v56 = vld [vmem:[#allocation2 + $0x70] sm:$0xff] }
 0x520   : >> { %5724 = vmatmul.mubr.f32.gmra.mrb[24].mxu1 %v5669_v57  ;;  %v6517_v57 = vpack.c.bf16 %v1527_v54, %v1524_v53  ;;  %v8344_v53 = vld [vmem:[#allocation2 + $0x58] sm:$0xff]  ;;  %v8348_v54 = vld [vmem:[#allocation2 + $0x60] sm:$0xff]  ;;  %v1511_v31 = vld [vmem:[#allocation18 + $0xe8] sm:$0xff] }
 0x521   : >> { %v5672_v59 = vpop.f32.mrb[26].mxu0  ;;  %6506 = vmatpush1.bf16.msra.mxu1 %v6505_v39  ;;  %v1889_v39 = vld [vmem:[#allocation20 + $0x120] sm:$0xff] }
 0x522   : >> { %v1085_v60 = vpop.f32.mrb[27].mxu0  ;;  %6508 = vmatprep.subr.bf16.mxu1 %v6507_v40  ;;  %v1892_v40 = vld [vmem:[#allocation20 + $0x138] sm:$0xff] }
 0x523   : >> { %5726 = vmatprep.mubr.f32.mxu1 %v1085_v60  ;;  %v1856_v60 = vld [vmem:[#allocation20 + $0x18] sm:$0xff]  ;;  %v6577_v44 = vpack.c.bf16 %v1892_v40, %v1889_v39 }
 0x524   : >> { %5727 = vmatmul.mubr.f32.gmra.mrb[26].mxu1 %v5672_v59  ;;  %v1853_v59 = vld [vmem:[#allocation20] sm:$0xff] }
 0x525   : >> { %v5675_v61 = vpop.f32.mrb[28].mxu0  ;;  %6510 = vmatpush1.bf16.msra.mxu1 %v6509_v45  ;;  %v6579_v45 = vpack.c.bf16 %v1899_v42, %v1896_v41  ;;  %v1514_v41 = vld [vmem:[#allocation18 + $0x100] sm:$0xff]  ;;  %v1517_v42 = vld [vmem:[#allocation18 + $0x118] sm:$0xff] }
 0x526   : >> { %v1095_v62 = vpop.f32.mrb[29].mxu0  ;;  %6512 = vmatprep.subr.bf16.mxu1 %v6511_v46  ;;  %v1895_v46 = vld [vmem:[#allocation20 + $0x150] sm:$0xff] }
 0x527   : >> { %5729 = vmatprep.mubr.f32.mxu1 %v1095_v62  ;;  %v1863_v62 = vld [vmem:[#allocation20 + $0x50] sm:$0xff]  ;;  %v6581_v49 = vpack.c.bf16 %v1898_v47, %v1895_v46 }
 0x528   : >> { %5730 = vmatmul.mubr.f32.gmra.mrb[28].mxu1 %v5675_v61  ;;  %v1860_v61 = vld [vmem:[#allocation20 + $0x38] sm:$0xff] }
 0x529   : >> { %v5678_v63 = vpop.f32.mrb[30].mxu0  ;;  %6514 = vmatpush1.bf16.msra.mxu1 %v6513_v51  ;;  %v6555_v1 = vpack.c.bf16 %v1863_v62, %v1860_v61  ;;  %v8336_v51 = vld [vmem:[#allocation2 + $0x48] sm:$0xff]  ;;  %v1490_v62 = vld [vmem:[#allocation18 + $0x40] sm:$0xff] }
 0x52a   : >> { %v1105_v0 = vpop.f32.mrb[31].mxu0  ;;  %6516 = vmatprep.subr.bf16.mxu1 %v6515_v52  ;;  %v8340_v52 = vld [vmem:[#allocation2 + $0x50] sm:$0xff] }
 0x52b   : >> { %5732 = vmatprep.mubr.f32.mxu1 %v1105_v0  ;;  %v6553_v0 = vpack.c.bf16 %v1856_v60, %v1853_v59 }
 0x52c   : >> { %5733 = vmatmul.mubr.f32.gmra.mrb[30].mxu1 %v5678_v63  ;;  %v8300_v63 = vld [vmem:[#allocation2] sm:$0xff] }
 0x52d   : >> { %1611 = vmatprep.mubr.f32.mxu1 %v7968_v11  ;;  %6518 = vmatpush1.bf16.msra.mxu1 %v6517_v57  ;;  %v8359_v57 = vld [vmem:[%s9287_s1] ss:$0 sm:$0xff] }
 0x52e   : >> { %6552 = vmatprep.subr.bf16.mxu1 %v6551_v58 }
 0x530   : >> { %1612 = vmatmul.mubr.f32.vlgmr.msra.gmra.mrb[32].mxu1 %v8300_v63 }
 0x531   : >> { %6554 = vmatpush1.bf16.msra.mxu1 %v6553_v0  ;;  %1617 = vmatprep.mubr.f32.mxu1 %v7968_v11  ;;  %v1493_v0 = vld [vmem:[#allocation18 + $0x58] sm:$0xff] }
 0x532   : >> { %6556 = vmatprep.subr.bf16.mxu1 %v6555_v1 }
 0x534   : >> { %1618 = vmatmul.mubr.f32.gmra.mrb[34].mxu1 %v8304_v6 }
 0x535   : >> { %1623 = vmatprep.mubr.f32.mxu1 %v7968_v11  ;;  %6558 = vmatpush1.bf16.msra.mxu1 %v6557_v7  ;;  %v6523_v7 = vpack.c.bf16 %v1493_v0, %v1490_v62 }
 0x536   : >> { %6560 = vmatprep.subr.bf16.mxu1 %v6559_v8 }
 0x538   : >> { %1624 = vmatmul.mubr.f32.gmra.mrb[36].mxu1 %v8308_v14 }
 0x539   : >> { %1629 = vmatprep.mubr.f32.mxu1 %v7968_v11  ;;  %6562 = vmatpush1.bf16.msra.mxu1 %v6561_v15 }
 0x53a   : >> { %6564 = vmatprep.subr.bf16.mxu1 %v6563_v16 }
 0x53c   : >> { %1630 = vmatmul.mubr.f32.gmra.mrb[38].mxu1 %v8312_v21 }
 0x53d   : >> { %1635 = vmatprep.mubr.f32.mxu1 %v7968_v11  ;;  %6566 = vmatpush1.bf16.msra.mxu1 %v6565_v22  ;;  %v1505_v22 = vld [vmem:[#allocation18 + $0xb8] sm:$0xff] }
 0x53e   : >> { %6568 = vmatprep.subr.bf16.mxu1 %v6567_v23 }
 0x540   : >> { %1636 = vmatmul.mubr.f32.gmra.mrb[40].mxu1 %v8316_v28 }
 0x541   : >> { %1641 = vmatprep.mubr.f32.mxu1 %v7968_v11  ;;  %6570 = vmatpush1.bf16.msra.mxu1 %v6569_v29 }
 0x542   : >> { %6572 = vmatprep.subr.bf16.mxu1 %v6571_v30  ;;  %v1508_v30 = vld [vmem:[#allocation18 + $0xd0] sm:$0xff] }
 0x543   : >> { %v6535_v39 = vpack.c.bf16 %v1511_v31, %v1508_v30  ;;  %v1876_v30 = vld [vmem:[#allocation20 + $0xb8] sm:$0xff]  ;;  %v1879_v31 = vld [vmem:[#allocation20 + $0xd0] sm:$0xff] }
 0x544   : >> { %1642 = vmatmul.mubr.f32.gmra.mrb[42].mxu1 %v8320_v35 }
 0x545   : >> { %1647 = vmatprep.mubr.f32.mxu1 %v7968_v11  ;;  %6574 = vmatpush1.bf16.msra.mxu1 %v6573_v37 }
 0x546   : >> { %6576 = vmatprep.subr.bf16.mxu1 %v6575_v38 }
 0x548   : >> { %1648 = vmatmul.mubr.f32.gmra.mrb[44].mxu1 %v8324_v43 }
 0x549   : >> { %1653 = vmatprep.mubr.f32.mxu1 %v7968_v11  ;;  %6578 = vmatpush1.bf16.msra.mxu1 %v6577_v44 }
 0x54a   : >> { %6580 = vmatprep.subr.bf16.mxu1 %v6579_v45 }
 0x54c   : >> { %1654 = vmatmul.mubr.f32.gmra.mrb[46].mxu1 %v8328_v48 }
 0x54d   : >> { %1659 = vmatprep.mubr.f32.mxu1 %v7968_v11  ;;  %6582 = vmatpush1.bf16.msra.mxu1 %v6581_v49 }
 0x550   : >> { %1660 = vmatmul.mubr.f32.gmra.mrb[48].mxu1 %v8332_v50 }
 0x551   : >> { %1665 = vmatprep.mubr.f32.mxu1 %v7968_v11 }
 0x554   : >> { %1666 = vmatmul.mubr.f32.gmra.mrb[50].mxu1 %v8336_v51 }
 0x555   : >> { %1671 = vmatprep.mubr.f32.mxu1 %v7968_v11 }
 0x558   : >> { %1672 = vmatmul.mubr.f32.gmra.mrb[52].mxu1 %v8340_v52 }
 0x559   : >> { %1677 = vmatprep.mubr.f32.mxu1 %v7968_v11 }
 0x55c   : >> { %1678 = vmatmul.mubr.f32.gmra.mrb[54].mxu1 %v8344_v53 }
 0x55d   : >> { %1683 = vmatprep.mubr.f32.mxu1 %v7968_v11 }
 0x560   : >> { %1684 = vmatmul.mubr.f32.gmra.mrb[56].mxu1 %v8348_v54 }
 0x561   : >> { %1689 = vmatprep.mubr.f32.mxu1 %v7968_v11 }
 0x564   : >> { %1690 = vmatmul.mubr.f32.gmra.mrb[58].mxu1 %v8352_v55 }
 0x565   : >> { %1695 = vmatprep.mubr.f32.mxu1 %v7968_v11 }
 0x568   : >> { %1696 = vmatmul.mubr.f32.gmra.mrb[60].mxu1 %v8356_v56 }
 0x569   : >> { %1701 = vmatprep.mubr.f32.mxu1 %v7968_v11 }
 0x5e3   : >> { %v5713_v58 = vpop.f32.mrb[16].mxu1 }
 0x5e4   : >> { %v1226_v59 = vadd.f32 %v5713_v58, %v8359_v57  ;;  %v1220_v60 = vpop.f32.mrb[17].mxu1  ;;  %v6539_v58 = vpack.c.bf16 %v1517_v42, %v1514_v41  ;;  %v2564_v41 = vld [vmem:[%s9288_s3 + $0x20] sm:$0xff] }
 0x5e5   : >> { %v1221_v61 = vadd.f32 %v8359_v57, %v1220_v60  ;;  %v1520_v60 = vld [vmem:[#allocation18 + $0x130] sm:$0xff] }
 0x5e6   : >> { %v1300_v3 = vmax.f32 %v1226_v59, 0.0 }
 0x5e7   : >> { %v1299_v1 = vmax.f32 %v1221_v61, 0.0  ;;  %v5716_v2 = vpop.f32.mrb[18].mxu1  ;;  %v1523_v61 = vld [vmem:[#allocation18 + $0x148] sm:$0xff] }
 0x5e8   : >> { %v1236_v4 = vadd.f32 %v5716_v2, %v8359_v57  ;;  %v1230_v5 = vpop.f32.mrb[19].mxu1 }
 0x5e9   : >> { %v1231_v8 = vadd.f32 %v8359_v57, %v1230_v5  ;;  %5767 = vmatprep.mubr.f32.mxu0 %v1299_v1 }
 0x5ea   : >> { %v1302_v12 = vmax.f32 %v1236_v4, 0.0  ;;  %5768 = vmatmul.mubr.f32.vlgmr.msra.gmra.mrb[32].mxu0 %v1300_v3  ;;  %v6543_v4 = vpack.c.bf16 %v1523_v61, %v1520_v60 }
 0x5eb   : >> { %v1301_v13 = vmax.f32 %v1231_v8, 0.0  ;;  %v5719_v15 = vpop.f32.mrb[20].mxu1  ;;  %6522 = vmatpush3.bf16.msra.mxu0 %v8297_v36  ;;  %v6531_v36 = vpack.c.bf16 %v1505_v22, %v1502_v20  ;;  %v1529_v8 = vld [vmem:[#allocation18 + $0x178] sm:$0xff] }
 0x5ec   : >> { %v1246_v16 = vadd.f32 %v5719_v15, %v8359_v57  ;;  %v1240_v17 = vpop.f32.mrb[21].mxu1  ;;  %6524 = vmatprep.subr.bf16.mxu0 %v6523_v7 }
 0x5ed   : >> { %5770 = vmatprep.mubr.f32.mxu0 %v1301_v13  ;;  %v1241_v19 = vadd.f32 %v8359_v57, %v1240_v17 }
 0x5ee   : >> { %v1304_v23 = vmax.f32 %v1246_v16, 0.0  ;;  %5771 = vmatmul.mubr.f32.gmra.mrb[34].mxu0 %v1302_v12 }
 0x5ef   : >> { %v1303_v24 = vmax.f32 %v1241_v19, 0.0  ;;  %v5722_v25 = vpop.f32.mrb[22].mxu1  ;;  %6526 = vmatpush3.bf16.msra.mxu0 %v6523_v7  ;;  %v1526_v7 = vld [vmem:[#allocation18 + $0x160] sm:$0xff]  ;;  %v1858_v19 = vld [vmem:[#allocation20 + $0x28] sm:$0xff] }
 0x5f0   : >> { %v1256_v26 = vadd.f32 %v5722_v25, %v8359_v57  ;;  %v1250_v27 = vpop.f32.mrb[23].mxu1  ;;  %6528 = vmatprep.subr.bf16.mxu0 %v6527_v18  ;;  %v6547_v16 = vpack.c.bf16 %v1529_v8, %v1526_v7  ;;  %v1864_v25 = vld [vmem:[#allocation20 + $0x58] sm:$0xff] }
 0x5f1   : >> { %5773 = vmatprep.mubr.f32.mxu0 %v1303_v24  ;;  %v1251_v29 = vadd.f32 %v8359_v57, %v1250_v27  ;;  %v1861_v24 = vld [vmem:[#allocation20 + $0x40] sm:$0xff]  ;;  %v1867_v27 = vld [vmem:[#allocation20 + $0x70] sm:$0xff]  ;;  %v2575_v8 = vld [vmem:[%s9288_s3 + $0x78] sm:$0xff] }
 0x5f2   : >> { %5774 = vmatmul.mubr.f32.gmra.mrb[36].mxu0 %v1304_v23  ;;  %v1306_v32 = vmax.f32 %v1256_v26, 0.0  ;;  %v6587_v26 = vpack.c.bf16 %v1864_v25, %v1861_v24 }
 0x5f3   : >> { %v1305_v33 = vmax.f32 %v1251_v29, 0.0  ;;  %v5725_v34 = vpop.f32.mrb[24].mxu1  ;;  %6530 = vmatpush3.bf16.msra.mxu0 %v6527_v18  ;;  %v1855_v18 = vld [vmem:[#allocation20 + $0x10] sm:$0xff]  ;;  %v1873_v29 = vld [vmem:[#allocation20 + $0xa0] sm:$0xff] }
 0x5f4   : >> { %v1266_v37 = vadd.f32 %v5725_v34, %v8359_v57  ;;  %v1260_v38 = vpop.f32.mrb[25].mxu1  ;;  %6532 = vmatprep.subr.bf16.mxu0 %v6531_v36  ;;  %v6583_v23 = vpack.c.bf16 %v1858_v19, %v1855_v18  ;;  %v1894_v34 = vld [vmem:[#allocation20 + $0x148] sm:$0xff] }
 0x5f5   : >> { %5776 = vmatprep.mubr.f32.mxu0 %v1305_v33  ;;  %v1261_v40 = vadd.f32 %v8359_v57, %v1260_v38  ;;  %v1888_v33 = vld [vmem:[#allocation20 + $0x118] sm:$0xff] }
 0x5f6   : >> { %5777 = vmatmul.mubr.f32.gmra.mrb[38].mxu0 %v1306_v32  ;;  %v1308_v44 = vmax.f32 %v1266_v37, 0.0  ;;  %v1882_v32 = vld [vmem:[#allocation20 + $0xe8] sm:$0xff]  ;;  %v2576_v37 = vstv %s7912_s5  ;;  %s584_s5 = sadd.s32 1, %s7912_s5  }
 0x5f7   : >> { %v1307_v45 = vmax.f32 %v1261_v40, 0.0  ;;  %v5728_v46 = vpop.f32.mrb[26].mxu1  ;;  %6534 = vmatpush3.bf16.msra.mxu0 %v6531_v36  ;;  %v1870_v36 = vld [vmem:[#allocation20 + $0x88] sm:$0xff]  ;;  %vm2581_vm5 = vcmp.eq.s32.totalorder %v2564_v41, %v2576_v37  ;;  %vm2592_vm14 = vcmp.eq.s32.totalorder %v2575_v8, %v2576_v37  ;;  %p581_p1 = scmp.ge.s32.totalorder %s584_s5, 4  }
 0x5f8   : >> { %v1276_v47 = vadd.f32 %v5728_v46, %v8359_v57  ;;  %v1270_v49 = vpop.f32.mrb[27].mxu1  ;;  %6536 = vmatprep.subr.bf16.mxu0 %v6535_v39  ;;  %v2565_v40 = vld [vmem:[%s9288_s3 + $0x28] sm:$0xff]  ;;  %v2566_v46 = vld [vmem:[%s9288_s3 + $0x30] sm:$0xff]  ;;  %s8766_s16 = smov (%p581_p1), 1  }
 0x5f9   : >> { %5779 = vmatprep.mubr.f32.mxu0 %v1307_v45  ;;  %v1271_v59 = vadd.f32 %v8359_v57, %v1270_v49  ;;  %vm2582_vm4 = vcmp.eq.s32.totalorder %v2565_v40, %v2576_v37  ;;  %v2567_v45 = vld [vmem:[%s9288_s3 + $0x38] sm:$0xff]  ;;  %vm2583_vm7 = vcmp.eq.s32.totalorder %v2566_v46, %v2576_v37 }
 0x5fa   : >> { %5780 = vmatmul.mubr.f32.gmra.mrb[40].mxu0 %v1308_v44  ;;  %v1310_v62 = vmax.f32 %v1276_v47, 0.0  ;;  %vm2584_vm6 = vcmp.eq.s32.totalorder %v2567_v45, %v2576_v37 }
 0x5fb   : >> { %v1309_v0 = vmax.f32 %v1271_v59, 0.0  ;;  %v5731_v1 = vpop.f32.mrb[28].mxu1  ;;  %6538 = vmatpush3.bf16.msra.mxu0 %v6535_v39  ;;  %v2568_v59 = vld [vmem:[%s9288_s3 + $0x40] sm:$0xff] }
 0x5fc   : >> { %v1286_v2 = vadd.f32 %v5731_v1, %v8359_v57  ;;  %v1280_v3 = vpop.f32.mrb[29].mxu1  ;;  %6540 = vmatprep.subr.bf16.mxu0 %v6539_v58  ;;  %vm2585_vm9 = vcmp.eq.s32.totalorder %v2568_v59, %v2576_v37 }
 0x5fd   : >> { %5782 = vmatprep.mubr.f32.mxu0 %v1309_v0  ;;  %v1281_v5 = vadd.f32 %v8359_v57, %v1280_v3  ;;  %v2570_v0 = vld [vmem:[%s9288_s3 + $0x50] sm:$0xff]  ;;  %v2573_v3 = vld [vmem:[%s9288_s3 + $0x68] sm:$0xff] }
 0x5fe   : >> { %5783 = vmatmul.mubr.f32.gmra.mrb[42].mxu0 %v1310_v62  ;;  %v1312_v9 = vmax.f32 %v1286_v2, 0.0  ;;  %v2571_v62 = vld [vmem:[%s9288_s3 + $0x58] sm:$0xff]  ;;  %vm2587_vm11 = vcmp.eq.s32.totalorder %v2570_v0, %v2576_v37  ;;  %vm2590_vm12 = vcmp.eq.s32.totalorder %v2573_v3, %v2576_v37  ;;  %v1530_v0 = vld [vmem:[%s9295_s25] sm:$0x7] }
 0x5ff   : >> { %v1311_v10 = vmax.f32 %v1281_v5, 0.0  ;;  %v5734_v12 = vpop.f32.mrb[30].mxu1  ;;  %6542 = vmatpush3.bf16.msra.mxu0 %v6539_v58  ;;  %v2569_v58 = vld [vmem:[%s9288_s3 + $0x48] sm:$0xff]  ;;  %vm2588_vm10 = vcmp.eq.s32.totalorder %v2571_v62, %v2576_v37 }
 0x600   : >> { %v1296_v13 = vadd.f32 %v5734_v12, %v8359_v57  ;;  %v1290_v15 = vpop.f32.mrb[31].mxu1  ;;  %6544 = vmatprep.subr.bf16.mxu0 %v6543_v4  ;;  %vm2586_vm8 = vcmp.eq.s32.totalorder %v2569_v58, %v2576_v37 }
 0x601   : >> { %5785 = vmatprep.mubr.f32.mxu0 %v1311_v10  ;;  %v1291_v17 = vadd.f32 %v8359_v57, %v1290_v15  ;;  %v6591_v57 = vpack.c.bf16 %v1870_v36, %v1867_v27 }
 0x602   : >> { %5786 = vmatmul.mubr.f32.gmra.mrb[44].mxu0 %v1312_v9  ;;  %v1314_v20 = vmax.f32 %v1296_v13, 0.0  ;;  %v2574_v9 = vld [vmem:[%s9288_s3 + $0x70] sm:$0xff] }
 0x603   : >> { %v1313_v22 = vmax.f32 %v1291_v17, 0.0  ;;  %6546 = vmatpush3.bf16.msra.mxu0 %v6543_v4  ;;  %v2572_v4 = vld [vmem:[%s9288_s3 + $0x60] sm:$0xff]  ;;  %vm2591_vm15 = vcmp.eq.s32.totalorder %v2574_v9, %v2576_v37 }
 0x604   : >> { %6548 = vmatprep.subr.bf16.mxu0 %v6547_v16  ;;  %vm2589_vm13 = vcmp.eq.s32.totalorder %v2572_v4, %v2576_v37 }
 0x605   : >> { %5788 = vmatprep.mubr.f32.mxu0 %v1313_v22 }
 0x606   : >> { %5789 = vmatmul.mubr.f32.gmra.mrb[46].mxu0 %v1314_v20 }
 0x607   : >> { %6550 = vmatpush3.bf16.msra.mxu0 %v6547_v16  ;;  %5823 = vmatprep.mubr.f32.mxu0 %v8300_v63  ;;  %v6595_v63 = vpack.c.bf16 %v1876_v30, %v1873_v29  ;;  %v4906_v16 = vld [vmem:[%s9289_s11] ss:$0 sm:$0xff] }
 0x608   : >> { %6584 = vmatprep.subr.bf16.mxu0 %v6583_v23 }
 0x60a   : >> { %5824 = vmatmul.mubr.f32.vlgmr.msra.gmra.mrb[48].mxu0 %v8304_v6  ;;  %v6599_v6 = vpack.c.bf16 %v1882_v32, %v1879_v31 }
 0x60b   : >> { %6586 = vmatpush3.bf16.msra.mxu0 %v6583_v23  ;;  %5826 = vmatprep.mubr.f32.mxu0 %v8308_v14  ;;  %v1885_v14 = vld [vmem:[#allocation20 + $0x100] sm:$0xff] }
 0x60c   : >> { %6588 = vmatprep.subr.bf16.mxu0 %v6587_v26 }
 0x60e   : >> { %5827 = vmatmul.mubr.f32.gmra.mrb[50].mxu0 %v8312_v21  ;;  %v6603_v21 = vpack.c.bf16 %v1888_v33, %v1885_v14 }
 0x60f   : >> { %6590 = vmatpush3.bf16.msra.mxu0 %v6587_v26  ;;  %5829 = vmatprep.mubr.f32.mxu0 %v8316_v28  ;;  %v1891_v28 = vld [vmem:[#allocation20 + $0x130] sm:$0xff] }
 0x610   : >> { %6592 = vmatprep.subr.bf16.mxu0 %v6591_v57 }
 0x612   : >> { %5830 = vmatmul.mubr.f32.gmra.mrb[52].mxu0 %v8320_v35  ;;  %v6607_v35 = vpack.c.bf16 %v1894_v34, %v1891_v28 }
 0x613   : >> { %6594 = vmatpush3.bf16.msra.mxu0 %v6591_v57  ;;  %5832 = vmatprep.mubr.f32.mxu0 %v8324_v43  ;;  %v1897_v43 = vld [vmem:[#allocation20 + $0x160] sm:$0xff] }
 0x614   : >> { %6596 = vmatprep.subr.bf16.mxu0 %v6595_v63 }
 0x616   : >> { %5833 = vmatmul.mubr.f32.gmra.mrb[54].mxu0 %v8328_v48  ;;  %v1900_v48 = vld [vmem:[#allocation20 + $0x178] sm:$0xff] }
 0x617   : >> { %6598 = vmatpush3.bf16.msra.mxu0 %v6595_v63  ;;  %5835 = vmatprep.mubr.f32.mxu0 %v8332_v50  ;;  %v1481_v50 = vld [vmem:[#allocation2 + $0x78] sm:$0xff] }
 0x618   : >> { %6600 = vmatprep.subr.bf16.mxu0 %v6599_v6  ;;  %1702 = vmatmul.mubr.f32.gmra.mrb[62].mxu1 %v1481_v50 }
 0x619   : >> { %1982 = vmatprep.mubr.f32.mxu1 %v7968_v11 }
 0x61a   : >> { %5836 = vmatmul.mubr.f32.gmra.mrb[56].mxu0 %v8336_v51  ;;  %v6611_v51 = vpack.c.bf16 %v1900_v48, %v1897_v43 }
 0x61b   : >> { %6602 = vmatpush3.bf16.msra.mxu0 %v6599_v6  ;;  %5838 = vmatprep.mubr.f32.mxu0 %v8340_v52  ;;  %v2560_v52 = vld [vmem:[%s9288_s3] sm:$0xff] }
 0x61c   : >> { %6604 = vmatprep.subr.bf16.mxu0 %v6603_v21  ;;  %vm2577_vm0 = vcmp.eq.s32.totalorder %v2560_v52, %v2576_v37 }
 0x61e   : >> { %5839 = vmatmul.mubr.f32.gmra.mrb[58].mxu0 %v8344_v53  ;;  %v2561_v53 = vld [vmem:[%s9288_s3 + $0x8] sm:$0xff] }
 0x61f   : >> { %6606 = vmatpush3.bf16.msra.mxu0 %v6603_v21  ;;  %5841 = vmatprep.mubr.f32.mxu0 %v8348_v54  ;;  %v2562_v54 = vld [vmem:[%s9288_s3 + $0x10] sm:$0xff]  ;;  %vm2578_vm1 = vcmp.eq.s32.totalorder %v2561_v53, %v2576_v37 }
 0x620   : >> { %6608 = vmatprep.subr.bf16.mxu0 %v6607_v35  ;;  %vm2579_vm2 = vcmp.eq.s32.totalorder %v2562_v54, %v2576_v37 }
 0x622   : >> { %5842 = vmatmul.mubr.f32.gmra.mrb[60].mxu0 %v8352_v55  ;;  %v7969_v55 = vmov 0  }
 0x623   : >> { %6610 = vmatpush3.bf16.msra.mxu0 %v6607_v35  ;;  %5844 = vmatprep.mubr.f32.mxu0 %v8356_v56  ;;  %v2563_v56 = vld [vmem:[%s9288_s3 + $0x18] sm:$0xff]  ;;  %v2593_v38 = vsel %vm2577_vm0, 1, %v7969_v55  ;;  %v2595_v39 = vsel %vm2579_vm2, 1, %v7969_v55  ;;  %v2594_v42 = vsel %vm2578_vm1, 1, %v7969_v55  ;;  %v2598_v47 = vsel %vm2582_vm4, 1, %v7969_v55 }
 0x624   : >> { %6612 = vmatprep.subr.bf16.mxu0 %v6611_v51  ;;  %7190 = vset.pattern.permute.xlu0 %v7969_v55  ;;  %vm2580_vm3 = vcmp.eq.s32.totalorder %v2563_v56, %v2576_v37  ;;  %v2597_v49 = vsel %vm2581_vm5, 1, %v7969_v55  ;;  %v2600_v60 = vsel %vm2584_vm6, 1, %v7969_v55  ;;  %v2599_v61 = vsel %vm2583_vm7, 1, %v7969_v55 }
 0x625   : >> { %7191 = vset.pattern.permute.xlu1 %v7969_v55  ;;  %2610 = vperm.xlu0 %7190, %v2593_v38   ;;  %v2596_v44 = vsel %vm2580_vm3, 1, %v7969_v55  ;;  %v2602_v1 = vsel %vm2586_vm8, 1, %v7969_v55  ;;  %v2601_v2 = vsel %vm2585_vm9, 1, %v7969_v55  ;;  %v2604_v5 = vsel %vm2588_vm10, 1, %v7969_v55 }
 0x626   : >> { %5845 = vmatmul.mubr.f32.gmra.mrb[62].mxu0 %v1481_v50  ;;  %2616 = vperm.xlu1 %7191, %v2595_v39   ;;  %v2603_v7 = vsel %vm2587_vm11, 1, %v7969_v55  ;;  %v2606_v10 = vsel %vm2590_vm12, 1, %v7969_v55  ;;  %v2605_v12 = vsel %vm2589_vm13, 1, %v7969_v55  ;;  %v2608_v13 = vsel %vm2592_vm14, 1, %v7969_v55 }
 0x627   : >> { %6614 = vmatpush3.bf16.msra.mxu0 %v6611_v51  ;;  %v2607_v15 = vsel %vm2591_vm15, 1, %v7969_v55 }
 0x629   : >> { %2613 = vperm.xlu0 %7190, %v2594_v42  }
 0x62a   : >> { %2619 = vperm.xlu1 %7191, %v2596_v44  }
 0x62d   : >> { %2622 = vperm.xlu0 %7190, %v2597_v49  }
 0x62e   : >> { %2625 = vperm.xlu1 %7191, %v2598_v47  }
 0x631   : >> { %2628 = vperm.xlu0 %7190, %v2599_v61  }
 0x632   : >> { %2631 = vperm.xlu1 %7191, %v2600_v60   ;;  %v1532_v60 = vlaneseq }
 0x634   : >> { %v1533_v61 = vshrl.u32 %v1532_v60, 7 }
 0x635   : >> { %2634 = vperm.xlu0 %7190, %v2601_v2  }
 0x636   : >> { %2637 = vperm.xlu1 %7191, %v2602_v1   ;;  %v8521_v62 = vsub.s32 2, %v1533_v61  ;;  %v8538_v8 = vsub.s32 1, %v1533_v61 }
 0x638   : >> { %9297 = vst [vmem:[#allocation55_spill] sm:$0xff] %v8521_v62  ;;  %v8525_v1 = vrot.slane %v1530_v0, %v8521_v62  ;;  %9301 = vst [vmem:[#allocation59_spill] sm:$0xff] %v8538_v8 }
 0x639   : >> { %2640 = vperm.xlu0 %7190, %v2603_v7   ;;  %v8533_v7 = vsub.s32 0, %v1533_v61 }
 0x63a   : >> { %2643 = vperm.xlu1 %7191, %v2604_v5  }
 0x63b   : >> { %9300 = vst [vmem:[#allocation58_spill] sm:$0xff] %v8533_v7  ;;  %v1535_v9 = vrot.slane %v1530_v0, %v8533_v7 }
 0x63d   : >> { %2646 = vperm.xlu0 %7190, %v2605_v12   ;;  %v1539_v12 = vrot.slane %v1530_v0, %v8538_v8 }
 0x63e   : >> { %2649 = vperm.xlu1 %7191, %v2606_v10  }
 0x641   : >> { %2652 = vperm.xlu0 %7190, %v2607_v15  }
 0x642   : >> { %2655 = vperm.xlu1 %7191, %v2608_v13  }
 0x6bd   : >> { %v5769_v17 = vpop.f32.mrb[32].mxu0 }
 0x6be   : >> { %v1387_v18 = vpop.f32.mrb[33].mxu0  ;;  %v8416_v20 = vadd.f32 %v5769_v17, %v4906_v16 }
 0x6bf   : >> { %v8414_v19 = vadd.f32 %v4906_v16, %v1387_v18 }
 0x6c1   : >> { %v5772_v22 = vpop.f32.mrb[34].mxu0  ;;  %1983 = vmatmul.mubr.f32.vlgmr.msra.gmra.mrb[32].mxu1 %v8414_v19  ;;  %5879 = vmatprep.mubr.f32.mxu0 %v8414_v19 }
 0x6c2   : >> { %v1397_v23 = vpop.f32.mrb[35].mxu0  ;;  %5880 = vmatmul.mubr.f32.vlgmr.msra.gmra.mrb[64].mxu0 %v8416_v20  ;;  %1988 = vmatprep.mubr.f32.mxu1 %v7968_v11  ;;  %v8424_v25 = vadd.f32 %v5772_v22, %v4906_v16 }
 0x6c3   : >> { %v8422_v24 = vadd.f32 %v4906_v16, %v1397_v23 }
 0x6c5   : >> { %1989 = vmatmul.mubr.f32.gmra.mrb[34].mxu1 %v8416_v20  ;;  %5882 = vmatprep.mubr.f32.mxu0 %v8422_v24  ;;  %v5775_v26 = vpop.f32.mrb[36].mxu0 }
 0x6c6   : >> { %5883 = vmatmul.mubr.f32.gmra.mrb[66].mxu0 %v8424_v25  ;;  %v8429_v27 = vadd.f32 %v5775_v26, %v4906_v16  ;;  %v1407_v36 = vpop.f32.mrb[37].mxu0  ;;  %1994 = vmatprep.mubr.f32.mxu1 %v7968_v11 }
 0x6c7   : >> { %v8432_v57 = vadd.f32 %v4906_v16, %v1407_v36 }
 0x6c9   : >> { %1995 = vmatmul.mubr.f32.gmra.mrb[36].mxu1 %v8422_v24  ;;  %5885 = vmatprep.mubr.f32.mxu0 %v8432_v57  ;;  %v5778_v29 = vpop.f32.mrb[38].mxu0 }
 0x6ca   : >> { %2000 = vmatprep.mubr.f32.mxu1 %v7968_v11  ;;  %5886 = vmatmul.mubr.f32.gmra.mrb[68].mxu0 %v8429_v27  ;;  %v8438_v30 = vadd.f32 %v5778_v29, %v4906_v16  ;;  %v1417_v63 = vpop.f32.mrb[39].mxu0 }
 0x6cb   : >> { %v8440_v31 = vadd.f32 %v4906_v16, %v1417_v63 }
 0x6cd   : >> { %2001 = vmatmul.mubr.f32.gmra.mrb[38].mxu1 %v8424_v25  ;;  %5888 = vmatprep.mubr.f32.mxu0 %v8440_v31  ;;  %v5781_v32 = vpop.f32.mrb[40].mxu0 }
 0x6ce   : >> { %2006 = vmatprep.mubr.f32.mxu1 %v7968_v11  ;;  %5889 = vmatmul.mubr.f32.gmra.mrb[70].mxu0 %v8438_v30  ;;  %v8446_v6 = vadd.f32 %v5781_v32, %v4906_v16  ;;  %v1427_v14 = vpop.f32.mrb[41].mxu0 }
 0x6cf   : >> { %v8448_v33 = vadd.f32 %v4906_v16, %v1427_v14 }
 0x6d1   : >> { %2007 = vmatmul.mubr.f32.gmra.mrb[40].mxu1 %v8432_v57  ;;  %5891 = vmatprep.mubr.f32.mxu0 %v8448_v33  ;;  %v5784_v21 = vpop.f32.mrb[42].mxu0 }
 0x6d2   : >> { %2012 = vmatprep.mubr.f32.mxu1 %v7968_v11  ;;  %5892 = vmatmul.mubr.f32.gmra.mrb[72].mxu0 %v8446_v6  ;;  %v8454_v28 = vadd.f32 %v5784_v21, %v4906_v16  ;;  %v1437_v34 = vpop.f32.mrb[43].mxu0 }
 0x6d3   : >> { %v8456_v35 = vadd.f32 %v4906_v16, %v1437_v34 }
 0x6d4   : >> { %9290 = vst [vmem:[#allocation50_spill] sm:$0xff] %v8454_v28 }
 0x6d5   : >> { %2013 = vmatmul.mubr.f32.gmra.mrb[42].mxu1 %v8429_v27  ;;  %5894 = vmatprep.mubr.f32.mxu0 %v8456_v35  ;;  %v5787_v43 = vpop.f32.mrb[44].mxu0 }
 0x6d6   : >> { %2018 = vmatprep.mubr.f32.mxu1 %v7968_v11  ;;  %5895 = vmatmul.mubr.f32.gmra.mrb[74].mxu0 %v8454_v28  ;;  %v8462_v48 = vadd.f32 %v5787_v43, %v4906_v16  ;;  %v1447_v50 = vpop.f32.mrb[45].mxu0 }
 0x6d7   : >> { %v8464_v51 = vadd.f32 %v4906_v16, %v1447_v50 }
 0x6d8   : >> { %9291 = vst [vmem:[#allocation51_spill] sm:$0xff] %v8462_v48 }
 0x6d9   : >> { %9292 = vst [vmem:[#allocation52_spill] sm:$0xff] %v8464_v51  ;;  %2019 = vmatmul.mubr.f32.gmra.mrb[44].mxu1 %v8440_v31  ;;  %5897 = vmatprep.mubr.f32.mxu0 %v8464_v51  ;;  %v5790_v52 = vpop.f32.mrb[46].mxu0 }
 0x6da   : >> { %2024 = vmatprep.mubr.f32.mxu1 %v7968_v11  ;;  %5898 = vmatmul.mubr.f32.gmra.mrb[76].mxu0 %v8462_v48  ;;  %v8470_v53 = vadd.f32 %v5790_v52, %v4906_v16  ;;  %v1457_v54 = vpop.f32.mrb[47].mxu0 }
 0x6db   : >> { %v8472_v55 = vadd.f32 %v4906_v16, %v1457_v54 }
 0x6dc   : >> { %9293 = vst [vmem:[#allocation53_spill] sm:$0xff] %v8470_v53 }
 0x6dd   : >> { %9294 = vst [vmem:[#allocation54_spill] sm:$0xff] %v8472_v55  ;;  %2025 = vmatmul.mubr.f32.gmra.mrb[46].mxu1 %v8438_v30  ;;  %5900 = vmatprep.mubr.f32.mxu0 %v8472_v55  ;;  %v8476_v56 = vpop.f32.mrb[48].mxu0 }
 0x6de   : >> { %2030 = vmatprep.mubr.f32.mxu1 %v7968_v11  ;;  %5901 = vmatmul.mubr.f32.gmra.mrb[78].mxu0 %v8470_v53  ;;  %v8480_v37 = vpop.f32.mrb[49].mxu0 }
 0x6e1   : >> { %2031 = vmatmul.mubr.f32.gmra.mrb[48].mxu1 %v8448_v33  ;;  %v8483_v38 = vpop.f32.mrb[50].mxu0 }
 0x6e2   : >> { %2036 = vmatprep.mubr.f32.mxu1 %v7968_v11  ;;  %v8486_v39 = vpop.f32.mrb[51].mxu0 }
 0x6e5   : >> { %2037 = vmatmul.mubr.f32.gmra.mrb[50].mxu1 %v8446_v6  ;;  %v8489_v40 = vpop.f32.mrb[52].mxu0 }
 0x6e6   : >> { %2042 = vmatprep.mubr.f32.mxu1 %v7968_v11  ;;  %v8492_v41 = vpop.f32.mrb[53].mxu0 }
 0x6e9   : >> { %2043 = vmatmul.mubr.f32.gmra.mrb[52].mxu1 %v8456_v35  ;;  %v8495_v42 = vpop.f32.mrb[54].mxu0 }
 0x6ea   : >> { %2048 = vmatprep.mubr.f32.mxu1 %v7968_v11  ;;  %v8498_v44 = vpop.f32.mrb[55].mxu0 }
 0x6ed   : >> { %2049 = vmatmul.mubr.f32.gmra.mrb[54].mxu1 %v8454_v28  ;;  %v8501_v45 = vpop.f32.mrb[56].mxu0  ;;  %v7352_v28 = vld [vmem:[#allocation26] sm:$0xff] }
 0x6ee   : >> { %2054 = vmatprep.mubr.f32.mxu1 %v7968_v11  ;;  %v8504_v46 = vpop.f32.mrb[57].mxu0 }
 0x6f1   : >> { %2055 = vmatmul.mubr.f32.gmra.mrb[56].mxu1 %v8464_v51  ;;  %v8507_v47 = vpop.f32.mrb[58].mxu0 }
 0x6f2   : >> { %2060 = vmatprep.mubr.f32.mxu1 %v7968_v11  ;;  %v8510_v49 = vpop.f32.mrb[59].mxu0 }
 0x6f5   : >> { %2061 = vmatmul.mubr.f32.gmra.mrb[58].mxu1 %v8462_v48  ;;  %v8513_v58 = vpop.f32.mrb[60].mxu0 }
 0x6f6   : >> { %2066 = vmatprep.mubr.f32.mxu1 %v7968_v11  ;;  %v8516_v59 = vpop.f32.mrb[61].mxu0 }
 0x6f9   : >> { %2067 = vmatmul.mubr.f32.gmra.mrb[60].mxu1 %v8472_v55  ;;  %v5846_v2 = vpop.f32.mrb[62].mxu0 }
 0x6fa   : >> { %2072 = vmatprep.mubr.f32.mxu1 %v7968_v11  ;;  %v8528_v3 = vadd.f32 %v5846_v2, %v8525_v1  ;;  %v1844_v4 = vpop.f32.mrb[63].mxu0  ;;  %v8536_v11 = vld [vmem:[%s9296_s15] sm:$0x7] }
 0x6fb   : >> { %v8531_v5 = vadd.f32 %v1844_v4, %v8525_v1  ;;  %v1906_v10 = vrot.slane %v8536_v11, %v8533_v7  ;;  %v1910_v13 = vrot.slane %v8536_v11, %v8538_v8 }
 0x6fc   : >> { %9298 = vst [vmem:[#allocation56_spill] sm:$0xff] %v8528_v3 }
 0x6fd   : >> { %2073 = vmatmul.mubr.f32.gmra.mrb[62].mxu1 %v8470_v53  ;;  %9299 = vst [vmem:[#allocation57_spill] sm:$0xff] %v8531_v5  ;;  %v8546_v15 = vadd.f32 %v1906_v10, %v1535_v9  ;;  %v8548_v16 = vadd.f32 %v1910_v13, %v1539_v12 }
 0x794   : >> { %v1984_v17 = vpop.f32.mrb[32].mxu1 }
 0x795   : >> { %v6920_v18 = vadd.f32 %v8546_v15, %v1984_v17  ;;  %v1986_v22 = vpop.f32.mrb[33].mxu1  ;;  %v8551_v23 = vpop.f32.mrb[64].mxu0 }
 0x796   : >> { %v6922_v26 = vadd.f32 %v8548_v16, %v1986_v22  ;;  %v8554_v36 = vpop.f32.mrb[65].mxu0 }
 0x797   : >> { %v4907_v29 = vmul.f32 -1.442695, %v6920_v18 }
 0x798   : >> { %v4923_v63 = vmul.f32 -1.442695, %v6922_v26  ;;  %v1990_v32 = vpop.f32.mrb[34].mxu1 }
 0x799   : >> { %7192 = vpow2.f32 %v4907_v29  ;;  %v6924_v14 = vadd.f32 %v8546_v15, %v1990_v32  ;;  %v1992_v21 = vpop.f32.mrb[35].mxu1  ;;  %v8557_v34 = vpop.f32.mrb[66].mxu0 }
 0x79a   : >> { %7194 = vpow2.f32 %v4923_v63  ;;  %v6926_v43 = vadd.f32 %v8548_v16, %v1992_v21  ;;  %v8560_v50 = vpop.f32.mrb[67].mxu0 }
 0x79b   : >> { %v4908_v52 = vmul.f32 -1.442695, %v6924_v14 }
 0x79c   : >> { %v4924_v54 = vmul.f32 -1.442695, %v6926_v43  ;;  %v1996_v60 = vpop.f32.mrb[36].mxu1 }
 0x79d   : >> { %7196 = vpow2.f32 %v4908_v52  ;;  %v6928_v61 = vadd.f32 %v8546_v15, %v1996_v60  ;;  %v1998_v0 = vpop.f32.mrb[37].mxu1  ;;  %v8563_v2 = vpop.f32.mrb[68].mxu0 }
 0x79e   : >> { %7198 = vpow2.f32 %v4924_v54  ;;  %v6930_v4 = vadd.f32 %v8548_v16, %v1998_v0  ;;  %v8566_v9 = vpop.f32.mrb[69].mxu0 }
 0x79f   : >> { %v4909_v10 = vmul.f32 -1.442695, %v6928_v61 }
 0x7a0   : >> { %v4925_v12 = vmul.f32 -1.442695, %v6930_v4  ;;  %v2002_v13 = vpop.f32.mrb[38].mxu1 }
 0x7a1   : >> { %7200 = vpow2.f32 %v4909_v10  ;;  %v6932_v17 = vadd.f32 %v8546_v15, %v2002_v13  ;;  %v2004_v18 = vpop.f32.mrb[39].mxu1  ;;  %v8569_v22 = vpop.f32.mrb[70].mxu0 }
 0x7a2   : >> { %v6934_v26 = vadd.f32 %v8548_v16, %v2004_v18  ;;  %v8572_v29 = vpop.f32.mrb[71].mxu0  ;;  %7202 = vpow2.f32 %v4925_v12 }
 0x7a3   : >> { %v7193_v63 = vpop.eup %7192  ;;  %v4910_v32 = vmul.f32 -1.442695, %v6932_v17 }
 0x7a4   : >> { %v7195_v14 = vpop.eup %7194  ;;  %v2288_v21 = vadd.f32 1.0, %v7193_v63  ;;  %v4926_v43 = vmul.f32 -1.442695, %v6934_v26  ;;  %v2008_v52 = vpop.f32.mrb[40].mxu1 }
 0x7a5   : >> { %7204 = vpow2.f32 %v4910_v32  ;;  %v6936_v54 = vadd.f32 %v8546_v15, %v2008_v52  ;;  %v2010_v60 = vpop.f32.mrb[41].mxu1  ;;  %v8575_v61 = vpop.f32.mrb[72].mxu0  ;;  %v2400_v13 = vadd.f32 1.0, %v7195_v14  ;;  %v8588_v14 = vrot.slane %v8536_v11, %v8521_v62 }
 0x7a6   : >> { %7206 = vrcp.f32 %v2288_v21  ;;  %v6938_v0 = vadd.f32 %v8548_v16, %v2010_v60  ;;  %v8578_v4 = vpop.f32.mrb[73].mxu0 }
 0x7a7   : >> { %v7197_v10 = vpop.eup %7196  ;;  %v4911_v18 = vmul.f32 -1.442695, %v6936_v54  ;;  %7208 = vpow2.f32 %v4926_v43 }
 0x7a8   : >> { %v7199_v17 = vpop.eup %7198  ;;  %v2289_v8 = vadd.f32 1.0, %v7197_v10  ;;  %v4927_v12 = vmul.f32 -1.442695, %v6938_v0  ;;  %v2014_v26 = vpop.f32.mrb[42].mxu1 }
 0x7a9   : >> { %7210 = vpow2.f32 %v4911_v18  ;;  %v6940_v63 = vadd.f32 %v8546_v15, %v2014_v26  ;;  %v2016_v32 = vpop.f32.mrb[43].mxu1  ;;  %v8581_v52 = vpop.f32.mrb[74].mxu0  ;;  %v2401_v43 = vadd.f32 1.0, %v7199_v17  ;;  %v2146_v17 = vadd.f32 %v8554_v36, %v8588_v14 }
 0x7aa   : >> { %7212 = vrcp.f32 %v2289_v8  ;;  %v6942_v21 = vadd.f32 %v8548_v16, %v2016_v32  ;;  %v8584_v60 = vpop.f32.mrb[75].mxu0 }
 0x7ab   : >> { %v7201_v7 = vpop.eup %7200  ;;  %7214 = vrcp.f32 %v2400_v13  ;;  %v4912_v54 = vmul.f32 -1.442695, %v6940_v63 }
 0x7ac   : >> { %v2290_v0 = vadd.f32 1.0, %v7201_v7  ;;  %7216 = vpow2.f32 %v4927_v12  ;;  %v4928_v10 = vmul.f32 -1.442695, %v6942_v21  ;;  %v2020_v18 = vpop.f32.mrb[44].mxu1  ;;  %v7203_v32 = vpop.eup %7202 }
 0x7ad   : >> { %7218 = vpow2.f32 %v4912_v54  ;;  %v6944_v26 = vadd.f32 %v8546_v15, %v2020_v18  ;;  %v2022_v8 = vpop.f32.mrb[45].mxu1  ;;  %v8591_v53 = vpop.f32.mrb[76].mxu0  ;;  %v1775_v18 = vadd.f32 %v8480_v37, %v8525_v1  ;;  %v2402_v51 = vadd.f32 1.0, %v7203_v32 }
 0x7ae   : >> { %7220 = vrcp.f32 %v2290_v0  ;;  %v6946_v13 = vadd.f32 %v8548_v16, %v2022_v8  ;;  %v8594_v55 = vpop.f32.mrb[77].mxu0 }
 0x7af   : >> { %v7205_v11 = vpop.eup %7204  ;;  %7222 = vrcp.f32 %v2401_v43  ;;  %v4913_v7 = vmul.f32 -1.442695, %v6944_v26  ;;  %v2151_v26 = vadd.f32 %v8551_v23, %v8588_v14 }
 0x7b0   : >> { %v7207_v12 = vpop.eup %7206  ;;  %v2291_v63 = vadd.f32 1.0, %v7205_v11  ;;  %7224 = vpow2.f32 %v4928_v10  ;;  %v4929_v21 = vmul.f32 -1.442695, %v6946_v13  ;;  %v2026_v54 = vpop.f32.mrb[46].mxu1 }
 0x7b1   : >> { %v2448_v62 = vmul.f32 %v7207_v12, %v2146_v17  ;;  %7226 = vpow2.f32 %v4913_v7  ;;  %v6948_v0 = vadd.f32 %v8546_v15, %v2026_v54  ;;  %v2028_v8 = vpop.f32.mrb[47].mxu1  ;;  %v5902_v48 = vpop.f32.mrb[78].mxu0 }
 0x7b2   : >> { %v7209_v3 = vpop.eup %7208  ;;  %7228 = vrcp.f32 %v2291_v63  ;;  %v2215_v36 = vpop.f32.mrb[79].mxu0  ;;  %v6950_v13 = vadd.f32 %v8548_v16, %v2028_v8  ;;  %v8605_v12 = vadd.f32 %v5902_v48, %v8588_v14  ;;  %v1780_v63 = vadd.f32 %v8476_v56, %v8525_v1 }
 0x7b3   : >> { %v7211_v43 = vpop.eup %7210  ;;  %v2464_v10 = vadd.f32 %v2448_v62, %v1775_v18  ;;  %7230 = vpow2.f32 %v4929_v21  ;;  %v4914_v17 = vmul.f32 -1.442695, %v6948_v0  ;;  %v8608_v54 = vadd.f32 %v2215_v36, %v8588_v14  ;;  %v8614_v21 = vpop.permute.xlu0 %2610 }
 0x7b4   : >> { %v7213_v11 = vpop.eup %7212  ;;  %v2292_v37 = vadd.f32 1.0, %v7211_v43  ;;  %v2032_v7 = vpop.f32.mrb[48].mxu1  ;;  %9302 = vst [vmem:[#allocation60_spill] sm:$0xff] %v8605_v12  ;;  %v1790_v0 = vadd.f32 %v8483_v38, %v8525_v1  ;;  %v2403_v48 = vadd.f32 1.0, %v7209_v3  ;;  %v1785_v36 = vadd.f32 %v8486_v39, %v8525_v1 }
 0x7b5   : >> { %9303 = vst [vmem:[#allocation61_spill] sm:$0xff] %v8608_v54  ;;  %v8610_v32 = vpop.eup %7214  ;;  %7232 = vtanh.f32 %v2464_v10  ;;  %v2449_v62 = vmul.f32 %v7213_v11, %v2151_v26  ;;  %v2034_v23 = vpop.f32.mrb[49].mxu1  ;;  %v2156_v12 = vadd.f32 %v8560_v50, %v8588_v14  ;;  %v8624_v26 = vadd.f32 %v8489_v40, %v8525_v1 }
 0x7b6   : >> { %v7217_v18 = vpop.eup %7216  ;;  %7234 = vrcp.f32 %v2402_v51  ;;  %v4930_v11 = vmul.f32 -1.442695, %v6950_v13  ;;  %v8630_v3 = vadd.f32 %v8492_v41, %v8525_v1  ;;  %v8634_v39 = vadd.f32 %v8495_v42, %v8525_v1 }
 0x7b7   : >> { %v7219_v8 = vpop.eup %7218  ;;  %v2465_v43 = vadd.f32 %v2449_v62, %v1780_v63  ;;  %7236 = vrcp.f32 %v2292_v37  ;;  %v8638_v40 = vadd.f32 %v8498_v44, %v8525_v1  ;;  %v2404_v13 = vadd.f32 1.0, %v7217_v18  ;;  %v8644_v42 = vpop.permute.xlu0 %2613 }
 0x7b8   : >> { %v7221_v56 = vpop.eup %7220  ;;  %v2293_v10 = vadd.f32 1.0, %v7219_v8  ;;  %7238 = vpow2.f32 %v4914_v17  ;;  %v2038_v38 = vpop.f32.mrb[50].mxu1  ;;  %v6952_v17 = vadd.f32 %v8546_v15, %v2032_v7  ;;  %v2161_v41 = vadd.f32 %v8557_v34, %v8588_v14 }
 0x7b9   : >> { %v8626_v51 = vpop.eup %7222  ;;  %7240 = vtanh.f32 %v2465_v43  ;;  %v2450_v50 = vmul.f32 %v7221_v56, %v2156_v12  ;;  %v2040_v37 = vpop.f32.mrb[51].mxu1  ;;  %vm2657_vm0 = vcmp.eq.s32.totalorder %v8614_v21, 1  ;;  %v6956_v44 = vadd.f32 %v8546_v15, %v2038_v38 }
 0x7ba   : >> { %v7225_v63 = vpop.eup %7224  ;;  %7242 = vrcp.f32 %v2403_v48  ;;  %v2171_v7 = vadd.f32 %v8563_v2, %v8588_v14  ;;  %v2166_v34 = vadd.f32 %v8566_v9, %v8588_v14  ;;  %vm2658_vm1 = vcmp.eq.s32.totalorder %v8644_v42, 1  ;;  %v8655_v2 = vpop.permute.xlu1 %2616 }
 0x7bb   : >> { %v7227_v62 = vpop.eup %7226  ;;  %v2466_v8 = vadd.f32 %v2450_v50, %v1785_v36  ;;  %7244 = vrcp.f32 %v2293_v10  ;;  %v2405_v43 = vadd.f32 1.0, %v7225_v63  ;;  %v4915_v10 = vmul.f32 -1.442695, %v6952_v17 }
 0x7bc   : >> { %v7229_v12 = vpop.eup %7228  ;;  %v2294_v56 = vadd.f32 1.0, %v7227_v62  ;;  %7246 = vpow2.f32 %v4930_v11  ;;  %v2044_v48 = vpop.f32.mrb[52].mxu1  ;;  %v6954_v50 = vadd.f32 %v8548_v16, %v2034_v23  ;;  %v2496_v63 = vsub.f32 1.0, %v8610_v32 }
 0x7bd   : >> { %v7231_v18 = vpop.eup %7230  ;;  %7248 = vtanh.f32 %v2466_v8  ;;  %v2451_v5 = vmul.f32 %v7229_v12, %v2161_v41  ;;  %v2046_v36 = vpop.f32.mrb[53].mxu1  ;;  %v6960_v8 = vadd.f32 %v8546_v15, %v2044_v48  ;;  %v4916_v9 = vmul.f32 -1.442695, %v6956_v44 }
 0x7be   : >> { %7250 = vrcp.f32 %v2404_v13  ;;  %v2406_v62 = vadd.f32 1.0, %v7231_v18  ;;  %v2528_v23 = vmul.f32 %v8610_v32, %v8414_v19  ;;  %v2176_v54 = vadd.f32 %v8572_v29, %v8588_v14 }
 0x7bf   : >> { %v7233_v11 = vpop.eup %7232  ;;  %v2467_v38 = vadd.f32 %v2451_v5, %v1790_v0  ;;  %7252 = vrcp.f32 %v2294_v56  ;;  %v6958_v5 = vadd.f32 %v8548_v16, %v2040_v37  ;;  %v2497_v56 = vsub.f32 1.0, %v8626_v51 }
 0x7c0   : >> { %v7235_v41 = vpop.eup %7234  ;;  %7254 = vrcp.f32 %v2405_v43  ;;  %v2050_v12 = vpop.f32.mrb[54].mxu1  ;;  %v2512_v13 = vmul.f32 %v7233_v11, %v2496_v63  ;;  %vm2659_vm2 = vcmp.eq.s32.totalorder %v8655_v2, 1  ;;  %v4931_v44 = vmul.f32 -1.442695, %v6954_v50 }
 0x7c1   : >> { %v7237_v17 = vpop.eup %7236  ;;  %7256 = vtanh.f32 %v2467_v38  ;;  %v2052_v0 = vpop.f32.mrb[55].mxu1  ;;  %v4917_v32 = vmul.f32 -1.442695, %v6960_v8  ;;  %v6962_v11 = vadd.f32 %v8548_v16, %v2046_v36  ;;  %v6964_v37 = vadd.f32 %v8546_v15, %v2050_v12 }
 0x7c2   : >> { %v7239_v48 = vpop.eup %7238  ;;  %v2452_v43 = vmul.f32 %v7237_v17, %v2166_v34  ;;  %7258 = vpow2.f32 %v4915_v10  ;;  %v2544_v18 = vadd.f32 %v2528_v23, %v2512_v13  ;;  %v4932_v13 = vmul.f32 -1.442695, %v6958_v5  ;;  %v8673_v23 = vpop.permute.xlu1 %2619 }
 0x7c3   : >> { %v7241_v63 = vpop.eup %7240  ;;  %7260 = vrcp.f32 %v2406_v62  ;;  %v2295_v19 = vadd.f32 1.0, %v7239_v48  ;;  %v2529_v36 = vmul.f32 %v8626_v51, %v8416_v20  ;;  %v2498_v12 = vsub.f32 1.0, %v7235_v41 }
 0x7c4   : >> { %v8665_v38 = vpop.eup %7242  ;;  %v2468_v29 = vadd.f32 %v2452_v43, %v8630_v3  ;;  %7262 = vpow2.f32 %v4916_v9  ;;  %v2673_v34 = vsel %vm2657_vm0, %v2544_v18, %v7352_v28  ;;  %v2056_v10 = vpop.f32.mrb[56].mxu1  ;;  %v2513_v8 = vmul.f32 %v7241_v63, %v2497_v56 }
 0x7c5   : >> { %v7245_v50 = vpop.eup %7244  ;;  %7264 = vrcp.f32 %v2295_v19  ;;  %2689 = vst [vmem:[#allocation26] sm:$0xff] %v2673_v34  ;;  %v2058_v62 = vpop.f32.mrb[57].mxu1  ;;  %v2530_v17 = vmul.f32 %v7235_v41, %v8422_v24  ;;  %vm2660_vm3 = vcmp.eq.s32.totalorder %v8673_v23, 1  ;;  %v4933_v21 = vmul.f32 -1.442695, %v6962_v11  ;;  %v7353_v41 = vld [vmem:[#allocation26 + $0x8] sm:$0xff] }
 0x7c6   : >> { %v7247_v3 = vpop.eup %7246  ;;  %7266 = vtanh.f32 %v2468_v29  ;;  %v2453_v9 = vmul.f32 %v7245_v50, %v2171_v7  ;;  %v6966_v5 = vadd.f32 %v8548_v16, %v2052_v0  ;;  %v2545_v48 = vadd.f32 %v2529_v36, %v2513_v8  ;;  %v8683_v0 = vpop.permute.xlu0 %2622  ;;  %v7354_v8 = vld [vmem:[#allocation26 + $0x10] sm:$0xff] }
 0x7c7   : >> { %v7249_v28 = vpop.eup %7248  ;;  %7268 = vpow2.f32 %v4931_v44  ;;  %v4918_v20 = vmul.f32 -1.442695, %v6964_v37  ;;  %v2181_v7 = vadd.f32 %v8569_v22, %v8588_v14  ;;  %v2407_v24 = vadd.f32 1.0, %v7247_v3 }
 0x7c8   : >> { %v7251_v56 = vpop.eup %7250  ;;  %v2469_v43 = vadd.f32 %v2453_v9, %v8624_v26  ;;  %7270 = vpow2.f32 %v4917_v32  ;;  %v2514_v51 = vmul.f32 %v7249_v28, %v2498_v12  ;;  %v2062_v18 = vpop.f32.mrb[58].mxu1  ;;  %v2674_v44 = vsel %vm2658_vm1, %v2545_v48, %v7353_v41 }
 0x7c9   : >> { %v7253_v63 = vpop.eup %7252  ;;  %7272 = vpow2.f32 %v4932_v13  ;;  %v2064_v19 = vpop.f32.mrb[59].mxu1  ;;  %v6968_v32 = vadd.f32 %v8546_v15, %v2056_v10  ;;  %2690 = vst [vmem:[#allocation26 + $0x8] sm:$0xff] %v2674_v44  ;;  %vm2661_vm4 = vcmp.eq.s32.totalorder %v8683_v0, 1  ;;  %v4934_v37 = vmul.f32 -1.442695, %v6966_v5  ;;  %v7355_v44 = vld [vmem:[#allocation26 + $0x18] sm:$0xff] }
 0x7ca   : >> { %v8685_v11 = vpop.eup %7254  ;;  %7274 = vtanh.f32 %v2469_v43  ;;  %v2454_v26 = vmul.f32 %v7253_v63, %v2176_v54  ;;  %v2546_v29 = vadd.f32 %v2530_v17, %v2514_v51  ;;  %v2499_v34 = vsub.f32 1.0, %v8665_v38 }
 0x7cb   : >> { %v7257_v22 = vpop.eup %7256  ;;  %7276 = vpow2.f32 %v4933_v21  ;;  %v2531_v42 = vmul.f32 %v8665_v38, %v8424_v25  ;;  %v6970_v54 = vadd.f32 %v8548_v16, %v2058_v62  ;;  %v2500_v62 = vsub.f32 1.0, %v7251_v56 }
 0x7cc   : >> { %v7259_v50 = vpop.eup %7258  ;;  %v2470_v13 = vadd.f32 %v2454_v26, %v8638_v40  ;;  %7278 = vpow2.f32 %v4918_v20  ;;  %v2675_v10 = vsel %vm2659_vm2, %v2546_v29, %v7354_v8  ;;  %v2068_v36 = vpop.f32.mrb[60].mxu1  ;;  %v2515_v12 = vmul.f32 %v7257_v22, %v2499_v34 }
 0x7cd   : >> { %v8696_v3 = vpop.eup %7260  ;;  %7280 = vrcp.f32 %v2407_v24  ;;  %v2296_v9 = vadd.f32 1.0, %v7259_v50  ;;  %2691 = vst [vmem:[#allocation26 + $0x10] sm:$0xff] %v2675_v10  ;;  %v6976_v17 = vadd.f32 %v8546_v15, %v2068_v36  ;;  %v2070_v25 = vpop.f32.mrb[61].mxu1  ;;  %v4919_v40 = vmul.f32 -1.442695, %v6968_v32 }
 0x7ce   : >> { %v7263_v38 = vpop.eup %7262  ;;  %7282 = vtanh.f32 %v2470_v13  ;;  %v8700_v28 = vadd.f32 %v8548_v16, %v2070_v25  ;;  %v6972_v5 = vadd.f32 %v8546_v15, %v2062_v18  ;;  %v2547_v48 = vadd.f32 %v2531_v42, %v2515_v12  ;;  %v2626_v36 = vpop.permute.xlu1 %2625 }
 0x7cf   : >> { %v7265_v21 = vpop.eup %7264  ;;  %7284 = vrcp.f32 %v2296_v9  ;;  %v2297_v2 = vadd.f32 1.0, %v7263_v38  ;;  %v4935_v51 = vmul.f32 -1.442695, %v6970_v54  ;;  %v2532_v63 = vmul.f32 %v7251_v56, %v8432_v57  ;;  %v7356_v9 = vld [vmem:[#allocation26 + $0x20] sm:$0xff] }
 0x7d0   : >> { %v7267_v43 = vpop.eup %7266  ;;  %v2455_v20 = vmul.f32 %v7265_v21, %v2181_v7  ;;  %7286 = vpow2.f32 %v4934_v37  ;;  %v2074_v24 = vpop.f32.mrb[62].mxu1  ;;  %v2676_v26 = vsel %vm2660_vm3, %v2547_v48, %v7355_v44  ;;  %v2501_v7 = vsub.f32 1.0, %v8685_v11  ;;  %v7357_v48 = vld [vmem:[#allocation26 + $0x28] sm:$0xff] }
 0x7d1   : >> { %v7269_v41 = vpop.eup %7268  ;;  %7288 = vrcp.f32 %v2297_v2  ;;  %v2516_v32 = vmul.f32 %v7267_v43, %v2500_v62  ;;  %v8707_v29 = vadd.f32 %v8546_v15, %v2074_v24  ;;  %v2076_v22 = vpop.f32.mrb[63].mxu1  ;;  %2692 = vst [vmem:[#allocation26 + $0x18] sm:$0xff] %v2676_v26  ;;  %v4920_v42 = vmul.f32 -1.442695, %v6972_v5 }
 0x7d2   : >> { %v7271_v18 = vpop.eup %7270  ;;  %v2471_v34 = vadd.f32 %v2455_v20, %v8634_v39  ;;  %7290 = vpow2.f32 %v4919_v40  ;;  %v8712_v57 = vadd.f32 %v8548_v16, %v2076_v22  ;;  %v6974_v23 = vadd.f32 %v8548_v16, %v2064_v19 }
 0x7d3   : >> { %v7273_v56 = vpop.eup %7272  ;;  %v2298_v37 = vadd.f32 1.0, %v7271_v18  ;;  %v2548_v50 = vadd.f32 %v2532_v63, %v2516_v32  ;;  %v1815_v15 = vadd.f32 %v8504_v46, %v8525_v1  ;;  %v2408_v54 = vadd.f32 1.0, %v7269_v41 }
 0x7d4   : >> { %v7275_v13 = vpop.eup %7274  ;;  %7292 = vtanh.f32 %v2471_v34  ;;  %v2533_v10 = vmul.f32 %v8685_v11, %v8429_v27  ;;  %v2409_v16 = vadd.f32 1.0, %v7273_v56  ;;  %vm2662_vm5 = vcmp.eq.s32.totalorder %v2626_v36, 1  ;;  %v7358_v34 = vld [vmem:[#allocation26 + $0x30] sm:$0xff] }
 0x7d5   : >> { %v7277_v39 = vpop.eup %7276  ;;  %7294 = vpow2.f32 %v4935_v51  ;;  %v2517_v8 = vmul.f32 %v7275_v13, %v2501_v7  ;;  %v2677_v12 = vsel %vm2661_vm4, %v2548_v50, %v7356_v9  ;;  %v2502_v46 = vsub.f32 1.0, %v8696_v3  ;;  %v2629_v51 = vpop.permute.xlu0 %2628 }
 0x7d6   : >> { %v7279_v25 = vpop.eup %7278  ;;  %7296 = vrcp.f32 %v2298_v37  ;;  %2693 = vst [vmem:[#allocation26 + $0x20] sm:$0xff] %v2677_v12  ;;  %v4936_v40 = vmul.f32 -1.442695, %v6974_v23  ;;  %v2186_v27 = vadd.f32 %v8578_v4, %v8588_v14  ;;  %v4921_v11 = vmul.f32 -1.442695, %v6976_v17 }
 0x7d7   : >> { %v7281_v19 = vpop.eup %7280  ;;  %v2299_v38 = vadd.f32 1.0, %v7279_v25  ;;  %7298 = vpow2.f32 %v4920_v42  ;;  %v2549_v62 = vadd.f32 %v2533_v10, %v2517_v8  ;;  %v2534_v0 = vmul.f32 %v8696_v3, %v8440_v31  ;;  %v7359_v25 = vld [vmem:[#allocation26 + $0x38] sm:$0xff] }
 0x7d8   : >> { %v7283_v21 = vpop.eup %7282  ;;  %7300 = vrcp.f32 %v2408_v54  ;;  %v2410_v5 = vadd.f32 1.0, %v7277_v39  ;;  %v2191_v24 = vadd.f32 %v8575_v61, %v8588_v14  ;;  %vm2663_vm6 = vcmp.eq.s32.totalorder %v2629_v51, 1 }
 0x7d9   : >> { %v7285_v2 = vpop.eup %7284  ;;  %7302 = vrcp.f32 %v2299_v38  ;;  %v2678_v43 = vsel %vm2662_vm5, %v2549_v62, %v7357_v48  ;;  %v2518_v20 = vmul.f32 %v7283_v21, %v2502_v46  ;;  %v1820_v31 = vadd.f32 %v8501_v45, %v8525_v1  ;;  %v2635_v51 = vpop.permute.xlu0 %2634 }
 0x7da   : >> { %v7287_v63 = vpop.eup %7286  ;;  %v2456_v41 = vmul.f32 %v7285_v2, %v2186_v27  ;;  %7304 = vrcp.f32 %v2409_v16  ;;  %2694 = vst [vmem:[#allocation26 + $0x28] sm:$0xff] %v2678_v43  ;;  %v2503_v32 = vsub.f32 1.0, %v7281_v19  ;;  %v2196_v37 = vadd.f32 %v8584_v60, %v8588_v14 }
 0x7db   : >> { %v7289_v4 = vpop.eup %7288  ;;  %7306 = vpow2.f32 %v4936_v40  ;;  %v2550_v3 = vadd.f32 %v2534_v0, %v2518_v20  ;;  %v2411_v22 = vadd.f32 1.0, %v7287_v63  ;;  %v4922_v45 = vmul.f32 -1.442695, %v8707_v29 }
 0x7dc   : >> { %v7291_v17 = vpop.eup %7290  ;;  %v2472_v44 = vadd.f32 %v2456_v41, %v1815_v15  ;;  %v2457_v26 = vmul.f32 %v7289_v4, %v2191_v24  ;;  %7308 = vpow2.f32 %v4921_v11  ;;  %v4937_v23 = vmul.f32 -1.442695, %v8700_v28  ;;  %v2632_v15 = vpop.permute.xlu1 %2631 }
 0x7dd   : >> { %7310 = vrcp.f32 %v2410_v5  ;;  %v2300_v18 = vadd.f32 1.0, %v7291_v17  ;;  %v2679_v61 = vsel %vm2663_vm6, %v2550_v3, %v7358_v34  ;;  %v2535_v13 = vmul.f32 %v7281_v19, %v8438_v30 }
 0x7de   : >> { %v7293_v7 = vpop.eup %7292  ;;  %7312 = vtanh.f32 %v2472_v44  ;;  %v2473_v56 = vadd.f32 %v2457_v26, %v1820_v31  ;;  %2695 = vst [vmem:[#allocation26 + $0x30] sm:$0xff] %v2679_v61  ;;  %vm2664_vm7 = vcmp.eq.s32.totalorder %v2632_v15, 1  ;;  %v1825_v8 = vadd.f32 %v8510_v49, %v8525_v1 }
 0x7df   : >> { %v7295_v42 = vpop.eup %7294  ;;  %7314 = vrcp.f32 %v2300_v18  ;;  %v2519_v50 = vmul.f32 %v7293_v7, %v2503_v32  ;;  %v2201_v36 = vadd.f32 %v8581_v52, %v8588_v14  ;;  %v1830_v19 = vadd.f32 %v8507_v47, %v8525_v1  ;;  %v7360_v18 = vld [vmem:[#allocation26 + $0x40] sm:$0xff] }
 0x7e0   : >> { %v7297_v54 = vpop.eup %7296  ;;  %7316 = vtanh.f32 %v2473_v56  ;;  %v2412_v30 = vadd.f32 1.0, %v7295_v42  ;;  %v4938_v40 = vmul.f32 -1.442695, %v8712_v57  ;;  %v2206_v2 = vadd.f32 %v8594_v55, %v8588_v14 }
 0x7e1   : >> { %v7299_v39 = vpop.eup %7298  ;;  %v2458_v10 = vmul.f32 %v7297_v54, %v2196_v37  ;;  %7318 = vrcp.f32 %v2411_v22  ;;  %v2551_v60 = vadd.f32 %v2535_v13, %v2519_v50  ;;  %v1835_v63 = vadd.f32 %v8516_v59, %v8525_v1  ;;  %v2638_v22 = vpop.permute.xlu1 %2637 }
 0x7e2   : >> { %v7301_v29 = vpop.eup %7300  ;;  %v2301_v9 = vadd.f32 1.0, %v7299_v39  ;;  %7320 = vpow2.f32 %v4922_v45  ;;  %vm2665_vm8 = vcmp.eq.s32.totalorder %v2635_v51, 1  ;;  %vm2666_vm9 = vcmp.eq.s32.totalorder %v2638_v22, 1  ;;  %v2641_v39 = vpop.permute.xlu0 %2640  ;;  %v7364_v51 = vld [vmem:[#allocation26 + $0x60] sm:$0xff]  ;;  %v9311_v22 = vld [vmem:[#allocation54_spill] sm:$0xff] }
 0x7e3   : >> { %v7303_v28 = vpop.eup %7302  ;;  %v2474_v12 = vadd.f32 %v2458_v10, %v1825_v8  ;;  %7322 = vpow2.f32 %v4937_v23  ;;  %v2680_v16 = vsel %vm2664_vm7, %v2551_v60, %v7359_v25  ;;  %v2504_v11 = vsub.f32 1.0, %v7301_v29  ;;  %v9304_v60 = vld [vmem:[#allocation50_spill] sm:$0xff] }
 0x7e4   : >> { %v7305_v46 = vpop.eup %7304  ;;  %v2459_v49 = vmul.f32 %v7303_v28, %v2201_v36  ;;  %7324 = vrcp.f32 %v2301_v9  ;;  %2696 = vst [vmem:[#allocation26 + $0x38] sm:$0xff] %v2680_v16  ;;  %v2536_v47 = vmul.f32 %v7301_v29, %v8448_v33  ;;  %v2211_v33 = vadd.f32 %v8591_v53, %v8588_v14  ;;  %v7361_v53 = vld [vmem:[#allocation26 + $0x48] sm:$0xff]  ;;  %v7362_v29 = vld [vmem:[#allocation26 + $0x50] sm:$0xff]  ;;  %v9305_v9 = vld [vmem:[#allocation61_spill] sm:$0xff] }
 0x7e5   : >> { %v7307_v38 = vpop.eup %7306  ;;  %7326 = vtanh.f32 %v2474_v12  ;;  %v2505_v43 = vsub.f32 1.0, %v7305_v46  ;;  %v2537_v31 = vmul.f32 %v7305_v46, %v8446_v6  ;;  %v1840_v6 = vadd.f32 %v8513_v58, %v8525_v1  ;;  %v2644_v12 = vpop.permute.xlu1 %2643  ;;  %v9306_v16 = vld [vmem:[#allocation57_spill] sm:$0xff] }
 0x7e6   : >> { %v7309_v52 = vpop.eup %7308  ;;  %v2475_v62 = vadd.f32 %v2459_v49, %v1830_v19  ;;  %7328 = vrcp.f32 %v2412_v30  ;;  %v2413_v48 = vadd.f32 1.0, %v7307_v38  ;;  %vm2667_vm10 = vcmp.eq.s32.totalorder %v2641_v39, 1  ;;  %v7363_v19 = vld [vmem:[#allocation26 + $0x58] sm:$0xff] }
 0x7e7   : >> { %v7311_v21 = vpop.eup %7310  ;;  %v2302_v27 = vadd.f32 1.0, %v7309_v52  ;;  %vm2668_vm11 = vcmp.eq.s32.totalorder %v2644_v12, 1 }
 0x7e8   : >> { %v7313_v0 = vpop.eup %7312  ;;  %7330 = vtanh.f32 %v2475_v62  ;;  %v2506_v61 = vsub.f32 1.0, %v7311_v21  ;;  %v2538_v45 = vmul.f32 %v7311_v21, %v8456_v35  ;;  %v9307_v21 = vld [vmem:[#allocation52_spill] sm:$0xff] }
 0x7e9   : >> { %v7315_v5 = vpop.eup %7314  ;;  %7332 = vpow2.f32 %v4938_v40  ;;  %v2520_v20 = vmul.f32 %v7313_v0, %v2504_v11  ;;  %v9308_v11 = vld [vmem:[#allocation60_spill] sm:$0xff] }
 0x7ea   : >> { %v7317_v57 = vpop.eup %7316  ;;  %v2460_v24 = vmul.f32 %v7315_v5, %v2206_v2  ;;  %7334 = vrcp.f32 %v2302_v27  ;;  %v9309_v5 = vld [vmem:[#allocation56_spill] sm:$0xff] }
 0x7eb   : >> { %v7319_v41 = vpop.eup %7318  ;;  %v2521_v4 = vmul.f32 %v7317_v57, %v2505_v43  ;;  %v2552_v55 = vadd.f32 %v2536_v47, %v2520_v20  ;;  %7336 = vrcp.f32 %v2413_v48  ;;  %v2647_v47 = vpop.permute.xlu0 %2646 }
 0x7ec   : >> { %v7321_v3 = vpop.eup %7320  ;;  %v2476_v17 = vadd.f32 %v2460_v24, %v1835_v63  ;;  %v2507_v13 = vsub.f32 1.0, %v7319_v41  ;;  %v2539_v58 = vmul.f32 %v7319_v41, %v9304_v60  ;;  %vm2669_vm12 = vcmp.eq.s32.totalorder %v2647_v47, 1  ;;  %v9310_v24 = vld [vmem:[#allocation51_spill] sm:$0xff] }
 0x7ed   : >> { %v7323_v44 = vpop.eup %7322  ;;  %v2303_v26 = vadd.f32 1.0, %v7321_v3  ;;  %v2553_v32 = vadd.f32 %v2537_v31, %v2521_v4  ;;  %v2681_v59 = vsel %vm2665_vm8, %v2552_v55, %v7360_v18  ;;  %v2650_v55 = vpop.permute.xlu1 %2649  ;;  %v7365_v3 = vld [vmem:[#allocation26 + $0x68] sm:$0xff] }
 0x7ee   : >> { %v7325_v34 = vpop.eup %7324  ;;  %7338 = vtanh.f32 %v2476_v17  ;;  %2697 = vst [vmem:[#allocation26 + $0x40] sm:$0xff] %v2681_v59  ;;  %v2414_v50 = vadd.f32 1.0, %v7323_v44  ;;  %vm2670_vm13 = vcmp.eq.s32.totalorder %v2650_v55, 1 }
 0x7ef   : >> { %v7327_v7 = vpop.eup %7326  ;;  %v2461_v56 = vmul.f32 %v7325_v34, %v2211_v33  ;;  %7340 = vrcp.f32 %v2303_v26  ;;  %v2682_v14 = vsel %vm2666_vm9, %v2553_v32, %v7361_v53  ;;  %v2653_v59 = vpop.permute.xlu0 %2652 }
 0x7f0   : >> { %2698 = vst [vmem:[#allocation26 + $0x48] sm:$0xff] %v2682_v14  ;;  %v2522_v37 = vmul.f32 %v7327_v7, %v2506_v61  ;;  %v7329_v42 = vpop.eup %7328  ;;  %vm2671_vm14 = vcmp.eq.s32.totalorder %v2653_v59, 1  ;;  %v9312_v14 = vld [vmem:[#allocation53_spill] sm:$0xff] }
 0x7f1   : >> { %v2477_v23 = vadd.f32 %v2461_v56, %v1840_v6  ;;  %v2508_v38 = vsub.f32 1.0, %v7329_v42  ;;  %v2540_v27 = vmul.f32 %v7329_v42, %v9307_v21  ;;  %v7366_v6 = vld [vmem:[#allocation26 + $0x70] sm:$0xff] }
 0x7f2   : >> { %v7331_v15 = vpop.eup %7330  ;;  %v2554_v54 = vadd.f32 %v2538_v45, %v2522_v37  ;;  %v2656_v45 = vpop.permute.xlu1 %2655 }
 0x7f3   : >> { %v7333_v8 = vpop.eup %7332  ;;  %7342 = vtanh.f32 %v2477_v23  ;;  %v2523_v10 = vmul.f32 %v7331_v15, %v2507_v13  ;;  %vm2672_vm15 = vcmp.eq.s32.totalorder %v2656_v45, 1  ;;  %v7367_v23 = vld [vmem:[#allocation26 + $0x78] sm:$0xff] }
 0x7f4   : >> { %v7335_v1 = vpop.eup %7334  ;;  %v2683_v36 = vsel %vm2667_vm10, %v2554_v54, %v7362_v29  ;;  %7344 = vrcp.f32 %v2414_v50  ;;  %v2415_v30 = vadd.f32 1.0, %v7333_v8 }
 0x7f5   : >> { %v2462_v28 = vmul.f32 %v7335_v1, %v9305_v9  ;;  %v2555_v35 = vadd.f32 %v2539_v58, %v2523_v10  ;;  %2699 = vst [vmem:[#allocation26 + $0x50] sm:$0xff] %v2683_v36  ;;  %v7337_v25 = vpop.eup %7336 }
 0x7f6   : >> { %v2509_v43 = vsub.f32 1.0, %v7337_v25  ;;  %v2541_v41 = vmul.f32 %v7337_v25, %v9310_v24 }
 0x7f7   : >> { %v2478_v46 = vadd.f32 %v2462_v28, %v9306_v16  ;;  %v2684_v49 = vsel %vm2668_vm11, %v2555_v35, %v7363_v19 }
 0x7f8   : >> { %v7339_v40 = vpop.eup %7338  ;;  %2700 = vst [vmem:[#allocation26 + $0x58] sm:$0xff] %v2684_v49 }
 0x7f9   : >> { %v7341_v52 = vpop.eup %7340  ;;  %7346 = vtanh.f32 %v2478_v46  ;;  %v2524_v62 = vmul.f32 %v7339_v40, %v2508_v38 }
 0x7fa   : >> { %v2463_v0 = vmul.f32 %v7341_v52, %v9308_v11  ;;  %7348 = vrcp.f32 %v2415_v30 }
 0x7fb   : >> { %v2556_v2 = vadd.f32 %v2540_v27, %v2524_v62 }
 0x7fc   : >> { %v2479_v48 = vadd.f32 %v2463_v0, %v9309_v5 }
 0x7fd   : >> { %v7343_v20 = vpop.eup %7342  ;;  %v2685_v57 = vsel %vm2669_vm12, %v2556_v2, %v7364_v51 }
 0x7fe   : >> { %7350 = vtanh.f32 %v2479_v48  ;;  %v2525_v63 = vmul.f32 %v7343_v20, %v2509_v43  ;;  %2701 = vst [vmem:[#allocation26 + $0x60] sm:$0xff] %v2685_v57  ;;  %v7345_v4 = vpop.eup %7344 }
 0x7ff   : >> { %v2510_v17 = vsub.f32 1.0, %v7345_v4  ;;  %v2542_v18 = vmul.f32 %v7345_v4, %v9311_v22 }
 0x800   : >> { %v2557_v31 = vadd.f32 %v2541_v41, %v2525_v63 }
 0x802   : >> { %v2686_v33 = vsel %vm2670_vm13, %v2557_v31, %v7365_v3 }
 0x803   : >> { %v7347_v44 = vpop.eup %7346  ;;  %2702 = vst [vmem:[#allocation26 + $0x68] sm:$0xff] %v2686_v33 }
 0x804   : >> { %v7349_v26 = vpop.eup %7348  ;;  %v2526_v32 = vmul.f32 %v7347_v44, %v2510_v17 }
 0x805   : >> { %v2511_v61 = vsub.f32 1.0, %v7349_v26  ;;  %v2543_v37 = vmul.f32 %v7349_v26, %v9312_v14 }
 0x806   : >> { %v2558_v34 = vadd.f32 %v2542_v18, %v2526_v32 }
 0x808   : >> { %v7351_v7 = vpop.eup %7350  ;;  %v2687_v56 = vsel %vm2671_vm14, %v2558_v34, %v7366_v6  ;;  %583 = sbr.rel (!%p581_p1) target bundleno = 580 (0x244), region = 256 }
 0x809   : >> { %v2527_v53 = vmul.f32 %v7351_v7, %v2511_v61  ;;  %2703 = vst [vmem:[#allocation26 + $0x70] sm:$0xff] %v2687_v56 }
 0x80b   : >> { %v2559_v42 = vadd.f32 %v2543_v37, %v2527_v53 }
 0x80d   : >> { %v2688_v50 = vsel %vm2672_vm15, %v2559_v42, %v7367_v23 }
 0x80e   : >> { %2704 = vst [vmem:[#allocation26 + $0x78] sm:$0xff] %v2688_v50 }
 0x80f LB: >> { %v2743_v13 = vld [vmem:[#allocation12] sm:$0xff]  ;;  %v2744_v15 = vld [vmem:[#allocation12 + $0x8] sm:$0xff]  ;;  %v2745_v54 = vld [vmem:[#allocation12 + $0x10] sm:$0xff]  ;;  %s9313_s18 = sld [smem:[#allocation43_spill]]  ;;  %s9314_s24 = sld [smem:[#allocation44_spill]]  ;;  %s7916_s16 = sphi %s8766_s16, %s2710_s16  }
 0x810   : >> { %v6615_v39 = vpack.c.bf16 %v2744_v15, %v2743_v13  ;;  %v2746_v8 = vld [vmem:[#allocation12 + $0x18] sm:$0xff]  ;;  %v2747_v60 = vld [vmem:[#allocation12 + $0x20] sm:$0xff]  ;;  %v2748_v58 = vld [vmem:[#allocation12 + $0x28] sm:$0xff]  ;;  %s9315_s22 = sld [smem:[#allocation45_spill]]  ;;  %s9316_s20 = sld [smem:[#allocation38_spill]] }
 0x811   : >> { %v6619_v10 = vpack.c.bf16 %v2746_v8, %v2745_v54  ;;  %v6623_v1 = vpack.c.bf16 %v2748_v58, %v2747_v60  ;;  %v2711_v29 = vld [vmem:[#allocation26] sm:$0xff]  ;;  %v2749_v36 = vld [vmem:[#allocation12 + $0x30] sm:$0xff]  ;;  %v2750_v9 = vld [vmem:[#allocation12 + $0x38] sm:$0xff]  ;;  %s9317_s30 = sld [smem:[#allocation46_spill]]  ;;  %s9323_s23 = sld [smem:[#allocation49_spill]] }
 0x812   : >> { %6616 = vmatprep.subr.bf16.mxu0 %v6615_v39  ;;  %5935 = vmatprep.mubr.f32.mxu0 %v2711_v29  ;;  %v6627_v28 = vpack.c.bf16 %v2750_v9, %v2749_v36  ;;  %v2751_v35 = vld [vmem:[#allocation12 + $0x40] sm:$0xff]  ;;  %v2752_v12 = vld [vmem:[#allocation12 + $0x48] sm:$0xff]  ;;  %v2762_v16 = vld [vmem:[#allocation14 + $0x10] sm:$0xff] }
 0x813   : >> { %6618 = vmatpush3.bf16.msra.mxu0 %v6615_v39  ;;  %v2760_v30 = vld [vmem:[#allocation14] sm:$0xff]  ;;  %v2761_v25 = vld [vmem:[#allocation14 + $0x8] sm:$0xff]  ;;  %v2763_v46 = vld [vmem:[#allocation14 + $0x18] sm:$0xff]  ;;  %v6631_v38 = vpack.c.bf16 %v2752_v12, %v2751_v35 }
 0x814   : >> { %6620 = vmatprep.subr.bf16.mxu0 %v6619_v10  ;;  %v6647_v19 = vpack.c.bf16 %v2761_v25, %v2760_v30  ;;  %v6651_v49 = vpack.c.bf16 %v2763_v46, %v2762_v16  ;;  %v2764_v40 = vld [vmem:[#allocation14 + $0x20] sm:$0xff]  ;;  %v2765_v52 = vld [vmem:[#allocation14 + $0x28] sm:$0xff]  ;;  %v2753_v62 = vld [vmem:[#allocation12 + $0x50] sm:$0xff] }
 0x815   : >> { %v2754_v21 = vld [vmem:[#allocation12 + $0x58] sm:$0xff]  ;;  %v6655_v27 = vpack.c.bf16 %v2765_v52, %v2764_v40  ;;  %v2766_v0 = vld [vmem:[#allocation14 + $0x30] sm:$0xff]  ;;  %v2755_v47 = vld [vmem:[#allocation12 + $0x60] sm:$0xff] }
 0x816   : >> { %6648 = vmatprep.subr.bf16.mxu1 %v6647_v19  ;;  %v6635_v11 = vpack.c.bf16 %v2754_v21, %v2753_v62  ;;  %v2767_v2 = vld [vmem:[#allocation14 + $0x38] sm:$0xff]  ;;  %v2756_v5 = vld [vmem:[#allocation12 + $0x68] sm:$0xff]  ;;  %v2768_v20 = vld [vmem:[#allocation14 + $0x40] sm:$0xff] }
 0x817   : >> { %6622 = vmatpush3.bf16.msra.mxu0 %v6619_v10  ;;  %6650 = vmatpush3.bf16.msra.mxu1 %v6647_v19  ;;  %v6659_v48 = vpack.c.bf16 %v2767_v2, %v2766_v0  ;;  %v6639_v43 = vpack.c.bf16 %v2756_v5, %v2755_v47  ;;  %v2769_v51 = vld [vmem:[#allocation14 + $0x48] sm:$0xff]  ;;  %v2757_v57 = vld [vmem:[#allocation12 + $0x70] sm:$0xff]  ;;  %v2758_v63 = vld [vmem:[#allocation12 + $0x78] sm:$0xff] }
 0x818   : >> { %6624 = vmatprep.subr.bf16.mxu0 %v6623_v1  ;;  %6652 = vmatprep.subr.bf16.mxu1 %v6651_v49  ;;  %v6663_v24 = vpack.c.bf16 %v2769_v51, %v2768_v20  ;;  %v6643_v41 = vpack.c.bf16 %v2758_v63, %v2757_v57  ;;  %v2770_v4 = vld [vmem:[#allocation14 + $0x50] sm:$0xff]  ;;  %v2771_v31 = vld [vmem:[#allocation14 + $0x58] sm:$0xff]  ;;  %v2772_v3 = vld [vmem:[#allocation14 + $0x60] sm:$0xff] }
 0x819   : >> { %v6667_v55 = vpack.c.bf16 %v2771_v31, %v2770_v4  ;;  %v2773_v33 = vld [vmem:[#allocation14 + $0x68] sm:$0xff]  ;;  %v2713_v26 = vld [vmem:[#allocation26 + $0x10] sm:$0xff]  ;;  %v2714_v32 = vld [vmem:[#allocation26 + $0x18] sm:$0xff] }
 0x81a   : >> { %v2712_v17 = vld [vmem:[#allocation26 + $0x8] sm:$0xff]  ;;  %v6671_v44 = vpack.c.bf16 %v2773_v33, %v2772_v3  ;;  %v2715_v22 = vld [vmem:[#allocation26 + $0x20] sm:$0xff]  ;;  %v2717_v59 = vld [vmem:[#allocation26 + $0x30] sm:$0xff] }
 0x81b   : >> { %6626 = vmatpush3.bf16.msra.mxu0 %v6623_v1  ;;  %6654 = vmatpush3.bf16.msra.mxu1 %v6651_v49  ;;  %v2716_v18 = vld [vmem:[#allocation26 + $0x28] sm:$0xff]  ;;  %v2718_v34 = vld [vmem:[#allocation26 + $0x38] sm:$0xff]  ;;  %v2719_v61 = vld [vmem:[#allocation26 + $0x40] sm:$0xff] }
 0x81c   : >> { %6628 = vmatprep.subr.bf16.mxu0 %v6627_v28  ;;  %6656 = vmatprep.subr.bf16.mxu1 %v6655_v27  ;;  %v2720_v7 = vld [vmem:[#allocation26 + $0x48] sm:$0xff]  ;;  %v2721_v6 = vld [vmem:[#allocation26 + $0x50] sm:$0xff]  ;;  %v2722_v56 = vld [vmem:[#allocation26 + $0x58] sm:$0xff] }
 0x81d   : >> { %v2723_v53 = vld [vmem:[#allocation26 + $0x60] sm:$0xff]  ;;  %v2724_v14 = vld [vmem:[#allocation26 + $0x68] sm:$0xff]  ;;  %v2725_v37 = vld [vmem:[#allocation26 + $0x70] sm:$0xff] }
 0x81e   : >> { %v2726_v45 = vld [vmem:[#allocation26 + $0x78] sm:$0xff]  ;;  %v2774_v42 = vld [vmem:[#allocation14 + $0x70] sm:$0xff]  ;;  %v4939_v13 = vld [vmem:[%s9313_s18] ss:$0 sm:$0xff] }
 0x81f   : >> { %6630 = vmatpush3.bf16.msra.mxu0 %v6627_v28  ;;  %6658 = vmatpush3.bf16.msra.mxu1 %v6655_v27  ;;  %v2775_v23 = vld [vmem:[#allocation14 + $0x78] sm:$0xff] }
 0x820   : >> { %6632 = vmatprep.subr.bf16.mxu0 %v6631_v38  ;;  %6660 = vmatprep.subr.bf16.mxu1 %v6659_v48  ;;  %v6675_v50 = vpack.c.bf16 %v2775_v23, %v2774_v42  ;;  %v3248_v23 = vld [vmem:[#allocation15 + $0x40] sm:$0xff] }
 0x823   : >> { %6634 = vmatpush3.bf16.msra.mxu0 %v6631_v38  ;;  %6662 = vmatpush3.bf16.msra.mxu1 %v6659_v48 }
 0x824   : >> { %6636 = vmatprep.subr.bf16.mxu0 %v6635_v11  ;;  %6664 = vmatprep.subr.bf16.mxu1 %v6663_v24 }
 0x827   : >> { %6638 = vmatpush3.bf16.msra.mxu0 %v6635_v11  ;;  %6666 = vmatpush3.bf16.msra.mxu1 %v6663_v24 }
 0x828   : >> { %6640 = vmatprep.subr.bf16.mxu0 %v6639_v43  ;;  %6668 = vmatprep.subr.bf16.mxu1 %v6667_v55 }
 0x82b   : >> { %6642 = vmatpush3.bf16.msra.mxu0 %v6639_v43  ;;  %6670 = vmatpush3.bf16.msra.mxu1 %v6667_v55 }
 0x82c   : >> { %6644 = vmatprep.subr.bf16.mxu0 %v6643_v41  ;;  %6672 = vmatprep.subr.bf16.mxu1 %v6671_v44 }
 0x82f   : >> { %6646 = vmatpush3.bf16.msra.mxu0 %v6643_v41  ;;  %6674 = vmatpush3.bf16.msra.mxu1 %v6671_v44 }
 0x830   : >> { %6676 = vmatprep.subr.bf16.mxu1 %v6675_v50 }
 0x832   : >> { %5936 = vmatmul.mubr.f32.vlgmr.msra.gmra.mrb[0].mxu0 %v2712_v17 }
 0x833   : >> { %5938 = vmatprep.mubr.f32.mxu0 %v2713_v26  ;;  %6678 = vmatpush3.bf16.msra.mxu1 %v6675_v50  ;;  %v3249_v50 = vld [vmem:[#allocation15 + $0x48] sm:$0xff] }
 0x836   : >> { %5939 = vmatmul.mubr.f32.gmra.mrb[2].mxu0 %v2714_v32 }
 0x837   : >> { %5941 = vmatprep.mubr.f32.mxu0 %v2715_v22  ;;  %v2727_v22 = vld [vmem:[#allocation3] sm:$0xff] }
 0x83a   : >> { %5942 = vmatmul.mubr.f32.gmra.mrb[4].mxu0 %v2716_v18  ;;  %v3240_v18 = vld [vmem:[#allocation15] sm:$0xff] }
 0x83b   : >> { %5944 = vmatprep.mubr.f32.mxu0 %v2717_v59  ;;  %v3241_v59 = vld [vmem:[#allocation15 + $0x8] sm:$0xff] }
 0x83e   : >> { %5945 = vmatmul.mubr.f32.gmra.mrb[6].mxu0 %v2718_v34  ;;  %v3242_v34 = vld [vmem:[#allocation15 + $0x10] sm:$0xff] }
 0x83f   : >> { %5947 = vmatprep.mubr.f32.mxu0 %v2719_v61  ;;  %v6711_v61 = vpack.c.bf16 %v3241_v59, %v3240_v18  ;;  %v2728_v59 = vld [vmem:[#allocation3 + $0x8] sm:$0xff] }
 0x841   : >> { %6712 = vmatprep.subr.bf16.mxu1 %v6711_v61 }
 0x842   : >> { %5948 = vmatmul.mubr.f32.gmra.mrb[8].mxu0 %v2720_v7  ;;  %v3243_v7 = vld [vmem:[#allocation15 + $0x18] sm:$0xff] }
 0x843   : >> { %5950 = vmatprep.mubr.f32.mxu0 %v2721_v6  ;;  %v6715_v6 = vpack.c.bf16 %v3243_v7, %v3242_v34  ;;  %v2729_v34 = vld [vmem:[#allocation3 + $0x10] sm:$0xff]  ;;  %v2731_v7 = vld [vmem:[#allocation3 + $0x20] sm:$0xff] }
 0x846   : >> { %5951 = vmatmul.mubr.f32.gmra.mrb[10].mxu0 %v2722_v56  ;;  %v3244_v56 = vld [vmem:[#allocation15 + $0x20] sm:$0xff] }
 0x847   : >> { %5953 = vmatprep.mubr.f32.mxu0 %v2723_v53  ;;  %v3245_v53 = vld [vmem:[#allocation15 + $0x28] sm:$0xff] }
 0x84a   : >> { %5954 = vmatmul.mubr.f32.gmra.mrb[12].mxu0 %v2724_v14  ;;  %v6719_v14 = vpack.c.bf16 %v3245_v53, %v3244_v56  ;;  %v2733_v56 = vld [vmem:[#allocation3 + $0x30] sm:$0xff]  ;;  %v2734_v53 = vld [vmem:[#allocation3 + $0x38] sm:$0xff] }
 0x84b   : >> { %5956 = vmatprep.mubr.f32.mxu0 %v2725_v37  ;;  %v3246_v37 = vld [vmem:[#allocation15 + $0x30] sm:$0xff] }
 0x84e   : >> { %5957 = vmatmul.mubr.f32.gmra.mrb[14].mxu0 %v2726_v45  ;;  %v3247_v45 = vld [vmem:[#allocation15 + $0x38] sm:$0xff] }
 0x84f   : >> { %6047 = vmatprep.mubr.f32.mxu0 %v2727_v22  ;;  %v6723_v42 = vpack.c.bf16 %v3247_v45, %v3246_v37  ;;  %v2736_v37 = vld [vmem:[#allocation3 + $0x48] sm:$0xff]  ;;  %v2737_v45 = vld [vmem:[#allocation3 + $0x50] sm:$0xff] }
 0x905   : >> { %v5937_v15 = vpop.f32.mrb[0].mxu0 }
 0x906   : >> { %v2855_v54 = vadd.f32 %v5937_v15, %v4939_v13  ;;  %v2849_v39 = vpop.f32.mrb[1].mxu0  ;;  %v3250_v15 = vld [vmem:[#allocation15 + $0x50] sm:$0xff] }
 0x907   : >> { %v2850_v8 = vadd.f32 %v4939_v13, %v2849_v39 }
 0x908   : >> { %v2929_v58 = vmax.f32 %v2855_v54, 0.0  ;;  %v3251_v54 = vld [vmem:[#allocation15 + $0x58] sm:$0xff] }
 0x909   : >> { %v5940_v10 = vpop.f32.mrb[2].mxu0  ;;  %v2928_v60 = vmax.f32 %v2850_v8, 0.0  ;;  %v6731_v39 = vpack.c.bf16 %v3251_v54, %v3250_v15  ;;  %v3252_v8 = vld [vmem:[#allocation15 + $0x60] sm:$0xff]  ;;  %v2742_v15 = vld [vmem:[#allocation3 + $0x78] sm:$0xff] }
 0x90a   : >> { %v2865_v1 = vadd.f32 %v5940_v10, %v4939_v13  ;;  %v2859_v29 = vpop.f32.mrb[3].mxu0  ;;  %v3253_v10 = vld [vmem:[#allocation15 + $0x68] sm:$0xff]  ;;  %v3257_v54 = vld [vmem:[#allocation17] sm:$0xff] }
 0x90b   : >> { %v2860_v36 = vadd.f32 %v4939_v13, %v2859_v29  ;;  %5991 = vmatprep.mubr.f32.mxu1 %v2928_v60  ;;  %v6735_v60 = vpack.c.bf16 %v3253_v10, %v3252_v8  ;;  %v3259_v8 = vld [vmem:[#allocation17 + $0x10] sm:$0xff] }
 0x90c   : >> { %5992 = vmatmul.mubr.f32.vlgmr.msra.gmra.mrb[0].mxu1 %v2929_v58  ;;  %v2931_v35 = vmax.f32 %v2865_v1, 0.0  ;;  %v3254_v58 = vld [vmem:[#allocation15 + $0x70] sm:$0xff]  ;;  %v3255_v1 = vld [vmem:[#allocation15 + $0x78] sm:$0xff] }
 0x90d   : >> { %v2930_v9 = vmax.f32 %v2860_v36, 0.0  ;;  %v5943_v28 = vpop.f32.mrb[4].mxu0  ;;  %6714 = vmatpush3.bf16.msra.mxu1 %v6711_v61  ;;  %v6739_v29 = vpack.c.bf16 %v3255_v1, %v3254_v58  ;;  %v4940_v36 = vld [vmem:[%s9314_s24] ss:$0 sm:$0xff]  ;;  %v2730_v61 = vld [vmem:[#allocation3 + $0x18] sm:$0xff] }
 0x90e   : >> { %v2875_v12 = vadd.f32 %v5943_v28, %v4939_v13  ;;  %v2869_v30 = vpop.f32.mrb[5].mxu0  ;;  %6716 = vmatprep.subr.bf16.mxu1 %v6715_v6  ;;  %v3261_v1 = vld [vmem:[#allocation17 + $0x20] sm:$0xff] }
 0x90f   : >> { %v2870_v25 = vadd.f32 %v4939_v13, %v2869_v30  ;;  %5994 = vmatprep.mubr.f32.mxu1 %v2930_v9 }
 0x910   : >> { %5995 = vmatmul.mubr.f32.gmra.mrb[2].mxu1 %v2931_v35  ;;  %v2933_v19 = vmax.f32 %v2875_v12, 0.0 }
 0x911   : >> { %v2932_v16 = vmax.f32 %v2870_v25, 0.0  ;;  %v5946_v46 = vpop.f32.mrb[6].mxu0  ;;  %6718 = vmatpush3.bf16.msra.mxu1 %v6715_v6  ;;  %v2732_v6 = vld [vmem:[#allocation3 + $0x28] sm:$0xff] }
 0x912   : >> { %v2885_v49 = vadd.f32 %v5946_v46, %v4939_v13  ;;  %v2879_v38 = vpop.f32.mrb[7].mxu0  ;;  %6720 = vmatprep.subr.bf16.mxu1 %v6719_v14 }
 0x913   : >> { %v2880_v40 = vadd.f32 %v4939_v13, %v2879_v38  ;;  %5997 = vmatprep.mubr.f32.mxu1 %v2932_v16 }
 0x914   : >> { %5998 = vmatmul.mubr.f32.gmra.mrb[4].mxu1 %v2933_v19  ;;  %v2935_v21 = vmax.f32 %v2885_v49, 0.0 }
 0x915   : >> { %v2934_v52 = vmax.f32 %v2880_v40, 0.0  ;;  %v5949_v62 = vpop.f32.mrb[8].mxu0  ;;  %6722 = vmatpush3.bf16.msra.mxu1 %v6719_v14  ;;  %v2735_v14 = vld [vmem:[#allocation3 + $0x40] sm:$0xff] }
 0x916   : >> { %v2895_v27 = vadd.f32 %v5949_v62, %v4939_v13  ;;  %v2889_v11 = vpop.f32.mrb[9].mxu0  ;;  %6724 = vmatprep.subr.bf16.mxu1 %v6723_v42 }
 0x917   : >> { %v2890_v0 = vadd.f32 %v4939_v13, %v2889_v11  ;;  %6000 = vmatprep.mubr.f32.mxu1 %v2934_v52 }
 0x918   : >> { %6001 = vmatmul.mubr.f32.gmra.mrb[6].mxu1 %v2935_v21  ;;  %v2937_v5 = vmax.f32 %v2895_v27, 0.0 }
 0x919   : >> { %v2936_v2 = vmax.f32 %v2890_v0, 0.0  ;;  %v5952_v47 = vpop.f32.mrb[10].mxu0  ;;  %6726 = vmatpush3.bf16.msra.mxu1 %v6723_v42  ;;  %v2738_v42 = vld [vmem:[#allocation3 + $0x58] sm:$0xff] }
 0x91a   : >> { %v2905_v48 = vadd.f32 %v5952_v47, %v4939_v13  ;;  %v2899_v43 = vpop.f32.mrb[11].mxu0 }
 0x91b   : >> { %v2900_v20 = vadd.f32 %v4939_v13, %v2899_v43  ;;  %6003 = vmatprep.mubr.f32.mxu1 %v2936_v2 }
 0x91c   : >> { %6004 = vmatmul.mubr.f32.gmra.mrb[8].mxu1 %v2937_v5  ;;  %v2939_v63 = vmax.f32 %v2905_v48, 0.0 }
 0x91d   : >> { %v2938_v51 = vmax.f32 %v2900_v20, 0.0  ;;  %v5955_v57 = vpop.f32.mrb[12].mxu0 }
 0x91e   : >> { %v2915_v24 = vadd.f32 %v5955_v57, %v4939_v13  ;;  %v2909_v41 = vpop.f32.mrb[13].mxu0 }
 0x91f   : >> { %v2910_v4 = vadd.f32 %v4939_v13, %v2909_v41  ;;  %6006 = vmatprep.mubr.f32.mxu1 %v2938_v51 }
 0x920   : >> { %6007 = vmatmul.mubr.f32.gmra.mrb[10].mxu1 %v2939_v63  ;;  %v2941_v3 = vmax.f32 %v2915_v24, 0.0 }
 0x921   : >> { %v2940_v31 = vmax.f32 %v2910_v4, 0.0  ;;  %v5958_v55 = vpop.f32.mrb[14].mxu0 }
 0x922   : >> { %v2925_v33 = vadd.f32 %v5958_v55, %v4939_v13  ;;  %v2919_v17 = vpop.f32.mrb[15].mxu0 }
 0x923   : >> { %v2920_v44 = vadd.f32 %v4939_v13, %v2919_v17  ;;  %6009 = vmatprep.mubr.f32.mxu1 %v2940_v31  ;;  %v6727_v13 = vpack.c.bf16 %v3249_v50, %v3248_v23  ;;  %v2739_v23 = vld [vmem:[#allocation3 + $0x60] sm:$0xff]  ;;  %v2740_v50 = vld [vmem:[#allocation3 + $0x68] sm:$0xff] }
 0x924   : >> { %6010 = vmatmul.mubr.f32.gmra.mrb[12].mxu1 %v2941_v3  ;;  %v2943_v32 = vmax.f32 %v2925_v33, 0.0 }
 0x925   : >> { %v2942_v26 = vmax.f32 %v2920_v44, 0.0  ;;  %6728 = vmatprep.subr.bf16.mxu1 %v6727_v13 }
 0x926   : >> { %6730 = vmatpush3.bf16.msra.mxu1 %v6727_v13  ;;  %v2741_v13 = vld [vmem:[#allocation3 + $0x70] sm:$0xff] }
 0x927   : >> { %6012 = vmatprep.mubr.f32.mxu1 %v2942_v26  ;;  %6732 = vmatprep.subr.bf16.mxu1 %v6731_v39 }
 0x928   : >> { %6013 = vmatmul.mubr.f32.gmra.mrb[14].mxu1 %v2943_v32 }
 0x92a   : >> { %6734 = vmatpush3.bf16.msra.mxu1 %v6731_v39  ;;  %v3258_v39 = vld [vmem:[#allocation17 + $0x8] sm:$0xff] }
 0x92b   : >> { %6736 = vmatprep.subr.bf16.mxu1 %v6735_v60  ;;  %v6743_v10 = vpack.c.bf16 %v3258_v39, %v3257_v54  ;;  %v3633_v54 = vld [vmem:[#allocation21 + $0xc8] sm:$0xff]  ;;  %v3636_v39 = vld [vmem:[#allocation21 + $0xe0] sm:$0xff] }
 0x92e   : >> { %6738 = vmatpush3.bf16.msra.mxu1 %v6735_v60  ;;  %v3260_v60 = vld [vmem:[#allocation17 + $0x18] sm:$0xff] }
 0x92f   : >> { %6740 = vmatprep.subr.bf16.mxu1 %v6739_v29  ;;  %v6747_v58 = vpack.c.bf16 %v3260_v60, %v3259_v8  ;;  %v3610_v8 = vld [vmem:[#allocation21 + $0x10] sm:$0xff]  ;;  %v3613_v60 = vld [vmem:[#allocation21 + $0x28] sm:$0xff] }
 0x932   : >> { %6742 = vmatpush3.bf16.msra.mxu1 %v6739_v29  ;;  %v3262_v29 = vld [vmem:[#allocation17 + $0x28] sm:$0xff] }
 0x9df   : >> { %v5993_v9 = vpop.f32.mrb[0].mxu1 }
 0x9e0   : >> { %v3022_v28 = vadd.f32 %v5993_v9, %v4940_v36  ;;  %v3016_v35 = vpop.f32.mrb[1].mxu1  ;;  %v3263_v9 = vld [vmem:[#allocation17 + $0x30] sm:$0xff] }
 0x9e1   : >> { %v3017_v12 = vadd.f32 %v4940_v36, %v3016_v35 }
 0x9e3   : >> { %v6679_v30 = vpack.c.bf16 %v3022_v28, %v3017_v12  ;;  %v5996_v25 = vpop.f32.mrb[2].mxu1  ;;  %v3264_v28 = vld [vmem:[#allocation17 + $0x38] sm:$0xff]  ;;  %v3265_v12 = vld [vmem:[#allocation17 + $0x40] sm:$0xff] }
 0x9e4   : >> { %v3032_v16 = vadd.f32 %v5996_v25, %v4940_v36  ;;  %v3026_v46 = vpop.f32.mrb[3].mxu1  ;;  %v6755_v35 = vpack.c.bf16 %v3264_v28, %v3263_v9  ;;  %v3639_v9 = vld [vmem:[#allocation21 + $0xf8] sm:$0xff]  ;;  %v3642_v28 = vld [vmem:[#allocation21 + $0x110] sm:$0xff] }
 0x9e5   : >> { %v3027_v19 = vadd.f32 %v4940_v36, %v3026_v46  ;;  %6680 = vmatprep.subr.bf16.mxu0 %v6679_v30  ;;  %v3268_v46 = vld [vmem:[#allocation17 + $0x58] sm:$0xff] }
 0x9e6   : >> { %6682 = vmatpush3.bf16.msra.mxu0 %v6679_v30  ;;  %v3266_v30 = vld [vmem:[#allocation17 + $0x48] sm:$0xff] }
 0x9e7   : >> { %v6683_v49 = vpack.c.bf16 %v3032_v16, %v3027_v19  ;;  %v5999_v38 = vpop.f32.mrb[4].mxu1  ;;  %v6759_v25 = vpack.c.bf16 %v3266_v30, %v3265_v12  ;;  %v3267_v16 = vld [vmem:[#allocation17 + $0x50] sm:$0xff]  ;;  %v6795_v12 = vpack.c.bf16 %v3642_v28, %v3639_v9 }
 0x9e8   : >> { %v3042_v40 = vadd.f32 %v5999_v38, %v4940_v36  ;;  %v3036_v52 = vpop.f32.mrb[5].mxu1  ;;  %v6763_v19 = vpack.c.bf16 %v3268_v46, %v3267_v16  ;;  %v3270_v38 = vld [vmem:[#allocation17 + $0x68] sm:$0xff]  ;;  %v3638_v30 = vld [vmem:[#allocation21 + $0xf0] sm:$0xff]  ;;  %v3648_v46 = vld [vmem:[#allocation21 + $0x140] sm:$0xff] }
 0x9e9   : >> { %v3037_v62 = vadd.f32 %v4940_v36, %v3036_v52  ;;  %6684 = vmatprep.subr.bf16.mxu0 %v6683_v49  ;;  %v3645_v16 = vld [vmem:[#allocation21 + $0x128] sm:$0xff] }
 0x9ea   : >> { %6686 = vmatpush3.bf16.msra.mxu0 %v6683_v49  ;;  %v3269_v49 = vld [vmem:[#allocation17 + $0x60] sm:$0xff] }
 0x9eb   : >> { %v6687_v21 = vpack.c.bf16 %v3042_v40, %v3037_v62  ;;  %v6002_v27 = vpop.f32.mrb[6].mxu1  ;;  %v6767_v40 = vpack.c.bf16 %v3270_v38, %v3269_v49  ;;  %v6799_v49 = vpack.c.bf16 %v3648_v46, %v3645_v16  ;;  %v3644_v38 = vld [vmem:[#allocation21 + $0x120] sm:$0xff]  ;;  %v8801_v16 = vld [vmem:[#allocation2 + $0x30] sm:$0xff] }
 0x9ec   : >> { %v3052_v11 = vadd.f32 %v6002_v27, %v4940_v36  ;;  %v3046_v0 = vpop.f32.mrb[7].mxu1 }
 0x9ed   : >> { %v3047_v2 = vadd.f32 %v4940_v36, %v3046_v0  ;;  %6688 = vmatprep.subr.bf16.mxu0 %v6687_v21 }
 0x9ee   : >> { %6690 = vmatpush3.bf16.msra.mxu0 %v6687_v21 }
 0x9ef   : >> { %v6691_v47 = vpack.c.bf16 %v3052_v11, %v3047_v2  ;;  %v6005_v5 = vpop.f32.mrb[8].mxu1 }
 0x9f0   : >> { %v3062_v48 = vadd.f32 %v6005_v5, %v4940_v36  ;;  %v3056_v43 = vpop.f32.mrb[9].mxu1 }
 0x9f1   : >> { %v3057_v20 = vadd.f32 %v4940_v36, %v3056_v43  ;;  %6692 = vmatprep.subr.bf16.mxu0 %v6691_v47 }
 0x9f2   : >> { %6694 = vmatpush3.bf16.msra.mxu0 %v6691_v47 }
 0x9f3   : >> { %v6695_v51 = vpack.c.bf16 %v3062_v48, %v3057_v20  ;;  %v6008_v57 = vpop.f32.mrb[10].mxu1 }
 0x9f4   : >> { %v3072_v63 = vadd.f32 %v6008_v57, %v4940_v36  ;;  %v3066_v24 = vpop.f32.mrb[11].mxu1 }
 0x9f5   : >> { %v3067_v41 = vadd.f32 %v4940_v36, %v3066_v24  ;;  %6696 = vmatprep.subr.bf16.mxu0 %v6695_v51 }
 0x9f6   : >> { %6698 = vmatpush3.bf16.msra.mxu0 %v6695_v51 }
 0x9f7   : >> { %v6699_v4 = vpack.c.bf16 %v3072_v63, %v3067_v41  ;;  %v6011_v31 = vpop.f32.mrb[12].mxu1  ;;  %v3271_v41 = vld [vmem:[#allocation17 + $0x70] sm:$0xff] }
 0x9f8   : >> { %v3082_v55 = vadd.f32 %v6011_v31, %v4940_v36  ;;  %v3076_v3 = vpop.f32.mrb[13].mxu1 }
 0x9f9   : >> { %v3077_v33 = vadd.f32 %v4940_v36, %v3076_v3  ;;  %6700 = vmatprep.subr.bf16.mxu0 %v6699_v4  ;;  %v3612_v3 = vld [vmem:[#allocation21 + $0x20] sm:$0xff] }
 0x9fa   : >> { %6702 = vmatpush3.bf16.msra.mxu0 %v6699_v4  ;;  %v3272_v4 = vld [vmem:[#allocation17 + $0x78] sm:$0xff] }
 0x9fb   : >> { %v6703_v17 = vpack.c.bf16 %v3082_v55, %v3077_v33  ;;  %v6014_v44 = vpop.f32.mrb[14].mxu1  ;;  %v6771_v31 = vpack.c.bf16 %v3272_v4, %v3271_v41  ;;  %v3609_v55 = vld [vmem:[#allocation21 + $0x8] sm:$0xff]  ;;  %v3608_v33 = vld [vmem:[#allocation21] sm:$0xff]  ;;  %v3985_v4 = vld [vmem:[#allocation23 + $0x30] sm:$0xff] }
 0x9fc   : >> { %v3092_v26 = vadd.f32 %v6014_v44, %v4940_v36  ;;  %v3086_v32 = vpop.f32.mrb[15].mxu1  ;;  %v3611_v44 = vld [vmem:[#allocation21 + $0x18] sm:$0xff] }
 0x9fd   : >> { %v3087_v22 = vadd.f32 %v4940_v36, %v3086_v32  ;;  %6704 = vmatprep.subr.bf16.mxu0 %v6703_v17  ;;  %v6751_v36 = vpack.c.bf16 %v3262_v29, %v3261_v1  ;;  %v3618_v32 = vld [vmem:[#allocation21 + $0x50] sm:$0xff]  ;;  %v3632_v1 = vld [vmem:[#allocation21 + $0xc0] sm:$0xff]  ;;  %v3635_v29 = vld [vmem:[#allocation21 + $0xd8] sm:$0xff] }
 0x9fe   : >> { %6706 = vmatpush3.bf16.msra.mxu0 %v6703_v17  ;;  %v6775_v17 = vpack.c.bf16 %v3612_v3, %v3609_v55  ;;  %v3992_v55 = vld [vmem:[#allocation23 + $0x68] sm:$0xff]  ;;  %v3995_v3 = vld [vmem:[#allocation23 + $0x80] sm:$0xff] }
 0x9ff   : >> { %v6707_v18 = vpack.c.bf16 %v3092_v26, %v3087_v22  ;;  %v3615_v26 = vld [vmem:[#allocation21 + $0x38] sm:$0xff]  ;;  %v7970_v22 = vmov 0.0  }
 0xa00   : >> { %6776 = vmatprep.subr.bf16.mxu1 %v6775_v17 }
 0xa01   : >> { %6708 = vmatprep.subr.bf16.mxu0 %v6707_v18 }
 0xa02   : >> { %6710 = vmatpush3.bf16.msra.mxu0 %v6707_v18  ;;  %v6777_v18 = vpack.c.bf16 %v3611_v44, %v3608_v33  ;;  %v8781_v33 = vld [vmem:[#allocation2 + $0x8] sm:$0xff]  ;;  %v6847_v44 = vpack.c.bf16 %v3995_v3, %v3992_v55 }
 0xa03   : >> { %6744 = vmatprep.subr.bf16.mxu0 %v6743_v10 }
 0xa05   : >> { %6048 = vmatmul.mubr.f32.vlgmr.msra.gmra.mrb[16].mxu0 %v2728_v59  ;;  %v6779_v59 = vpack.c.bf16 %v3618_v32, %v3615_v26  ;;  %v3991_v26 = vld [vmem:[#allocation23 + $0x60] sm:$0xff]  ;;  %v3994_v32 = vld [vmem:[#allocation23 + $0x78] sm:$0xff] }
 0xa06   : >> { %6050 = vmatprep.mubr.f32.mxu0 %v2729_v34  ;;  %6746 = vmatpush3.bf16.msra.mxu0 %v6743_v10  ;;  %v3614_v34 = vld [vmem:[#allocation21 + $0x30] sm:$0xff] }
 0xa07   : >> { %6748 = vmatprep.subr.bf16.mxu0 %v6747_v58 }
 0xa09   : >> { %6051 = vmatmul.mubr.f32.gmra.mrb[18].mxu0 %v2730_v61  ;;  %v3617_v61 = vld [vmem:[#allocation21 + $0x48] sm:$0xff] }
 0xa0a   : >> { %6053 = vmatprep.mubr.f32.mxu0 %v2731_v7  ;;  %6750 = vmatpush3.bf16.msra.mxu0 %v6747_v58  ;;  %v3621_v7 = vld [vmem:[#allocation21 + $0x68] sm:$0xff]  ;;  %v6791_v58 = vpack.c.bf16 %v3636_v39, %v3633_v54  ;;  %v8793_v54 = vld [vmem:[#allocation2 + $0x20] sm:$0xff] }
 0xa0b   : >> { %6752 = vmatprep.subr.bf16.mxu0 %v6751_v36 }
 0xa0d   : >> { %6054 = vmatmul.mubr.f32.gmra.mrb[20].mxu0 %v2732_v6  ;;  %v3624_v6 = vld [vmem:[#allocation21 + $0x80] sm:$0xff] }
 0xa0e   : >> { %6056 = vmatprep.mubr.f32.mxu0 %v2733_v56  ;;  %6754 = vmatpush3.bf16.msra.mxu0 %v6751_v36  ;;  %v6781_v56 = vpack.c.bf16 %v3617_v61, %v3614_v34  ;;  %v8774_v36 = vpack.c.bf16 %v3613_v60, %v3610_v8  ;;  %v8785_v34 = vld [vmem:[#allocation2 + $0x10] sm:$0xff]  ;;  %v6849_v61 = vpack.c.bf16 %v3994_v32, %v3991_v26  ;;  %v4012_v60 = vld [vmem:[#allocation23 + $0x108] sm:$0xff] }
 0xa0f   : >> { %6756 = vmatprep.subr.bf16.mxu0 %v6755_v35  ;;  %v3622_v26 = vld [vmem:[#allocation21 + $0x70] sm:$0xff]  ;;  %v3625_v32 = vld [vmem:[#allocation21 + $0x88] sm:$0xff] }
 0xa11   : >> { %6057 = vmatmul.mubr.f32.gmra.mrb[22].mxu0 %v2734_v53  ;;  %v6783_v53 = vpack.c.bf16 %v3624_v6, %v3621_v7  ;;  %v3997_v6 = vld [vmem:[#allocation23 + $0x90] sm:$0xff] }
 0xa12   : >> { %6059 = vmatprep.mubr.f32.mxu0 %v2735_v14  ;;  %6758 = vmatpush3.bf16.msra.mxu0 %v6755_v35  ;;  %v3620_v14 = vld [vmem:[#allocation21 + $0x60] sm:$0xff]  ;;  %v6793_v35 = vpack.c.bf16 %v3635_v29, %v3632_v1  ;;  %v8797_v29 = vld [vmem:[#allocation2 + $0x28] sm:$0xff] }
 0xa13   : >> { %6760 = vmatprep.subr.bf16.mxu0 %v6759_v25  ;;  %v4019_v1 = vld [vmem:[#allocation23 + $0x140] sm:$0xff] }
 0xa15   : >> { %6060 = vmatmul.mubr.f32.gmra.mrb[24].mxu0 %v2736_v37  ;;  %v3623_v37 = vld [vmem:[#allocation21 + $0x78] sm:$0xff] }
 0xa16   : >> { %6062 = vmatprep.mubr.f32.mxu0 %v2737_v45  ;;  %6762 = vmatpush3.bf16.msra.mxu0 %v6759_v25  ;;  %v3627_v45 = vld [vmem:[#allocation21 + $0x98] sm:$0xff]  ;;  %v3641_v25 = vld [vmem:[#allocation21 + $0x108] sm:$0xff] }
 0xa17   : >> { %6764 = vmatprep.subr.bf16.mxu0 %v6763_v19 }
 0xa19   : >> { %6063 = vmatmul.mubr.f32.gmra.mrb[26].mxu0 %v2738_v42  ;;  %v3630_v42 = vld [vmem:[#allocation21 + $0xb0] sm:$0xff] }
 0xa1a   : >> { %6065 = vmatprep.mubr.f32.mxu0 %v2739_v23  ;;  %6766 = vmatpush3.bf16.msra.mxu0 %v6763_v19  ;;  %v6785_v23 = vpack.c.bf16 %v3623_v37, %v3620_v14  ;;  %v6797_v19 = vpack.c.bf16 %v3641_v25, %v3638_v30  ;;  %v4007_v14 = vld [vmem:[#allocation23 + $0xe0] sm:$0xff]  ;;  %v8789_v37 = vld [vmem:[#allocation2 + $0x18] sm:$0xff]  ;;  %v4025_v25 = vld [vmem:[#allocation23 + $0x170] sm:$0xff] }
 0xa1b   : >> { %6768 = vmatprep.subr.bf16.mxu0 %v6767_v40  ;;  %v4022_v30 = vld [vmem:[#allocation23 + $0x158] sm:$0xff] }
 0xa1d   : >> { %6066 = vmatmul.mubr.f32.gmra.mrb[28].mxu0 %v2740_v50  ;;  %v6787_v50 = vpack.c.bf16 %v3630_v42, %v3627_v45 }
 0xa1e   : >> { %6068 = vmatprep.mubr.f32.mxu0 %v2741_v13  ;;  %6770 = vmatpush3.bf16.msra.mxu0 %v6767_v40  ;;  %v3626_v13 = vld [vmem:[#allocation21 + $0x90] sm:$0xff]  ;;  %v3647_v40 = vld [vmem:[#allocation21 + $0x138] sm:$0xff] }
 0xa1f   : >> { %6772 = vmatprep.subr.bf16.mxu0 %v6771_v31 }
 0xa21   : >> { %6069 = vmatmul.mubr.f32.gmra.mrb[30].mxu0 %v2742_v15  ;;  %v3629_v15 = vld [vmem:[#allocation21 + $0xa8] sm:$0xff] }
 0xa22   : >> { %6774 = vmatpush3.bf16.msra.mxu0 %v6771_v31  ;;  %v6789_v10 = vpack.c.bf16 %v3629_v15, %v3626_v13  ;;  %v3988_v31 = vld [vmem:[#allocation23 + $0x48] sm:$0xff]  ;;  %v4010_v13 = vld [vmem:[#allocation23 + $0xf8] sm:$0xff]  ;;  %v4013_v15 = vld [vmem:[#allocation23 + $0x110] sm:$0xff] }
 0xa23   : >> { %6808 = vmatprep.subr.bf16.mxu0 %v8774_v36  ;;  %v6845_v17 = vpack.c.bf16 %v3988_v31, %v3985_v4  ;;  %v6859_v8 = vpack.c.bf16 %v4013_v15, %v4010_v13 }
 0xad8   : >> { %v6049_v52 = vpop.f32.mrb[16].mxu0 }
 0xad9   : >> { %v3161_v62 = vpop.f32.mrb[17].mxu0 }
 0xada   : >> { %6103 = vmatprep.mubr.f32.mxu1 %v3161_v62  ;;  %v3654_v62 = vld [vmem:[#allocation21 + $0x170] sm:$0xff] }
 0xadb   : >> { %6104 = vmatmul.mubr.f32.vlgmr.msra.gmra.mrb[16].mxu1 %v6049_v52  ;;  %v3651_v52 = vld [vmem:[#allocation21 + $0x158] sm:$0xff] }
 0xadc   : >> { %v6052_v21 = vpop.f32.mrb[18].mxu0  ;;  %6778 = vmatpush1.bf16.msra.mxu1 %v6777_v18  ;;  %v3998_v18 = vld [vmem:[#allocation23 + $0x98] sm:$0xff] }
 0xadd   : >> { %v3171_v27 = vpop.f32.mrb[19].mxu0  ;;  %6780 = vmatprep.subr.bf16.mxu1 %v6779_v59  ;;  %v4001_v59 = vld [vmem:[#allocation23 + $0xb0] sm:$0xff] }
 0xade   : >> { %6106 = vmatprep.mubr.f32.mxu1 %v3171_v27  ;;  %v6803_v27 = vpack.c.bf16 %v3654_v62, %v3651_v52  ;;  %v6851_v7 = vpack.c.bf16 %v4001_v59, %v3998_v18  ;;  %v8809_v62 = vld [vmem:[#allocation2 + $0x40] sm:$0xff] }
 0xadf   : >> { %6107 = vmatmul.mubr.f32.gmra.mrb[18].mxu1 %v6052_v21  ;;  %v6801_v21 = vpack.c.bf16 %v3647_v40, %v3644_v38  ;;  %v4024_v38 = vld [vmem:[#allocation23 + $0x168] sm:$0xff]  ;;  %v8805_v40 = vld [vmem:[#allocation2 + $0x38] sm:$0xff] }
 0xae0   : >> { %v6055_v11 = vpop.f32.mrb[20].mxu0  ;;  %6782 = vmatpush1.bf16.msra.mxu1 %v6781_v56  ;;  %v4000_v56 = vld [vmem:[#allocation23 + $0xa8] sm:$0xff] }
 0xae1   : >> { %v3181_v0 = vpop.f32.mrb[21].mxu0  ;;  %6784 = vmatprep.subr.bf16.mxu1 %v6783_v53  ;;  %v4004_v53 = vld [vmem:[#allocation23 + $0xc8] sm:$0xff]  ;;  %v6853_v45 = vpack.c.bf16 %v4000_v56, %v3997_v6  ;;  %v6815_v56 = vpack.c.bf16 %v3625_v32, %v3622_v26 }
 0xae2   : >> { %6109 = vmatprep.mubr.f32.mxu1 %v3181_v0  ;;  %v3653_v0 = vld [vmem:[#allocation21 + $0x168] sm:$0xff]  ;;  %v6855_v42 = vpack.c.bf16 %v4007_v14, %v4004_v53  ;;  %v3628_v14 = vld [vmem:[#allocation21 + $0xa0] sm:$0xff] }
 0xae3   : >> { %6110 = vmatmul.mubr.f32.gmra.mrb[20].mxu1 %v6055_v11  ;;  %v3650_v11 = vld [vmem:[#allocation21 + $0x150] sm:$0xff] }
 0xae4   : >> { %v6058_v2 = vpop.f32.mrb[22].mxu0  ;;  %6786 = vmatpush1.bf16.msra.mxu1 %v6785_v23  ;;  %v4003_v23 = vld [vmem:[#allocation23 + $0xc0] sm:$0xff] }
 0xae5   : >> { %v3191_v47 = vpop.f32.mrb[23].mxu0  ;;  %6788 = vmatprep.subr.bf16.mxu1 %v6787_v50  ;;  %v4006_v50 = vld [vmem:[#allocation23 + $0xd8] sm:$0xff] }
 0xae6   : >> { %6112 = vmatprep.mubr.f32.mxu1 %v3191_v47  ;;  %v3983_v47 = vld [vmem:[#allocation23 + $0x20] sm:$0xff]  ;;  %v6857_v39 = vpack.c.bf16 %v4006_v50, %v4003_v23 }
 0xae7   : >> { %6113 = vmatmul.mubr.f32.gmra.mrb[22].mxu1 %v6058_v2  ;;  %v3980_v2 = vld [vmem:[#allocation23 + $0x8] sm:$0xff] }
 0xae8   : >> { %v6061_v5 = vpop.f32.mrb[24].mxu0  ;;  %6790 = vmatpush1.bf16.msra.mxu1 %v6789_v10  ;;  %v4009_v10 = vld [vmem:[#allocation23 + $0xf0] sm:$0xff] }
 0xae9   : >> { %v3201_v48 = vpop.f32.mrb[25].mxu0  ;;  %6792 = vmatprep.subr.bf16.mxu1 %v6791_v58  ;;  %v4016_v58 = vld [vmem:[#allocation23 + $0x128] sm:$0xff]  ;;  %v6861_v9 = vpack.c.bf16 %v4012_v60, %v4009_v10 }
 0xaea   : >> { %6115 = vmatprep.mubr.f32.mxu1 %v3201_v48  ;;  %v6839_v48 = vpack.c.bf16 %v3983_v47, %v3980_v2  ;;  %v6863_v28 = vpack.c.bf16 %v4019_v1, %v4016_v58  ;;  %v8829_v2 = vld [vmem:[#allocation2 + $0x68] sm:$0xff]  ;;  %v8833_v47 = vld [vmem:[#allocation2 + $0x70] sm:$0xff] }
 0xaeb   : >> { %6116 = vmatmul.mubr.f32.gmra.mrb[24].mxu1 %v6061_v5  ;;  %v6805_v5 = vpack.c.bf16 %v3653_v0, %v3650_v11  ;;  %v8821_v11 = vld [vmem:[#allocation2 + $0x58] sm:$0xff]  ;;  %v8825_v0 = vld [vmem:[#allocation2 + $0x60] sm:$0xff]  ;;  %v3637_v10 = vld [vmem:[#allocation21 + $0xe8] sm:$0xff] }
 0xaec   : >> { %v6064_v43 = vpop.f32.mrb[26].mxu0  ;;  %6794 = vmatpush1.bf16.msra.mxu1 %v6793_v35  ;;  %v4015_v35 = vld [vmem:[#allocation23 + $0x120] sm:$0xff] }
 0xaed   : >> { %v3211_v20 = vpop.f32.mrb[27].mxu0  ;;  %6796 = vmatprep.subr.bf16.mxu1 %v6795_v12  ;;  %v4018_v12 = vld [vmem:[#allocation23 + $0x138] sm:$0xff] }
 0xaee   : >> { %6118 = vmatprep.mubr.f32.mxu1 %v3211_v20  ;;  %v3982_v20 = vld [vmem:[#allocation23 + $0x18] sm:$0xff]  ;;  %v6865_v46 = vpack.c.bf16 %v4018_v12, %v4015_v35 }
 0xaef   : >> { %6119 = vmatmul.mubr.f32.gmra.mrb[26].mxu1 %v6064_v43  ;;  %v3979_v43 = vld [vmem:[#allocation23] sm:$0xff] }
 0xaf0   : >> { %v6067_v51 = vpop.f32.mrb[28].mxu0  ;;  %6798 = vmatpush1.bf16.msra.mxu1 %v6797_v19  ;;  %v6867_v19 = vpack.c.bf16 %v4025_v25, %v4022_v30  ;;  %v3640_v30 = vld [vmem:[#allocation21 + $0x100] sm:$0xff]  ;;  %v3643_v25 = vld [vmem:[#allocation21 + $0x118] sm:$0xff] }
 0xaf1   : >> { %v3221_v57 = vpop.f32.mrb[29].mxu0  ;;  %6800 = vmatprep.subr.bf16.mxu1 %v6799_v49  ;;  %v4021_v49 = vld [vmem:[#allocation23 + $0x150] sm:$0xff] }
 0xaf2   : >> { %6121 = vmatprep.mubr.f32.mxu1 %v3221_v57  ;;  %v3989_v57 = vld [vmem:[#allocation23 + $0x50] sm:$0xff]  ;;  %v6869_v52 = vpack.c.bf16 %v4024_v38, %v4021_v49 }
 0xaf3   : >> { %6122 = vmatmul.mubr.f32.gmra.mrb[28].mxu1 %v6067_v51  ;;  %v3986_v51 = vld [vmem:[#allocation23 + $0x38] sm:$0xff] }
 0xaf4   : >> { %v6070_v63 = vpop.f32.mrb[30].mxu0  ;;  %6802 = vmatpush1.bf16.msra.mxu1 %v6801_v21  ;;  %v6843_v41 = vpack.c.bf16 %v3989_v57, %v3986_v51  ;;  %v8813_v21 = vld [vmem:[#allocation2 + $0x48] sm:$0xff]  ;;  %v3616_v57 = vld [vmem:[#allocation21 + $0x40] sm:$0xff] }
 0xaf5   : >> { %v3231_v24 = vpop.f32.mrb[31].mxu0  ;;  %6804 = vmatprep.subr.bf16.mxu1 %v6803_v27  ;;  %v8817_v27 = vld [vmem:[#allocation2 + $0x50] sm:$0xff] }
 0xaf6   : >> { %6124 = vmatprep.mubr.f32.mxu1 %v3231_v24  ;;  %v6841_v24 = vpack.c.bf16 %v3982_v20, %v3979_v43 }
 0xaf7   : >> { %6125 = vmatmul.mubr.f32.gmra.mrb[30].mxu1 %v6070_v63  ;;  %v8777_v63 = vld [vmem:[#allocation2] sm:$0xff] }
 0xaf8   : >> { %3737 = vmatprep.mubr.f32.mxu1 %v7970_v22  ;;  %6806 = vmatpush1.bf16.msra.mxu1 %v6805_v5  ;;  %v8836_v5 = vld [vmem:[%s9315_s22] ss:$0 sm:$0xff] }
 0xaf9   : >> { %6840 = vmatprep.subr.bf16.mxu1 %v6839_v48 }
 0xafb   : >> { %3738 = vmatmul.mubr.f32.vlgmr.msra.gmra.mrb[32].mxu1 %v8777_v63 }
 0xafc   : >> { %6842 = vmatpush1.bf16.msra.mxu1 %v6841_v24  ;;  %3743 = vmatprep.mubr.f32.mxu1 %v7970_v22  ;;  %v3619_v24 = vld [vmem:[#allocation21 + $0x58] sm:$0xff] }
 0xafd   : >> { %6844 = vmatprep.subr.bf16.mxu1 %v6843_v41 }
 0xaff   : >> { %3744 = vmatmul.mubr.f32.gmra.mrb[34].mxu1 %v8781_v33 }
 0xb00   : >> { %3749 = vmatprep.mubr.f32.mxu1 %v7970_v22  ;;  %6846 = vmatpush1.bf16.msra.mxu1 %v6845_v17  ;;  %v6811_v17 = vpack.c.bf16 %v3619_v24, %v3616_v57 }
 0xb01   : >> { %6848 = vmatprep.subr.bf16.mxu1 %v6847_v44 }
 0xb03   : >> { %3750 = vmatmul.mubr.f32.gmra.mrb[36].mxu1 %v8785_v34 }
 0xb04   : >> { %3755 = vmatprep.mubr.f32.mxu1 %v7970_v22  ;;  %6850 = vmatpush1.bf16.msra.mxu1 %v6849_v61 }
 0xb05   : >> { %6852 = vmatprep.subr.bf16.mxu1 %v6851_v7 }
 0xb07   : >> { %3756 = vmatmul.mubr.f32.gmra.mrb[38].mxu1 %v8789_v37 }
 0xb08   : >> { %3761 = vmatprep.mubr.f32.mxu1 %v7970_v22  ;;  %6854 = vmatpush1.bf16.msra.mxu1 %v6853_v45  ;;  %v3631_v45 = vld [vmem:[#allocation21 + $0xb8] sm:$0xff] }
 0xb09   : >> { %6856 = vmatprep.subr.bf16.mxu1 %v6855_v42 }
 0xb0b   : >> { %3762 = vmatmul.mubr.f32.gmra.mrb[40].mxu1 %v8793_v54 }
 0xb0c   : >> { %3767 = vmatprep.mubr.f32.mxu1 %v7970_v22  ;;  %6858 = vmatpush1.bf16.msra.mxu1 %v6857_v39 }
 0xb0d   : >> { %6860 = vmatprep.subr.bf16.mxu1 %v6859_v8  ;;  %v3634_v8 = vld [vmem:[#allocation21 + $0xd0] sm:$0xff] }
 0xb0e   : >> { %v6823_v35 = vpack.c.bf16 %v3637_v10, %v3634_v8  ;;  %v4002_v8 = vld [vmem:[#allocation23 + $0xb8] sm:$0xff]  ;;  %v4005_v10 = vld [vmem:[#allocation23 + $0xd0] sm:$0xff] }
 0xb0f   : >> { %3768 = vmatmul.mubr.f32.gmra.mrb[42].mxu1 %v8797_v29 }
 0xb10   : >> { %3773 = vmatprep.mubr.f32.mxu1 %v7970_v22  ;;  %6862 = vmatpush1.bf16.msra.mxu1 %v6861_v9 }
 0xb11   : >> { %6864 = vmatprep.subr.bf16.mxu1 %v6863_v28 }
 0xb13   : >> { %3774 = vmatmul.mubr.f32.gmra.mrb[44].mxu1 %v8801_v16 }
 0xb14   : >> { %3779 = vmatprep.mubr.f32.mxu1 %v7970_v22  ;;  %6866 = vmatpush1.bf16.msra.mxu1 %v6865_v46 }
 0xb15   : >> { %6868 = vmatprep.subr.bf16.mxu1 %v6867_v19 }
 0xb17   : >> { %3780 = vmatmul.mubr.f32.gmra.mrb[46].mxu1 %v8805_v40 }
 0xb18   : >> { %3785 = vmatprep.mubr.f32.mxu1 %v7970_v22  ;;  %6870 = vmatpush1.bf16.msra.mxu1 %v6869_v52 }
 0xb1b   : >> { %3786 = vmatmul.mubr.f32.gmra.mrb[48].mxu1 %v8809_v62 }
 0xb1c   : >> { %3791 = vmatprep.mubr.f32.mxu1 %v7970_v22 }
 0xb1f   : >> { %3792 = vmatmul.mubr.f32.gmra.mrb[50].mxu1 %v8813_v21 }
 0xb20   : >> { %3797 = vmatprep.mubr.f32.mxu1 %v7970_v22 }
 0xb23   : >> { %3798 = vmatmul.mubr.f32.gmra.mrb[52].mxu1 %v8817_v27 }
 0xb24   : >> { %3803 = vmatprep.mubr.f32.mxu1 %v7970_v22 }
 0xb27   : >> { %3804 = vmatmul.mubr.f32.gmra.mrb[54].mxu1 %v8821_v11 }
 0xb28   : >> { %3809 = vmatprep.mubr.f32.mxu1 %v7970_v22 }
 0xb2b   : >> { %3810 = vmatmul.mubr.f32.gmra.mrb[56].mxu1 %v8825_v0 }
 0xb2c   : >> { %3815 = vmatprep.mubr.f32.mxu1 %v7970_v22 }
 0xb2f   : >> { %3816 = vmatmul.mubr.f32.gmra.mrb[58].mxu1 %v8829_v2 }
 0xb30   : >> { %3821 = vmatprep.mubr.f32.mxu1 %v7970_v22 }
 0xb33   : >> { %3822 = vmatmul.mubr.f32.gmra.mrb[60].mxu1 %v8833_v47 }
 0xb34   : >> { %3827 = vmatprep.mubr.f32.mxu1 %v7970_v22 }
 0xbae   : >> { %v6105_v48 = vpop.f32.mrb[16].mxu1 }
 0xbaf   : >> { %v3352_v43 = vadd.f32 %v6105_v48, %v8836_v5  ;;  %v3346_v20 = vpop.f32.mrb[17].mxu1  ;;  %v6827_v48 = vpack.c.bf16 %v3643_v25, %v3640_v30  ;;  %v4690_v30 = vld [vmem:[%s9316_s20 + $0x20] sm:$0xff] }
 0xbb0   : >> { %v3347_v51 = vadd.f32 %v8836_v5, %v3346_v20  ;;  %v3646_v20 = vld [vmem:[#allocation21 + $0x130] sm:$0xff] }
 0xbb1   : >> { %v3426_v31 = vmax.f32 %v3352_v43, 0.0 }
 0xbb2   : >> { %v3425_v41 = vmax.f32 %v3347_v51, 0.0  ;;  %v6108_v4 = vpop.f32.mrb[18].mxu1  ;;  %v3649_v51 = vld [vmem:[#allocation21 + $0x148] sm:$0xff] }
 0xbb3   : >> { %v3362_v55 = vadd.f32 %v6108_v4, %v8836_v5  ;;  %v3356_v3 = vpop.f32.mrb[19].mxu1 }
 0xbb4   : >> { %v3357_v44 = vadd.f32 %v8836_v5, %v3356_v3  ;;  %6159 = vmatprep.mubr.f32.mxu0 %v3425_v41 }
 0xbb5   : >> { %v3428_v18 = vmax.f32 %v3362_v55, 0.0  ;;  %6160 = vmatmul.mubr.f32.vlgmr.msra.gmra.mrb[32].mxu0 %v3426_v31  ;;  %v6831_v55 = vpack.c.bf16 %v3649_v51, %v3646_v20 }
 0xbb6   : >> { %v3427_v59 = vmax.f32 %v3357_v44, 0.0  ;;  %v6111_v61 = vpop.f32.mrb[20].mxu1  ;;  %6810 = vmatpush3.bf16.msra.mxu0 %v8774_v36  ;;  %v6819_v36 = vpack.c.bf16 %v3631_v45, %v3628_v14  ;;  %v3655_v44 = vld [vmem:[#allocation21 + $0x178] sm:$0xff] }
 0xbb7   : >> { %v3372_v7 = vadd.f32 %v6111_v61, %v8836_v5  ;;  %v3366_v6 = vpop.f32.mrb[21].mxu1  ;;  %6812 = vmatprep.subr.bf16.mxu0 %v6811_v17 }
 0xbb8   : >> { %6162 = vmatprep.mubr.f32.mxu0 %v3427_v59  ;;  %v3367_v53 = vadd.f32 %v8836_v5, %v3366_v6 }
 0xbb9   : >> { %v3430_v42 = vmax.f32 %v3372_v7, 0.0  ;;  %6163 = vmatmul.mubr.f32.gmra.mrb[34].mxu0 %v3428_v18 }
 0xbba   : >> { %v3429_v23 = vmax.f32 %v3367_v53, 0.0  ;;  %v6114_v50 = vpop.f32.mrb[22].mxu1  ;;  %6814 = vmatpush3.bf16.msra.mxu0 %v6811_v17  ;;  %v3652_v17 = vld [vmem:[#allocation21 + $0x160] sm:$0xff]  ;;  %v3984_v53 = vld [vmem:[#allocation23 + $0x28] sm:$0xff] }
 0xbbb   : >> { %v3382_v13 = vadd.f32 %v6114_v50, %v8836_v5  ;;  %v3376_v15 = vpop.f32.mrb[23].mxu1  ;;  %6816 = vmatprep.subr.bf16.mxu0 %v6815_v56  ;;  %v6835_v7 = vpack.c.bf16 %v3655_v44, %v3652_v17  ;;  %v3990_v50 = vld [vmem:[#allocation23 + $0x58] sm:$0xff] }
 0xbbc   : >> { %6165 = vmatprep.mubr.f32.mxu0 %v3429_v23  ;;  %v3377_v39 = vadd.f32 %v8836_v5, %v3376_v15  ;;  %v3987_v23 = vld [vmem:[#allocation23 + $0x40] sm:$0xff]  ;;  %v3993_v15 = vld [vmem:[#allocation23 + $0x70] sm:$0xff]  ;;  %v4701_v44 = vld [vmem:[%s9316_s20 + $0x78] sm:$0xff] }
 0xbbd   : >> { %6166 = vmatmul.mubr.f32.gmra.mrb[36].mxu0 %v3430_v42  ;;  %v3432_v60 = vmax.f32 %v3382_v13, 0.0  ;;  %v6875_v13 = vpack.c.bf16 %v3990_v50, %v3987_v23 }
 0xbbe   : >> { %v3431_v58 = vmax.f32 %v3377_v39, 0.0  ;;  %v6117_v1 = vpop.f32.mrb[24].mxu1  ;;  %6818 = vmatpush3.bf16.msra.mxu0 %v6815_v56  ;;  %v3981_v56 = vld [vmem:[#allocation23 + $0x10] sm:$0xff]  ;;  %v3999_v39 = vld [vmem:[#allocation23 + $0xa0] sm:$0xff] }
 0xbbf   : >> { %v3392_v9 = vadd.f32 %v6117_v1, %v8836_v5  ;;  %v3386_v28 = vpop.f32.mrb[25].mxu1  ;;  %6820 = vmatprep.subr.bf16.mxu0 %v6819_v36  ;;  %v6871_v42 = vpack.c.bf16 %v3984_v53, %v3981_v56  ;;  %v4020_v1 = vld [vmem:[#allocation23 + $0x148] sm:$0xff] }
 0xbc0   : >> { %6168 = vmatprep.mubr.f32.mxu0 %v3431_v58  ;;  %v3387_v12 = vadd.f32 %v8836_v5, %v3386_v28  ;;  %v4014_v58 = vld [vmem:[#allocation23 + $0x118] sm:$0xff] }
 0xbc1   : >> { %6169 = vmatmul.mubr.f32.gmra.mrb[38].mxu0 %v3432_v60  ;;  %v3434_v46 = vmax.f32 %v3392_v9, 0.0  ;;  %v4008_v60 = vld [vmem:[#allocation23 + $0xe8] sm:$0xff]  ;;  %v4702_v9 = vstv %s7916_s16  ;;  %s2710_s16 = sadd.s32 1, %s7916_s16  }
 0xbc2   : >> { %v3433_v19 = vmax.f32 %v3387_v12, 0.0  ;;  %v6120_v49 = vpop.f32.mrb[26].mxu1  ;;  %6822 = vmatpush3.bf16.msra.mxu0 %v6819_v36  ;;  %v3996_v36 = vld [vmem:[#allocation23 + $0x88] sm:$0xff]  ;;  %vm4707_vm5 = vcmp.eq.s32.totalorder %v4690_v30, %v4702_v9  ;;  %vm4718_vm14 = vcmp.eq.s32.totalorder %v4701_v44, %v4702_v9  ;;  %v9328_v44 = vld [vmem:[#allocation59_spill] sm:$0xff]  ;;  %p2707_p2 = scmp.ge.s32.totalorder %s2710_s16, 4  }
 0xbc3   : >> { %v3402_v38 = vadd.f32 %v6120_v49, %v8836_v5  ;;  %v3396_v52 = vpop.f32.mrb[27].mxu1  ;;  %6824 = vmatprep.subr.bf16.mxu0 %v6823_v35  ;;  %v4691_v12 = vld [vmem:[%s9316_s20 + $0x28] sm:$0xff]  ;;  %v4692_v49 = vld [vmem:[%s9316_s20 + $0x30] sm:$0xff]  ;;  %s374_s9 = sadd.s32 (%p2707_p2), 1, %s7908_s9  }
 0xbc4   : >> { %6171 = vmatprep.mubr.f32.mxu0 %v3433_v19  ;;  %v3397_v43 = vadd.f32 %v8836_v5, %v3396_v52  ;;  %vm4708_vm4 = vcmp.eq.s32.totalorder %v4691_v12, %v4702_v9  ;;  %v4693_v19 = vld [vmem:[%s9316_s20 + $0x38] sm:$0xff]  ;;  %vm4709_vm7 = vcmp.eq.s32.totalorder %v4692_v49, %v4702_v9  ;;  %p371_p3 = scmp.ge.s32.totalorder (%p2707_p2), %s374_s9, 2  }
 0xbc5   : >> { %6172 = vmatmul.mubr.f32.gmra.mrb[40].mxu0 %v3434_v46  ;;  %v3436_v57 = vmax.f32 %v3402_v38, 0.0  ;;  %vm4710_vm6 = vcmp.eq.s32.totalorder %v4693_v19, %v4702_v9 }
 0xbc6   : >> { %v3435_v24 = vmax.f32 %v3397_v43, 0.0  ;;  %v6123_v41 = vpop.f32.mrb[28].mxu1  ;;  %6826 = vmatpush3.bf16.msra.mxu0 %v6823_v35  ;;  %v4694_v43 = vld [vmem:[%s9316_s20 + $0x40] sm:$0xff] }
 0xbc7   : >> { %v3412_v4 = vadd.f32 %v6123_v41, %v8836_v5  ;;  %v3406_v31 = vpop.f32.mrb[29].mxu1  ;;  %6828 = vmatprep.subr.bf16.mxu0 %v6827_v48  ;;  %vm4711_vm9 = vcmp.eq.s32.totalorder %v4694_v43, %v4702_v9 }
 0xbc8   : >> { %6174 = vmatprep.mubr.f32.mxu0 %v3435_v24  ;;  %v3407_v3 = vadd.f32 %v8836_v5, %v3406_v31  ;;  %v4696_v24 = vld [vmem:[%s9316_s20 + $0x50] sm:$0xff]  ;;  %v4699_v31 = vld [vmem:[%s9316_s20 + $0x68] sm:$0xff] }
 0xbc9   : >> { %6175 = vmatmul.mubr.f32.gmra.mrb[42].mxu0 %v3436_v57  ;;  %v3438_v26 = vmax.f32 %v3412_v4, 0.0  ;;  %v4697_v57 = vld [vmem:[%s9316_s20 + $0x58] sm:$0xff]  ;;  %vm4713_vm11 = vcmp.eq.s32.totalorder %v4696_v24, %v4702_v9  ;;  %vm4716_vm12 = vcmp.eq.s32.totalorder %v4699_v31, %v4702_v9 }
 0xbca   : >> { %v3437_v32 = vmax.f32 %v3407_v3, 0.0  ;;  %v6126_v18 = vpop.f32.mrb[30].mxu1  ;;  %6830 = vmatpush3.bf16.msra.mxu0 %v6827_v48  ;;  %v4695_v48 = vld [vmem:[%s9316_s20 + $0x48] sm:$0xff]  ;;  %vm4714_vm10 = vcmp.eq.s32.totalorder %v4697_v57, %v4702_v9 }
 0xbcb   : >> { %v3422_v59 = vadd.f32 %v6126_v18, %v8836_v5  ;;  %v3416_v61 = vpop.f32.mrb[31].mxu1  ;;  %6832 = vmatprep.subr.bf16.mxu0 %v6831_v55  ;;  %vm4712_vm8 = vcmp.eq.s32.totalorder %v4695_v48, %v4702_v9 }
 0xbcc   : >> { %6177 = vmatprep.mubr.f32.mxu0 %v3437_v32  ;;  %v3417_v6 = vadd.f32 %v8836_v5, %v3416_v61  ;;  %v6879_v5 = vpack.c.bf16 %v3996_v36, %v3993_v15 }
 0xbcd   : >> { %6178 = vmatmul.mubr.f32.gmra.mrb[44].mxu0 %v3438_v26  ;;  %v3440_v14 = vmax.f32 %v3422_v59, 0.0  ;;  %v4700_v26 = vld [vmem:[%s9316_s20 + $0x70] sm:$0xff] }
 0xbce   : >> { %v3439_v45 = vmax.f32 %v3417_v6, 0.0  ;;  %6834 = vmatpush3.bf16.msra.mxu0 %v6831_v55  ;;  %v4698_v55 = vld [vmem:[%s9316_s20 + $0x60] sm:$0xff]  ;;  %vm4717_vm15 = vcmp.eq.s32.totalorder %v4700_v26, %v4702_v9 }
 0xbcf   : >> { %6836 = vmatprep.subr.bf16.mxu0 %v6835_v7  ;;  %vm4715_vm13 = vcmp.eq.s32.totalorder %v4698_v55, %v4702_v9  ;;  %v9009_v55 = vld [vmem:[%s8121_s27] sm:$0x7] }
 0xbd0   : >> { %6180 = vmatprep.mubr.f32.mxu0 %v3439_v45 }
 0xbd1   : >> { %6181 = vmatmul.mubr.f32.gmra.mrb[46].mxu0 %v3440_v14 }
 0xbd2   : >> { %6838 = vmatpush3.bf16.msra.mxu0 %v6835_v7  ;;  %6215 = vmatprep.mubr.f32.mxu0 %v8777_v63  ;;  %v6883_v63 = vpack.c.bf16 %v4002_v8, %v3999_v39  ;;  %v4942_v7 = vld [vmem:[%s9317_s30] ss:$0 sm:$0xff] }
 0xbd3   : >> { %6872 = vmatprep.subr.bf16.mxu0 %v6871_v42 }
 0xbd5   : >> { %6216 = vmatmul.mubr.f32.vlgmr.msra.gmra.mrb[48].mxu0 %v8781_v33  ;;  %v6887_v33 = vpack.c.bf16 %v4008_v60, %v4005_v10 }
 0xbd6   : >> { %6874 = vmatpush3.bf16.msra.mxu0 %v6871_v42  ;;  %6218 = vmatprep.mubr.f32.mxu0 %v8785_v34  ;;  %v4011_v34 = vld [vmem:[#allocation23 + $0x100] sm:$0xff] }
 0xbd7   : >> { %6876 = vmatprep.subr.bf16.mxu0 %v6875_v13 }
 0xbd9   : >> { %6219 = vmatmul.mubr.f32.gmra.mrb[50].mxu0 %v8789_v37  ;;  %v6891_v37 = vpack.c.bf16 %v4014_v58, %v4011_v34 }
 0xbda   : >> { %6878 = vmatpush3.bf16.msra.mxu0 %v6875_v13  ;;  %6221 = vmatprep.mubr.f32.mxu0 %v8793_v54  ;;  %v4017_v54 = vld [vmem:[#allocation23 + $0x130] sm:$0xff] }
 0xbdb   : >> { %6880 = vmatprep.subr.bf16.mxu0 %v6879_v5 }
 0xbdd   : >> { %6222 = vmatmul.mubr.f32.gmra.mrb[52].mxu0 %v8797_v29  ;;  %v6895_v29 = vpack.c.bf16 %v4020_v1, %v4017_v54 }
 0xbde   : >> { %6882 = vmatpush3.bf16.msra.mxu0 %v6879_v5  ;;  %6224 = vmatprep.mubr.f32.mxu0 %v8801_v16  ;;  %v4023_v16 = vld [vmem:[#allocation23 + $0x160] sm:$0xff] }
 0xbdf   : >> { %6884 = vmatprep.subr.bf16.mxu0 %v6883_v63 }
 0xbe1   : >> { %6225 = vmatmul.mubr.f32.gmra.mrb[54].mxu0 %v8805_v40  ;;  %v4026_v40 = vld [vmem:[#allocation23 + $0x178] sm:$0xff] }
 0xbe2   : >> { %6886 = vmatpush3.bf16.msra.mxu0 %v6883_v63  ;;  %6227 = vmatprep.mubr.f32.mxu0 %v8809_v62  ;;  %v3607_v62 = vld [vmem:[#allocation2 + $0x78] sm:$0xff] }
 0xbe3   : >> { %6888 = vmatprep.subr.bf16.mxu0 %v6887_v33  ;;  %3828 = vmatmul.mubr.f32.gmra.mrb[62].mxu1 %v3607_v62 }
 0xbe4   : >> { %4108 = vmatprep.mubr.f32.mxu1 %v7970_v22 }
 0xbe5   : >> { %6228 = vmatmul.mubr.f32.gmra.mrb[56].mxu0 %v8813_v21  ;;  %v6899_v21 = vpack.c.bf16 %v4026_v40, %v4023_v16 }
 0xbe6   : >> { %6890 = vmatpush3.bf16.msra.mxu0 %v6887_v33  ;;  %6230 = vmatprep.mubr.f32.mxu0 %v8817_v27  ;;  %v4686_v27 = vld [vmem:[%s9316_s20] sm:$0xff] }
 0xbe7   : >> { %6892 = vmatprep.subr.bf16.mxu0 %v6891_v37  ;;  %vm4703_vm0 = vcmp.eq.s32.totalorder %v4686_v27, %v4702_v9 }
 0xbe9   : >> { %6231 = vmatmul.mubr.f32.gmra.mrb[58].mxu0 %v8821_v11  ;;  %v4687_v11 = vld [vmem:[%s9316_s20 + $0x8] sm:$0xff] }
 0xbea   : >> { %6894 = vmatpush3.bf16.msra.mxu0 %v6891_v37  ;;  %6233 = vmatprep.mubr.f32.mxu0 %v8825_v0  ;;  %v4688_v0 = vld [vmem:[%s9316_s20 + $0x10] sm:$0xff]  ;;  %vm4704_vm1 = vcmp.eq.s32.totalorder %v4687_v11, %v4702_v9 }
 0xbeb   : >> { %6896 = vmatprep.subr.bf16.mxu0 %v6895_v29  ;;  %vm4705_vm2 = vcmp.eq.s32.totalorder %v4688_v0, %v4702_v9 }
 0xbed   : >> { %6234 = vmatmul.mubr.f32.gmra.mrb[60].mxu0 %v8829_v2  ;;  %v7971_v2 = vmov 0  }
 0xbee   : >> { %6898 = vmatpush3.bf16.msra.mxu0 %v6895_v29  ;;  %6236 = vmatprep.mubr.f32.mxu0 %v8833_v47  ;;  %v4689_v47 = vld [vmem:[%s9316_s20 + $0x18] sm:$0xff]  ;;  %v4719_v28 = vsel %vm4703_vm0, 1, %v7971_v2  ;;  %v4721_v35 = vsel %vm4705_vm2, 1, %v7971_v2  ;;  %v4720_v25 = vsel %vm4704_vm1, 1, %v7971_v2  ;;  %v4724_v38 = vsel %vm4708_vm4, 1, %v7971_v2 }
 0xbef   : >> { %6900 = vmatprep.subr.bf16.mxu0 %v6899_v21  ;;  %7368 = vset.pattern.permute.xlu0 %v7971_v2  ;;  %vm4706_vm3 = vcmp.eq.s32.totalorder %v4689_v47, %v4702_v9  ;;  %v4723_v52 = vsel %vm4707_vm5, 1, %v7971_v2  ;;  %v4726_v20 = vsel %vm4710_vm6, 1, %v7971_v2  ;;  %v4725_v51 = vsel %vm4709_vm7, 1, %v7971_v2 }
 0xbf0   : >> { %7369 = vset.pattern.permute.xlu1 %v7971_v2  ;;  %4736 = vperm.xlu0 %7368, %v4719_v28   ;;  %v4722_v46 = vsel %vm4706_vm3, 1, %v7971_v2  ;;  %v4728_v41 = vsel %vm4712_vm8, 1, %v7971_v2  ;;  %v4727_v4 = vsel %vm4711_vm9, 1, %v7971_v2  ;;  %v4730_v3 = vsel %vm4714_vm10, 1, %v7971_v2 }
 0xbf1   : >> { %6237 = vmatmul.mubr.f32.gmra.mrb[62].mxu0 %v3607_v62  ;;  %4742 = vperm.xlu1 %7369, %v4721_v35   ;;  %v4729_v17 = vsel %vm4713_vm11, 1, %v7971_v2  ;;  %v4732_v32 = vsel %vm4716_vm12, 1, %v7971_v2  ;;  %v4731_v18 = vsel %vm4715_vm13, 1, %v7971_v2  ;;  %v4734_v59 = vsel %vm4718_vm14, 1, %v7971_v2 }
 0xbf2   : >> { %6902 = vmatpush3.bf16.msra.mxu0 %v6899_v21  ;;  %v4733_v61 = vsel %vm4717_vm15, 1, %v7971_v2 }
 0xbf4   : >> { %4739 = vperm.xlu0 %7368, %v4720_v25  }
 0xbf5   : >> { %4745 = vperm.xlu1 %7369, %v4722_v46  }
 0xbf8   : >> { %4748 = vperm.xlu0 %7368, %v4723_v52  }
 0xbf9   : >> { %4751 = vperm.xlu1 %7369, %v4724_v38  }
 0xbfc   : >> { %4754 = vperm.xlu0 %7368, %v4725_v51   ;;  %v9324_v51 = vld [vmem:[#allocation55_spill] sm:$0xff] }
 0xbfd   : >> { %4757 = vperm.xlu1 %7369, %v4726_v20   ;;  %v3656_v20 = vld [vmem:[%s9323_s23] sm:$0x7] }
 0xbfe   : >> { %v9000_v57 = vrot.slane %v3656_v20, %v9324_v51  ;;  %v3665_v26 = vrot.slane %v3656_v20, %v9328_v44 }
 0xc00   : >> { %4760 = vperm.xlu0 %7368, %v4727_v4  }
 0xc01   : >> { %4763 = vperm.xlu1 %7369, %v4728_v41  }
 0xc04   : >> { %4766 = vperm.xlu0 %7368, %v4729_v17  }
 0xc05   : >> { %4769 = vperm.xlu1 %7369, %v4730_v3   ;;  %v9327_v3 = vld [vmem:[#allocation58_spill] sm:$0xff] }
 0xc06   : >> { %v3661_v17 = vrot.slane %v3656_v20, %v9327_v3 }
 0xc08   : >> { %4772 = vperm.xlu0 %7368, %v4731_v18  }
 0xc09   : >> { %4775 = vperm.xlu1 %7369, %v4732_v32   ;;  %v4036_v32 = vrot.slane %v9009_v55, %v9328_v44 }
 0xc0c   : >> { %4778 = vperm.xlu0 %7368, %v4733_v61  }
 0xc0d   : >> { %4781 = vperm.xlu1 %7369, %v4734_v59   ;;  %v9019_v59 = vadd.f32 %v4036_v32, %v3665_v26 }
 0xc88   : >> { %v6161_v6 = vpop.f32.mrb[32].mxu0 }
 0xc89   : >> { %v3513_v56 = vpop.f32.mrb[33].mxu0  ;;  %v8893_v14 = vadd.f32 %v6161_v6, %v4942_v7 }
 0xc8a   : >> { %v8891_v53 = vadd.f32 %v4942_v7, %v3513_v56 }
 0xc8c   : >> { %v6164_v45 = vpop.f32.mrb[34].mxu0  ;;  %4109 = vmatmul.mubr.f32.vlgmr.msra.gmra.mrb[32].mxu1 %v8891_v53  ;;  %6271 = vmatprep.mubr.f32.mxu0 %v8891_v53 }
 0xc8d   : >> { %v3523_v42 = vpop.f32.mrb[35].mxu0  ;;  %6272 = vmatmul.mubr.f32.vlgmr.msra.gmra.mrb[64].mxu0 %v8893_v14  ;;  %4114 = vmatprep.mubr.f32.mxu1 %v7970_v22  ;;  %v8901_v50 = vadd.f32 %v6164_v45, %v4942_v7 }
 0xc8e   : >> { %v8899_v23 = vadd.f32 %v4942_v7, %v3523_v42 }
 0xc90   : >> { %4115 = vmatmul.mubr.f32.gmra.mrb[34].mxu1 %v8893_v14  ;;  %6274 = vmatprep.mubr.f32.mxu0 %v8899_v23  ;;  %v6167_v13 = vpop.f32.mrb[36].mxu0 }
 0xc91   : >> { %6275 = vmatmul.mubr.f32.gmra.mrb[66].mxu0 %v8901_v50  ;;  %v8906_v15 = vadd.f32 %v6167_v13, %v4942_v7  ;;  %v3533_v36 = vpop.f32.mrb[37].mxu0  ;;  %4120 = vmatprep.mubr.f32.mxu1 %v7970_v22 }
 0xc92   : >> { %v8909_v5 = vadd.f32 %v4942_v7, %v3533_v36 }
 0xc94   : >> { %4121 = vmatmul.mubr.f32.gmra.mrb[36].mxu1 %v8899_v23  ;;  %6277 = vmatprep.mubr.f32.mxu0 %v8909_v5  ;;  %v6170_v39 = vpop.f32.mrb[38].mxu0 }
 0xc95   : >> { %4126 = vmatprep.mubr.f32.mxu1 %v7970_v22  ;;  %6278 = vmatmul.mubr.f32.gmra.mrb[68].mxu0 %v8906_v15  ;;  %v8915_v8 = vadd.f32 %v6170_v39, %v4942_v7  ;;  %v3543_v63 = vpop.f32.mrb[39].mxu0 }
 0xc96   : >> { %v8917_v10 = vadd.f32 %v4942_v7, %v3543_v63 }
 0xc98   : >> { %4127 = vmatmul.mubr.f32.gmra.mrb[38].mxu1 %v8901_v50  ;;  %6280 = vmatprep.mubr.f32.mxu0 %v8917_v10  ;;  %v6173_v60 = vpop.f32.mrb[40].mxu0 }
 0xc99   : >> { %4132 = vmatprep.mubr.f32.mxu1 %v7970_v22  ;;  %6281 = vmatmul.mubr.f32.gmra.mrb[70].mxu0 %v8915_v8  ;;  %v8923_v33 = vadd.f32 %v6173_v60, %v4942_v7  ;;  %v3553_v34 = vpop.f32.mrb[41].mxu0 }
 0xc9a   : >> { %v8925_v58 = vadd.f32 %v4942_v7, %v3553_v34 }
 0xc9c   : >> { %4133 = vmatmul.mubr.f32.gmra.mrb[40].mxu1 %v8909_v5  ;;  %6283 = vmatprep.mubr.f32.mxu0 %v8925_v58  ;;  %v6176_v37 = vpop.f32.mrb[42].mxu0 }
 0xc9d   : >> { %4138 = vmatprep.mubr.f32.mxu1 %v7970_v22  ;;  %6284 = vmatmul.mubr.f32.gmra.mrb[72].mxu0 %v8923_v33  ;;  %v8931_v54 = vadd.f32 %v6176_v37, %v4942_v7  ;;  %v3563_v1 = vpop.f32.mrb[43].mxu0 }
 0xc9e   : >> { %v8933_v29 = vadd.f32 %v4942_v7, %v3563_v1 }
 0xc9f   : >> { %9318 = vst [vmem:[#allocation62_spill] sm:$0xff] %v8931_v54 }
 0xca0   : >> { %4139 = vmatmul.mubr.f32.gmra.mrb[42].mxu1 %v8906_v15  ;;  %6286 = vmatprep.mubr.f32.mxu0 %v8933_v29  ;;  %v6179_v16 = vpop.f32.mrb[44].mxu0 }
 0xca1   : >> { %4144 = vmatprep.mubr.f32.mxu1 %v7970_v22  ;;  %6287 = vmatmul.mubr.f32.gmra.mrb[74].mxu0 %v8931_v54  ;;  %v8939_v40 = vadd.f32 %v6179_v16, %v4942_v7  ;;  %v3573_v62 = vpop.f32.mrb[45].mxu0 }
 0xca2   : >> { %v8941_v21 = vadd.f32 %v4942_v7, %v3573_v62 }
 0xca3   : >> { %9319 = vst [vmem:[#allocation63_spill] sm:$0xff] %v8939_v40 }
 0xca4   : >> { %9320 = vst [vmem:[#allocation64_spill] sm:$0xff] %v8941_v21  ;;  %4145 = vmatmul.mubr.f32.gmra.mrb[44].mxu1 %v8917_v10  ;;  %6289 = vmatprep.mubr.f32.mxu0 %v8941_v21  ;;  %v6182_v27 = vpop.f32.mrb[46].mxu0 }
 0xca5   : >> { %4150 = vmatprep.mubr.f32.mxu1 %v7970_v22  ;;  %6290 = vmatmul.mubr.f32.gmra.mrb[76].mxu0 %v8939_v40  ;;  %v8947_v11 = vadd.f32 %v6182_v27, %v4942_v7  ;;  %v3583_v0 = vpop.f32.mrb[47].mxu0 }
 0xca6   : >> { %v8949_v2 = vadd.f32 %v4942_v7, %v3583_v0 }
 0xca7   : >> { %9321 = vst [vmem:[#allocation65_spill] sm:$0xff] %v8947_v11 }
 0xca8   : >> { %9322 = vst [vmem:[#allocation66_spill] sm:$0xff] %v8949_v2  ;;  %4151 = vmatmul.mubr.f32.gmra.mrb[46].mxu1 %v8915_v8  ;;  %6292 = vmatprep.mubr.f32.mxu0 %v8949_v2  ;;  %v8953_v47 = vpop.f32.mrb[48].mxu0 }
 0xca9   : >> { %4156 = vmatprep.mubr.f32.mxu1 %v7970_v22  ;;  %6293 = vmatmul.mubr.f32.gmra.mrb[78].mxu0 %v8947_v11  ;;  %v8957_v9 = vpop.f32.mrb[49].mxu0 }
 0xcac   : >> { %4157 = vmatmul.mubr.f32.gmra.mrb[48].mxu1 %v8925_v58  ;;  %v8960_v28 = vpop.f32.mrb[50].mxu0 }
 0xcad   : >> { %4162 = vmatprep.mubr.f32.mxu1 %v7970_v22  ;;  %v8963_v35 = vpop.f32.mrb[51].mxu0 }
 0xcb0   : >> { %4163 = vmatmul.mubr.f32.gmra.mrb[50].mxu1 %v8923_v33  ;;  %v8966_v12 = vpop.f32.mrb[52].mxu0 }
 0xcb1   : >> { %4168 = vmatprep.mubr.f32.mxu1 %v7970_v22  ;;  %v8969_v30 = vpop.f32.mrb[53].mxu0 }
 0xcb4   : >> { %4169 = vmatmul.mubr.f32.gmra.mrb[52].mxu1 %v8933_v29  ;;  %v8972_v25 = vpop.f32.mrb[54].mxu0 }
 0xcb5   : >> { %4174 = vmatprep.mubr.f32.mxu1 %v7970_v22  ;;  %v8975_v46 = vpop.f32.mrb[55].mxu0 }
 0xcb8   : >> { %4175 = vmatmul.mubr.f32.gmra.mrb[54].mxu1 %v8931_v54  ;;  %v8978_v19 = vpop.f32.mrb[56].mxu0  ;;  %v7530_v54 = vld [vmem:[#allocation26] sm:$0xff] }
 0xcb9   : >> { %4180 = vmatprep.mubr.f32.mxu1 %v7970_v22  ;;  %v8981_v49 = vpop.f32.mrb[57].mxu0 }
 0xcbc   : >> { %4181 = vmatmul.mubr.f32.gmra.mrb[56].mxu1 %v8941_v21  ;;  %v8984_v38 = vpop.f32.mrb[58].mxu0 }
 0xcbd   : >> { %4186 = vmatprep.mubr.f32.mxu1 %v7970_v22  ;;  %v8987_v52 = vpop.f32.mrb[59].mxu0 }
 0xcc0   : >> { %4187 = vmatmul.mubr.f32.gmra.mrb[58].mxu1 %v8939_v40  ;;  %v8990_v48 = vpop.f32.mrb[60].mxu0 }
 0xcc1   : >> { %4192 = vmatprep.mubr.f32.mxu1 %v7970_v22  ;;  %v8993_v43 = vpop.f32.mrb[61].mxu0 }
 0xcc4   : >> { %4193 = vmatmul.mubr.f32.gmra.mrb[60].mxu1 %v8949_v2  ;;  %v6238_v24 = vpop.f32.mrb[62].mxu0 }
 0xcc5   : >> { %4198 = vmatprep.mubr.f32.mxu1 %v7970_v22  ;;  %v9003_v41 = vadd.f32 %v6238_v24, %v9000_v57  ;;  %v3970_v4 = vpop.f32.mrb[63].mxu0  ;;  %v4032_v22 = vrot.slane %v9009_v55, %v9327_v3 }
 0xcc6   : >> { %v9006_v31 = vadd.f32 %v3970_v4, %v9000_v57 }
 0xcc7   : >> { %9325 = vst [vmem:[#allocation67_spill] sm:$0xff] %v9003_v41  ;;  %v9017_v18 = vadd.f32 %v4032_v22, %v3661_v17 }
 0xcc8   : >> { %4199 = vmatmul.mubr.f32.gmra.mrb[62].mxu1 %v8947_v11  ;;  %9326 = vst [vmem:[#allocation68_spill] sm:$0xff] %v9006_v31 }
 0xd5f   : >> { %v4110_v61 = vpop.f32.mrb[32].mxu1 }
 0xd60   : >> { %v7016_v7 = vadd.f32 %v9017_v18, %v4110_v61  ;;  %v4112_v6 = vpop.f32.mrb[33].mxu1  ;;  %v9022_v56 = vpop.f32.mrb[64].mxu0 }
 0xd61   : >> { %v7018_v45 = vadd.f32 %v9019_v59, %v4112_v6  ;;  %v9025_v42 = vpop.f32.mrb[65].mxu0 }
 0xd62   : >> { %v4943_v13 = vmul.f32 -1.442695, %v7016_v7 }
 0xd63   : >> { %v4959_v36 = vmul.f32 -1.442695, %v7018_v45  ;;  %v4116_v39 = vpop.f32.mrb[34].mxu1 }
 0xd64   : >> { %7370 = vpow2.f32 %v4943_v13  ;;  %v7020_v63 = vadd.f32 %v9017_v18, %v4116_v39  ;;  %v4118_v60 = vpop.f32.mrb[35].mxu1  ;;  %v9028_v34 = vpop.f32.mrb[66].mxu0 }
 0xd65   : >> { %7372 = vpow2.f32 %v4959_v36  ;;  %v7022_v37 = vadd.f32 %v9019_v59, %v4118_v60  ;;  %v9031_v1 = vpop.f32.mrb[67].mxu0 }
 0xd66   : >> { %v4944_v16 = vmul.f32 -1.442695, %v7020_v63 }
 0xd67   : >> { %v4960_v62 = vmul.f32 -1.442695, %v7022_v37  ;;  %v4122_v27 = vpop.f32.mrb[36].mxu1 }
 0xd68   : >> { %7374 = vpow2.f32 %v4944_v16  ;;  %v7024_v0 = vadd.f32 %v9017_v18, %v4122_v27  ;;  %v4124_v20 = vpop.f32.mrb[37].mxu1  ;;  %v9034_v24 = vpop.f32.mrb[68].mxu0 }
 0xd69   : >> { %7376 = vpow2.f32 %v4960_v62  ;;  %v7026_v4 = vadd.f32 %v9019_v59, %v4124_v20  ;;  %v9037_v17 = vpop.f32.mrb[69].mxu0 }
 0xd6a   : >> { %v4945_v22 = vmul.f32 -1.442695, %v7024_v0 }
 0xd6b   : >> { %v4961_v26 = vmul.f32 -1.442695, %v7026_v4  ;;  %v4128_v32 = vpop.f32.mrb[38].mxu1 }
 0xd6c   : >> { %7378 = vpow2.f32 %v4945_v22  ;;  %v7028_v61 = vadd.f32 %v9017_v18, %v4128_v32  ;;  %v4130_v7 = vpop.f32.mrb[39].mxu1  ;;  %v9040_v6 = vpop.f32.mrb[70].mxu0 }
 0xd6d   : >> { %v7030_v45 = vadd.f32 %v9019_v59, %v4130_v7  ;;  %v9043_v13 = vpop.f32.mrb[71].mxu0  ;;  %7380 = vpow2.f32 %v4961_v26 }
 0xd6e   : >> { %v7371_v36 = vpop.eup %7370  ;;  %v4946_v39 = vmul.f32 -1.442695, %v7028_v61 }
 0xd6f   : >> { %v7373_v63 = vpop.eup %7372  ;;  %v4414_v60 = vadd.f32 1.0, %v7371_v36  ;;  %v4962_v37 = vmul.f32 -1.442695, %v7030_v45  ;;  %v4134_v16 = vpop.f32.mrb[40].mxu1 }
 0xd70   : >> { %7382 = vpow2.f32 %v4946_v39  ;;  %v7032_v62 = vadd.f32 %v9017_v18, %v4134_v16  ;;  %v4136_v27 = vpop.f32.mrb[41].mxu1  ;;  %v9046_v0 = vpop.f32.mrb[72].mxu0  ;;  %v4526_v32 = vadd.f32 1.0, %v7373_v63  ;;  %v9059_v63 = vrot.slane %v9009_v55, %v9324_v51 }
 0xd71   : >> { %7384 = vrcp.f32 %v4414_v60  ;;  %v7034_v20 = vadd.f32 %v9019_v59, %v4136_v27  ;;  %v9049_v4 = vpop.f32.mrb[73].mxu0 }
 0xd72   : >> { %v7375_v22 = vpop.eup %7374  ;;  %v4947_v7 = vmul.f32 -1.442695, %v7032_v62  ;;  %7386 = vpow2.f32 %v4962_v37 }
 0xd73   : >> { %v7377_v61 = vpop.eup %7376  ;;  %v4415_v3 = vadd.f32 1.0, %v7375_v22  ;;  %v4963_v26 = vmul.f32 -1.442695, %v7034_v20  ;;  %v4140_v45 = vpop.f32.mrb[42].mxu1 }
 0xd74   : >> { %7388 = vpow2.f32 %v4947_v7  ;;  %v7036_v36 = vadd.f32 %v9017_v18, %v4140_v45  ;;  %v4142_v39 = vpop.f32.mrb[43].mxu1  ;;  %v9052_v16 = vpop.f32.mrb[74].mxu0  ;;  %v4527_v37 = vadd.f32 1.0, %v7377_v61  ;;  %v4272_v61 = vadd.f32 %v9025_v42, %v9059_v63 }
 0xd75   : >> { %7390 = vrcp.f32 %v4415_v3  ;;  %v7038_v60 = vadd.f32 %v9019_v59, %v4142_v39  ;;  %v9055_v27 = vpop.f32.mrb[75].mxu0 }
 0xd76   : >> { %v7379_v44 = vpop.eup %7378  ;;  %7392 = vrcp.f32 %v4526_v32  ;;  %v4948_v62 = vmul.f32 -1.442695, %v7036_v36 }
 0xd77   : >> { %v4416_v20 = vadd.f32 1.0, %v7379_v44  ;;  %7394 = vpow2.f32 %v4963_v26  ;;  %v4964_v22 = vmul.f32 -1.442695, %v7038_v60  ;;  %v4146_v7 = vpop.f32.mrb[44].mxu1  ;;  %v7381_v39 = vpop.eup %7380 }
 0xd78   : >> { %7396 = vpow2.f32 %v4948_v62  ;;  %v7040_v45 = vadd.f32 %v9017_v18, %v4146_v7  ;;  %v4148_v3 = vpop.f32.mrb[45].mxu1  ;;  %v9062_v11 = vpop.f32.mrb[76].mxu0  ;;  %v3901_v7 = vadd.f32 %v8957_v9, %v9000_v57  ;;  %v4528_v21 = vadd.f32 1.0, %v7381_v39 }
 0xd79   : >> { %7398 = vrcp.f32 %v4416_v20  ;;  %v7042_v32 = vadd.f32 %v9019_v59, %v4148_v3  ;;  %v9065_v2 = vpop.f32.mrb[77].mxu0 }
 0xd7a   : >> { %v7383_v55 = vpop.eup %7382  ;;  %7400 = vrcp.f32 %v4527_v37  ;;  %v4949_v44 = vmul.f32 -1.442695, %v7040_v45  ;;  %v4277_v45 = vadd.f32 %v9022_v56, %v9059_v63 }
 0xd7b   : >> { %v7385_v26 = vpop.eup %7384  ;;  %v4417_v36 = vadd.f32 1.0, %v7383_v55  ;;  %7402 = vpow2.f32 %v4964_v22  ;;  %v4965_v60 = vmul.f32 -1.442695, %v7042_v32  ;;  %v4152_v62 = vpop.f32.mrb[46].mxu1 }
 0xd7c   : >> { %v4574_v51 = vmul.f32 %v7385_v26, %v4272_v61  ;;  %7404 = vpow2.f32 %v4949_v44  ;;  %v7044_v20 = vadd.f32 %v9017_v18, %v4152_v62  ;;  %v4154_v3 = vpop.f32.mrb[47].mxu1  ;;  %v6294_v40 = vpop.f32.mrb[78].mxu0 }
 0xd7d   : >> { %v7387_v41 = vpop.eup %7386  ;;  %7406 = vrcp.f32 %v4417_v36  ;;  %v4341_v42 = vpop.f32.mrb[79].mxu0  ;;  %v7046_v32 = vadd.f32 %v9019_v59, %v4154_v3  ;;  %v9076_v26 = vadd.f32 %v6294_v40, %v9059_v63  ;;  %v3906_v36 = vadd.f32 %v8953_v47, %v9000_v57 }
 0xd7e   : >> { %v7389_v37 = vpop.eup %7388  ;;  %v4590_v22 = vadd.f32 %v4574_v51, %v3901_v7  ;;  %7408 = vpow2.f32 %v4965_v60  ;;  %v4950_v61 = vmul.f32 -1.442695, %v7044_v20  ;;  %v9079_v62 = vadd.f32 %v4341_v42, %v9059_v63  ;;  %v9085_v60 = vpop.permute.xlu0 %4736 }
 0xd7f   : >> { %v7391_v55 = vpop.eup %7390  ;;  %v4418_v9 = vadd.f32 1.0, %v7389_v37  ;;  %v4158_v44 = vpop.f32.mrb[48].mxu1  ;;  %9329 = vst [vmem:[#allocation69_spill] sm:$0xff] %v9076_v26  ;;  %v3916_v20 = vadd.f32 %v8960_v28, %v9000_v57  ;;  %v4529_v40 = vadd.f32 1.0, %v7387_v41  ;;  %v3911_v42 = vadd.f32 %v8963_v35, %v9000_v57 }
 0xd80   : >> { %9330 = vst [vmem:[#allocation70_spill] sm:$0xff] %v9079_v62  ;;  %v9081_v39 = vpop.eup %7392  ;;  %7410 = vtanh.f32 %v4590_v22  ;;  %v4575_v51 = vmul.f32 %v7391_v55, %v4277_v45  ;;  %v4160_v56 = vpop.f32.mrb[49].mxu1  ;;  %v4282_v26 = vadd.f32 %v9031_v1, %v9059_v63  ;;  %v9095_v45 = vadd.f32 %v8966_v12, %v9000_v57 }
 0xd81   : >> { %v7395_v7 = vpop.eup %7394  ;;  %7412 = vrcp.f32 %v4528_v21  ;;  %v4966_v55 = vmul.f32 -1.442695, %v7046_v32  ;;  %v9101_v41 = vadd.f32 %v8969_v30, %v9000_v57  ;;  %v9105_v35 = vadd.f32 %v8972_v25, %v9000_v57 }
 0xd82   : >> { %v7397_v3 = vpop.eup %7396  ;;  %v4591_v37 = vadd.f32 %v4575_v51, %v3906_v36  ;;  %7414 = vrcp.f32 %v4418_v9  ;;  %v9109_v12 = vadd.f32 %v8975_v46, %v9000_v57  ;;  %v4530_v32 = vadd.f32 1.0, %v7395_v7  ;;  %v9115_v25 = vpop.permute.xlu0 %4739 }
 0xd83   : >> { %v7399_v47 = vpop.eup %7398  ;;  %v4419_v22 = vadd.f32 1.0, %v7397_v3  ;;  %7416 = vpow2.f32 %v4950_v61  ;;  %v4164_v28 = vpop.f32.mrb[50].mxu1  ;;  %v7048_v61 = vadd.f32 %v9017_v18, %v4158_v44  ;;  %v4287_v30 = vadd.f32 %v9028_v34, %v9059_v63 }
 0xd84   : >> { %v9097_v21 = vpop.eup %7400  ;;  %7418 = vtanh.f32 %v4591_v37  ;;  %v4576_v1 = vmul.f32 %v7399_v47, %v4282_v26  ;;  %v4166_v9 = vpop.f32.mrb[51].mxu1  ;;  %vm4783_vm0 = vcmp.eq.s32.totalorder %v9085_v60, 1  ;;  %v7052_v46 = vadd.f32 %v9017_v18, %v4164_v28 }
 0xd85   : >> { %v7403_v36 = vpop.eup %7402  ;;  %7420 = vrcp.f32 %v4529_v40  ;;  %v4297_v44 = vadd.f32 %v9034_v24, %v9059_v63  ;;  %v4292_v34 = vadd.f32 %v9037_v17, %v9059_v63  ;;  %vm4784_vm1 = vcmp.eq.s32.totalorder %v9115_v25, 1  ;;  %v9126_v24 = vpop.permute.xlu1 %4742 }
 0xd86   : >> { %v7405_v51 = vpop.eup %7404  ;;  %v4592_v3 = vadd.f32 %v4576_v1, %v3911_v42  ;;  %7422 = vrcp.f32 %v4419_v22  ;;  %v4531_v37 = vadd.f32 1.0, %v7403_v36  ;;  %v4951_v22 = vmul.f32 -1.442695, %v7048_v61 }
 0xd87   : >> { %v7407_v26 = vpop.eup %7406  ;;  %v4420_v47 = vadd.f32 1.0, %v7405_v51  ;;  %7424 = vpow2.f32 %v4966_v55  ;;  %v4170_v40 = vpop.f32.mrb[52].mxu1  ;;  %v7050_v1 = vadd.f32 %v9019_v59, %v4160_v56  ;;  %v4622_v36 = vsub.f32 1.0, %v9081_v39 }
 0xd88   : >> { %v7409_v7 = vpop.eup %7408  ;;  %7426 = vtanh.f32 %v4592_v3  ;;  %v4577_v31 = vmul.f32 %v7407_v26, %v4287_v30  ;;  %v4172_v42 = vpop.f32.mrb[53].mxu1  ;;  %v7056_v3 = vadd.f32 %v9017_v18, %v4170_v40  ;;  %v4952_v17 = vmul.f32 -1.442695, %v7052_v46 }
 0xd89   : >> { %7428 = vrcp.f32 %v4530_v32  ;;  %v4532_v51 = vadd.f32 1.0, %v7409_v7  ;;  %v4654_v56 = vmul.f32 %v9081_v39, %v8891_v53  ;;  %v4302_v62 = vadd.f32 %v9043_v13, %v9059_v63 }
 0xd8a   : >> { %v7411_v55 = vpop.eup %7410  ;;  %v4593_v28 = vadd.f32 %v4577_v31, %v3916_v20  ;;  %7430 = vrcp.f32 %v4420_v47  ;;  %v7054_v31 = vadd.f32 %v9019_v59, %v4166_v9  ;;  %v4623_v47 = vsub.f32 1.0, %v9097_v21 }
 0xd8b   : >> { %v7413_v30 = vpop.eup %7412  ;;  %7432 = vrcp.f32 %v4531_v37  ;;  %v4176_v26 = vpop.f32.mrb[54].mxu1  ;;  %v4638_v32 = vmul.f32 %v7411_v55, %v4622_v36  ;;  %vm4785_vm2 = vcmp.eq.s32.totalorder %v9126_v24, 1  ;;  %v4967_v46 = vmul.f32 -1.442695, %v7050_v1 }
 0xd8c   : >> { %v7415_v61 = vpop.eup %7414  ;;  %7434 = vtanh.f32 %v4593_v28  ;;  %v4178_v20 = vpop.f32.mrb[55].mxu1  ;;  %v4953_v39 = vmul.f32 -1.442695, %v7056_v3  ;;  %v7058_v55 = vadd.f32 %v9019_v59, %v4172_v42  ;;  %v7060_v9 = vadd.f32 %v9017_v18, %v4176_v26 }
 0xd8d   : >> { %v7417_v40 = vpop.eup %7416  ;;  %v4578_v37 = vmul.f32 %v7415_v61, %v4292_v34  ;;  %7436 = vpow2.f32 %v4951_v22  ;;  %v4670_v7 = vadd.f32 %v4654_v56, %v4638_v32  ;;  %v4968_v32 = vmul.f32 -1.442695, %v7054_v31  ;;  %v9144_v56 = vpop.permute.xlu1 %4745 }
 0xd8e   : >> { %v7419_v36 = vpop.eup %7418  ;;  %7438 = vrcp.f32 %v4532_v51  ;;  %v4421_v53 = vadd.f32 1.0, %v7417_v40  ;;  %v4655_v42 = vmul.f32 %v9097_v21, %v8893_v14  ;;  %v4624_v26 = vsub.f32 1.0, %v7413_v30 }
 0xd8f   : >> { %v9136_v28 = vpop.eup %7420  ;;  %v4594_v13 = vadd.f32 %v4578_v37, %v9101_v41  ;;  %7440 = vpow2.f32 %v4952_v17  ;;  %v4799_v34 = vsel %vm4783_vm0, %v4670_v7, %v7530_v54  ;;  %v4182_v22 = vpop.f32.mrb[56].mxu1  ;;  %v4639_v3 = vmul.f32 %v7419_v36, %v4623_v47 }
 0xd90   : >> { %v7423_v1 = vpop.eup %7422  ;;  %7442 = vrcp.f32 %v4421_v53  ;;  %4815 = vst [vmem:[#allocation26] sm:$0xff] %v4799_v34  ;;  %v4184_v51 = vpop.f32.mrb[57].mxu1  ;;  %v4656_v61 = vmul.f32 %v7413_v30, %v8899_v23  ;;  %vm4786_vm3 = vcmp.eq.s32.totalorder %v9144_v56, 1  ;;  %v4969_v60 = vmul.f32 -1.442695, %v7058_v55  ;;  %v7531_v30 = vld [vmem:[#allocation26 + $0x8] sm:$0xff] }
 0xd91   : >> { %v7425_v41 = vpop.eup %7424  ;;  %7444 = vtanh.f32 %v4594_v13  ;;  %v4579_v17 = vmul.f32 %v7423_v1, %v4297_v44  ;;  %v7062_v31 = vadd.f32 %v9019_v59, %v4178_v20  ;;  %v4671_v40 = vadd.f32 %v4655_v42, %v4639_v3  ;;  %v9154_v20 = vpop.permute.xlu0 %4748  ;;  %v7532_v3 = vld [vmem:[#allocation26 + $0x10] sm:$0xff] }
 0xd92   : >> { %v7427_v54 = vpop.eup %7426  ;;  %7446 = vpow2.f32 %v4967_v46  ;;  %v4954_v14 = vmul.f32 -1.442695, %v7060_v9  ;;  %v4307_v44 = vadd.f32 %v9040_v6, %v9059_v63  ;;  %v4533_v23 = vadd.f32 1.0, %v7425_v41 }
 0xd93   : >> { %v7429_v47 = vpop.eup %7428  ;;  %v4595_v37 = vadd.f32 %v4579_v17, %v9095_v45  ;;  %7448 = vpow2.f32 %v4953_v39  ;;  %v4640_v21 = vmul.f32 %v7427_v54, %v4624_v26  ;;  %v4188_v7 = vpop.f32.mrb[58].mxu1  ;;  %v4800_v46 = vsel %vm4784_vm1, %v4671_v40, %v7531_v30 }
 0xd94   : >> { %v7431_v36 = vpop.eup %7430  ;;  %7450 = vpow2.f32 %v4968_v32  ;;  %v4190_v53 = vpop.f32.mrb[59].mxu1  ;;  %v7064_v39 = vadd.f32 %v9017_v18, %v4182_v22  ;;  %4816 = vst [vmem:[#allocation26 + $0x8] sm:$0xff] %v4800_v46  ;;  %vm4787_vm4 = vcmp.eq.s32.totalorder %v9154_v20, 1  ;;  %v4970_v9 = vmul.f32 -1.442695, %v7062_v31  ;;  %v7533_v46 = vld [vmem:[#allocation26 + $0x18] sm:$0xff] }
 0xd95   : >> { %v9156_v55 = vpop.eup %7432  ;;  %7452 = vtanh.f32 %v4595_v37  ;;  %v4580_v45 = vmul.f32 %v7431_v36, %v4302_v62  ;;  %v4672_v13 = vadd.f32 %v4656_v61, %v4640_v21  ;;  %v4625_v34 = vsub.f32 1.0, %v9136_v28 }
 0xd96   : >> { %v7435_v6 = vpop.eup %7434  ;;  %7454 = vpow2.f32 %v4969_v60  ;;  %v4657_v25 = vmul.f32 %v9136_v28, %v8901_v50  ;;  %v7066_v62 = vadd.f32 %v9019_v59, %v4184_v51  ;;  %v4626_v51 = vsub.f32 1.0, %v7429_v47 }
 0xd97   : >> { %v7437_v1 = vpop.eup %7436  ;;  %v4596_v32 = vadd.f32 %v4580_v45, %v9109_v12  ;;  %7456 = vpow2.f32 %v4954_v14  ;;  %v4801_v22 = vsel %vm4785_vm2, %v4672_v13, %v7532_v3  ;;  %v4194_v42 = vpop.f32.mrb[60].mxu1  ;;  %v4641_v26 = vmul.f32 %v7435_v6, %v4625_v34 }
 0xd98   : >> { %v9167_v41 = vpop.eup %7438  ;;  %7458 = vrcp.f32 %v4533_v23  ;;  %v4422_v17 = vadd.f32 1.0, %v7437_v1  ;;  %4817 = vst [vmem:[#allocation26 + $0x10] sm:$0xff] %v4801_v22  ;;  %v7072_v61 = vadd.f32 %v9017_v18, %v4194_v42  ;;  %v4196_v50 = vpop.f32.mrb[61].mxu1  ;;  %v4955_v12 = vmul.f32 -1.442695, %v7064_v39 }
 0xd99   : >> { %v7441_v28 = vpop.eup %7440  ;;  %7460 = vtanh.f32 %v4596_v32  ;;  %v9171_v54 = vadd.f32 %v9019_v59, %v4196_v50  ;;  %v7068_v31 = vadd.f32 %v9017_v18, %v4188_v7  ;;  %v4673_v40 = vadd.f32 %v4657_v25, %v4641_v26  ;;  %v4752_v42 = vpop.permute.xlu1 %4751 }
 0xd9a   : >> { %v7443_v60 = vpop.eup %7442  ;;  %7462 = vrcp.f32 %v4422_v17  ;;  %v4423_v24 = vadd.f32 1.0, %v7441_v28  ;;  %v4971_v21 = vmul.f32 -1.442695, %v7066_v62  ;;  %v4658_v36 = vmul.f32 %v7429_v47, %v8909_v5  ;;  %v7534_v17 = vld [vmem:[#allocation26 + $0x20] sm:$0xff] }
 0xd9b   : >> { %v7445_v37 = vpop.eup %7444  ;;  %v4581_v14 = vmul.f32 %v7443_v60, %v4307_v44  ;;  %7464 = vpow2.f32 %v4970_v9  ;;  %v4200_v23 = vpop.f32.mrb[62].mxu1  ;;  %v4802_v45 = vsel %vm4786_vm3, %v4673_v40, %v7533_v46  ;;  %v4627_v44 = vsub.f32 1.0, %v9156_v55  ;;  %v7535_v40 = vld [vmem:[#allocation26 + $0x28] sm:$0xff] }
 0xd9c   : >> { %v7447_v30 = vpop.eup %7446  ;;  %7466 = vrcp.f32 %v4423_v24  ;;  %v4642_v39 = vmul.f32 %v7445_v37, %v4626_v51  ;;  %v9178_v13 = vadd.f32 %v9017_v18, %v4200_v23  ;;  %v4202_v6 = vpop.f32.mrb[63].mxu1  ;;  %4818 = vst [vmem:[#allocation26 + $0x18] sm:$0xff] %v4802_v45  ;;  %v4956_v25 = vmul.f32 -1.442695, %v7068_v31 }
 0xd9d   : >> { %v7449_v7 = vpop.eup %7448  ;;  %v4597_v34 = vadd.f32 %v4581_v14, %v9105_v35  ;;  %7468 = vpow2.f32 %v4955_v12  ;;  %v9183_v5 = vadd.f32 %v9019_v59, %v4202_v6  ;;  %v7070_v56 = vadd.f32 %v9019_v59, %v4190_v53 }
 0xd9e   : >> { %v7451_v47 = vpop.eup %7450  ;;  %v4424_v9 = vadd.f32 1.0, %v7449_v7  ;;  %v4674_v1 = vadd.f32 %v4658_v36, %v4642_v39  ;;  %v3941_v18 = vadd.f32 %v8981_v49, %v9000_v57  ;;  %v4534_v62 = vadd.f32 1.0, %v7447_v30 }
 0xd9f   : >> { %v7453_v32 = vpop.eup %7452  ;;  %7470 = vtanh.f32 %v4597_v34  ;;  %v4659_v22 = vmul.f32 %v9156_v55, %v8906_v15  ;;  %v4535_v59 = vadd.f32 1.0, %v7451_v47  ;;  %vm4788_vm5 = vcmp.eq.s32.totalorder %v4752_v42, 1  ;;  %v7536_v34 = vld [vmem:[#allocation26 + $0x30] sm:$0xff] }
 0xda0   : >> { %v7455_v35 = vpop.eup %7454  ;;  %7472 = vpow2.f32 %v4971_v21  ;;  %v4643_v3 = vmul.f32 %v7453_v32, %v4627_v44  ;;  %v4803_v26 = vsel %vm4787_vm4, %v4674_v1, %v7534_v17  ;;  %v4628_v49 = vsub.f32 1.0, %v9167_v41  ;;  %v4755_v21 = vpop.permute.xlu0 %4754 }
 0xda1   : >> { %v7457_v50 = vpop.eup %7456  ;;  %7474 = vrcp.f32 %v4424_v9  ;;  %4819 = vst [vmem:[#allocation26 + $0x20] sm:$0xff] %v4803_v26  ;;  %v4972_v12 = vmul.f32 -1.442695, %v7070_v56  ;;  %v4312_v15 = vadd.f32 %v9049_v4, %v9059_v63  ;;  %v4957_v55 = vmul.f32 -1.442695, %v7072_v61 }
 0xda2   : >> { %v7459_v53 = vpop.eup %7458  ;;  %v4425_v28 = vadd.f32 1.0, %v7457_v50  ;;  %7476 = vpow2.f32 %v4956_v25  ;;  %v4675_v51 = vadd.f32 %v4659_v22, %v4643_v3  ;;  %v4660_v20 = vmul.f32 %v9167_v41, %v8917_v10  ;;  %v7537_v50 = vld [vmem:[#allocation26 + $0x38] sm:$0xff] }
 0xda3   : >> { %v7461_v60 = vpop.eup %7460  ;;  %7478 = vrcp.f32 %v4534_v62  ;;  %v4536_v31 = vadd.f32 1.0, %v7455_v35  ;;  %v4317_v23 = vadd.f32 %v9046_v0, %v9059_v63  ;;  %vm4789_vm6 = vcmp.eq.s32.totalorder %v4755_v21, 1 }
 0xda4   : >> { %v7463_v24 = vpop.eup %7462  ;;  %7480 = vrcp.f32 %v4425_v28  ;;  %v4804_v37 = vsel %vm4788_vm5, %v4675_v51, %v7535_v40  ;;  %v4644_v14 = vmul.f32 %v7461_v60, %v4628_v49  ;;  %v3946_v10 = vadd.f32 %v8978_v19, %v9000_v57  ;;  %v4761_v21 = vpop.permute.xlu0 %4760 }
 0xda5   : >> { %v7465_v36 = vpop.eup %7464  ;;  %v4582_v30 = vmul.f32 %v7463_v24, %v4312_v15  ;;  %7482 = vrcp.f32 %v4535_v59  ;;  %4820 = vst [vmem:[#allocation26 + $0x28] sm:$0xff] %v4804_v37  ;;  %v4629_v39 = vsub.f32 1.0, %v7459_v53  ;;  %v4322_v9 = vadd.f32 %v9055_v27, %v9059_v63 }
 0xda6   : >> { %v7467_v4 = vpop.eup %7466  ;;  %7484 = vpow2.f32 %v4972_v12  ;;  %v4676_v41 = vadd.f32 %v4660_v20, %v4644_v14  ;;  %v4537_v6 = vadd.f32 1.0, %v7465_v36  ;;  %v4958_v19 = vmul.f32 -1.442695, %v9178_v13 }
 0xda7   : >> { %v7469_v61 = vpop.eup %7468  ;;  %v4598_v46 = vadd.f32 %v4582_v30, %v3941_v18  ;;  %v4583_v45 = vmul.f32 %v7467_v4, %v4317_v23  ;;  %7486 = vpow2.f32 %v4957_v55  ;;  %v4973_v56 = vmul.f32 -1.442695, %v9171_v54  ;;  %v4758_v18 = vpop.permute.xlu1 %4757 }
 0xda8   : >> { %7488 = vrcp.f32 %v4536_v31  ;;  %v4426_v7 = vadd.f32 1.0, %v7469_v61  ;;  %v4805_v0 = vsel %vm4789_vm6, %v4676_v41, %v7536_v34  ;;  %v4661_v32 = vmul.f32 %v7459_v53, %v8915_v8 }
 0xda9   : >> { %v7471_v44 = vpop.eup %7470  ;;  %7490 = vtanh.f32 %v4598_v46  ;;  %v4599_v47 = vadd.f32 %v4583_v45, %v3946_v10  ;;  %4821 = vst [vmem:[#allocation26 + $0x30] sm:$0xff] %v4805_v0  ;;  %vm4790_vm7 = vcmp.eq.s32.totalorder %v4758_v18, 1  ;;  %v3951_v3 = vadd.f32 %v8987_v52, %v9000_v57 }
 0xdaa   : >> { %v7473_v25 = vpop.eup %7472  ;;  %7492 = vrcp.f32 %v4426_v7  ;;  %v4645_v1 = vmul.f32 %v7471_v44, %v4629_v39  ;;  %v4327_v42 = vadd.f32 %v9052_v16, %v9059_v63  ;;  %v3956_v53 = vadd.f32 %v8984_v38, %v9000_v57  ;;  %v7538_v7 = vld [vmem:[#allocation26 + $0x40] sm:$0xff] }
 0xdab   : >> { %v7475_v62 = vpop.eup %7474  ;;  %7494 = vtanh.f32 %v4599_v47  ;;  %v4538_v8 = vadd.f32 1.0, %v7473_v25  ;;  %v4974_v12 = vmul.f32 -1.442695, %v9183_v5  ;;  %v4332_v24 = vadd.f32 %v9065_v2, %v9059_v63 }
 0xdac   : >> { %v7477_v35 = vpop.eup %7476  ;;  %v4584_v22 = vmul.f32 %v7475_v62, %v4322_v9  ;;  %7496 = vrcp.f32 %v4537_v6  ;;  %v4677_v27 = vadd.f32 %v4661_v32, %v4645_v1  ;;  %v3961_v36 = vadd.f32 %v8993_v43, %v9000_v57  ;;  %v4764_v6 = vpop.permute.xlu1 %4763 }
 0xdad   : >> { %v7479_v13 = vpop.eup %7478  ;;  %v4427_v17 = vadd.f32 1.0, %v7477_v35  ;;  %7498 = vpow2.f32 %v4958_v19  ;;  %vm4791_vm8 = vcmp.eq.s32.totalorder %v4761_v21, 1  ;;  %vm4792_vm9 = vcmp.eq.s32.totalorder %v4764_v6, 1  ;;  %v4767_v35 = vpop.permute.xlu0 %4766  ;;  %v7542_v21 = vld [vmem:[#allocation26 + $0x60] sm:$0xff]  ;;  %v9338_v6 = vld [vmem:[#allocation66_spill] sm:$0xff] }
 0xdae   : >> { %v7481_v54 = vpop.eup %7480  ;;  %v4600_v26 = vadd.f32 %v4584_v22, %v3951_v3  ;;  %7500 = vpow2.f32 %v4973_v56  ;;  %v4806_v59 = vsel %vm4790_vm7, %v4677_v27, %v7537_v50  ;;  %v4630_v55 = vsub.f32 1.0, %v7479_v13  ;;  %v9331_v27 = vld [vmem:[#allocation62_spill] sm:$0xff] }
 0xdaf   : >> { %v7483_v49 = vpop.eup %7482  ;;  %v4585_v52 = vmul.f32 %v7481_v54, %v4327_v42  ;;  %7502 = vrcp.f32 %v4427_v17  ;;  %4822 = vst [vmem:[#allocation26 + $0x38] sm:$0xff] %v4806_v59  ;;  %v4662_v38 = vmul.f32 %v7479_v13, %v8925_v58  ;;  %v4337_v58 = vadd.f32 %v9062_v11, %v9059_v63  ;;  %v7539_v11 = vld [vmem:[#allocation26 + $0x48] sm:$0xff]  ;;  %v7540_v13 = vld [vmem:[#allocation26 + $0x50] sm:$0xff]  ;;  %v9332_v17 = vld [vmem:[#allocation70_spill] sm:$0xff] }
 0xdb0   : >> { %v7485_v28 = vpop.eup %7484  ;;  %7504 = vtanh.f32 %v4600_v26  ;;  %v4631_v37 = vsub.f32 1.0, %v7483_v49  ;;  %v4663_v10 = vmul.f32 %v7483_v49, %v8923_v33  ;;  %v3966_v33 = vadd.f32 %v8990_v48, %v9000_v57  ;;  %v4770_v26 = vpop.permute.xlu1 %4769  ;;  %v9333_v59 = vld [vmem:[#allocation68_spill] sm:$0xff] }
 0xdb1   : >> { %v7487_v16 = vpop.eup %7486  ;;  %v4601_v51 = vadd.f32 %v4585_v52, %v3956_v53  ;;  %7506 = vrcp.f32 %v4538_v8  ;;  %v4539_v40 = vadd.f32 1.0, %v7485_v28  ;;  %vm4793_vm10 = vcmp.eq.s32.totalorder %v4767_v35, 1  ;;  %v7541_v53 = vld [vmem:[#allocation26 + $0x58] sm:$0xff] }
 0xdb2   : >> { %v7489_v60 = vpop.eup %7488  ;;  %v4428_v15 = vadd.f32 1.0, %v7487_v16  ;;  %vm4794_vm11 = vcmp.eq.s32.totalorder %v4770_v26, 1 }
 0xdb3   : >> { %v7491_v20 = vpop.eup %7490  ;;  %7508 = vtanh.f32 %v4601_v51  ;;  %v4632_v0 = vsub.f32 1.0, %v7489_v60  ;;  %v4664_v19 = vmul.f32 %v7489_v60, %v8933_v29  ;;  %v9334_v60 = vld [vmem:[#allocation64_spill] sm:$0xff] }
 0xdb4   : >> { %v7493_v31 = vpop.eup %7492  ;;  %7510 = vpow2.f32 %v4974_v12  ;;  %v4646_v14 = vmul.f32 %v7491_v20, %v4630_v55  ;;  %v9335_v55 = vld [vmem:[#allocation69_spill] sm:$0xff] }
 0xdb5   : >> { %v7495_v5 = vpop.eup %7494  ;;  %v4586_v23 = vmul.f32 %v7493_v31, %v4332_v24  ;;  %7512 = vrcp.f32 %v4428_v15  ;;  %v9336_v31 = vld [vmem:[#allocation67_spill] sm:$0xff] }
 0xdb6   : >> { %v7497_v30 = vpop.eup %7496  ;;  %v4647_v4 = vmul.f32 %v7495_v5, %v4631_v37  ;;  %v4678_v2 = vadd.f32 %v4662_v38, %v4646_v14  ;;  %7514 = vrcp.f32 %v4539_v40  ;;  %v4773_v38 = vpop.permute.xlu0 %4772 }
 0xdb7   : >> { %v7499_v41 = vpop.eup %7498  ;;  %v4602_v61 = vadd.f32 %v4586_v23, %v3961_v36  ;;  %v4633_v32 = vsub.f32 1.0, %v7497_v30  ;;  %v4665_v48 = vmul.f32 %v7497_v30, %v9331_v27  ;;  %vm4795_vm12 = vcmp.eq.s32.totalorder %v4773_v38, 1  ;;  %v9337_v23 = vld [vmem:[#allocation63_spill] sm:$0xff] }
 0xdb8   : >> { %v7501_v46 = vpop.eup %7500  ;;  %v4429_v45 = vadd.f32 1.0, %v7499_v41  ;;  %v4679_v39 = vadd.f32 %v4663_v10, %v4647_v4  ;;  %v4807_v43 = vsel %vm4791_vm8, %v4678_v2, %v7538_v7  ;;  %v4776_v2 = vpop.permute.xlu1 %4775  ;;  %v7543_v41 = vld [vmem:[#allocation26 + $0x68] sm:$0xff] }
 0xdb9   : >> { %v7503_v34 = vpop.eup %7502  ;;  %7516 = vtanh.f32 %v4602_v61  ;;  %4823 = vst [vmem:[#allocation26 + $0x40] sm:$0xff] %v4807_v43  ;;  %v4540_v1 = vadd.f32 1.0, %v7501_v46  ;;  %vm4796_vm13 = vcmp.eq.s32.totalorder %v4776_v2, 1 }
 0xdba   : >> { %v7505_v44 = vpop.eup %7504  ;;  %v4587_v47 = vmul.f32 %v7503_v34, %v4337_v58  ;;  %7518 = vrcp.f32 %v4429_v45  ;;  %v4808_v63 = vsel %vm4792_vm9, %v4679_v39, %v7539_v11  ;;  %v4779_v43 = vpop.permute.xlu0 %4778 }
 0xdbb   : >> { %4824 = vst [vmem:[#allocation26 + $0x48] sm:$0xff] %v4808_v63  ;;  %v4648_v9 = vmul.f32 %v7505_v44, %v4632_v0  ;;  %v7507_v25 = vpop.eup %7506  ;;  %vm4797_vm14 = vcmp.eq.s32.totalorder %v4779_v43, 1  ;;  %v9339_v63 = vld [vmem:[#allocation65_spill] sm:$0xff] }
 0xdbc   : >> { %v4603_v56 = vadd.f32 %v4587_v47, %v3966_v33  ;;  %v4634_v28 = vsub.f32 1.0, %v7507_v25  ;;  %v4666_v15 = vmul.f32 %v7507_v25, %v9334_v60  ;;  %v7544_v33 = vld [vmem:[#allocation26 + $0x70] sm:$0xff] }
 0xdbd   : >> { %v7509_v18 = vpop.eup %7508  ;;  %v4680_v62 = vadd.f32 %v4664_v19, %v4648_v9  ;;  %v4782_v19 = vpop.permute.xlu1 %4781 }
 0xdbe   : >> { %v7511_v3 = vpop.eup %7510  ;;  %7520 = vtanh.f32 %v4603_v56  ;;  %v4649_v22 = vmul.f32 %v7509_v18, %v4633_v32  ;;  %vm4798_vm15 = vcmp.eq.s32.totalorder %v4782_v19, 1  ;;  %v7545_v56 = vld [vmem:[#allocation26 + $0x78] sm:$0xff] }
 0xdbf   : >> { %v7513_v57 = vpop.eup %7512  ;;  %v4809_v42 = vsel %vm4793_vm10, %v4680_v62, %v7540_v13  ;;  %7522 = vrcp.f32 %v4540_v1  ;;  %v4541_v8 = vadd.f32 1.0, %v7511_v3 }
 0xdc0   : >> { %v4588_v54 = vmul.f32 %v7513_v57, %v9332_v17  ;;  %v4681_v29 = vadd.f32 %v4665_v48, %v4649_v22  ;;  %4825 = vst [vmem:[#allocation26 + $0x50] sm:$0xff] %v4809_v42  ;;  %v7515_v50 = vpop.eup %7514 }
 0xdc1   : >> { %v4635_v37 = vsub.f32 1.0, %v7515_v50  ;;  %v4667_v30 = vmul.f32 %v7515_v50, %v9337_v23 }
 0xdc2   : >> { %v4604_v49 = vadd.f32 %v4588_v54, %v9333_v59  ;;  %v4810_v52 = vsel %vm4794_vm11, %v4681_v29, %v7541_v53 }
 0xdc3   : >> { %v7517_v12 = vpop.eup %7516  ;;  %4826 = vst [vmem:[#allocation26 + $0x58] sm:$0xff] %v4810_v52 }
 0xdc4   : >> { %v7519_v16 = vpop.eup %7518  ;;  %7524 = vtanh.f32 %v4604_v49  ;;  %v4650_v51 = vmul.f32 %v7517_v12, %v4634_v28 }
 0xdc5   : >> { %v4589_v20 = vmul.f32 %v7519_v16, %v9335_v55  ;;  %7526 = vrcp.f32 %v4541_v8 }
 0xdc6   : >> { %v4682_v24 = vadd.f32 %v4666_v15, %v4650_v51 }
 0xdc7   : >> { %v4605_v40 = vadd.f32 %v4589_v20, %v9336_v31 }
 0xdc8   : >> { %v7521_v14 = vpop.eup %7520  ;;  %v4811_v5 = vsel %vm4795_vm12, %v4682_v24, %v7542_v21 }
 0xdc9   : >> { %7528 = vtanh.f32 %v4605_v40  ;;  %v4651_v36 = vmul.f32 %v7521_v14, %v4635_v37  ;;  %4827 = vst [vmem:[#allocation26 + $0x60] sm:$0xff] %v4811_v5  ;;  %v7523_v4 = vpop.eup %7522 }
 0xdca   : >> { %v4636_v61 = vsub.f32 1.0, %v7523_v4  ;;  %v4668_v7 = vmul.f32 %v7523_v4, %v9338_v6 }
 0xdcb   : >> { %v4683_v10 = vadd.f32 %v4667_v30, %v4651_v36 }
 0xdcd   : >> { %v4812_v58 = vsel %vm4796_vm13, %v4683_v10, %v7543_v41 }
 0xdce   : >> { %v7525_v46 = vpop.eup %7524  ;;  %4828 = vst [vmem:[#allocation26 + $0x68] sm:$0xff] %v4812_v58 }
 0xdcf   : >> { %v7527_v45 = vpop.eup %7526  ;;  %v4652_v39 = vmul.f32 %v7525_v46, %v4636_v61 }
 0xdd0   : >> { %v4637_v0 = vsub.f32 1.0, %v7527_v45  ;;  %v4669_v9 = vmul.f32 %v7527_v45, %v9339_v63 }
 0xdd1   : >> { %v4684_v34 = vadd.f32 %v4668_v7, %v4652_v39 }
 0xdd3   : >> { %v7529_v44 = vpop.eup %7528  ;;  %v4813_v47 = vsel %vm4797_vm14, %v4684_v34, %v7544_v33  ;;  %2709 = sbr.rel (!%p2707_p2) target bundleno = 2063 (0x80f), region = 267 }
 0xdd4   : >> { %v4653_v11 = vmul.f32 %v7529_v44, %v4637_v0  ;;  %4829 = vst [vmem:[#allocation26 + $0x70] sm:$0xff] %v4813_v47 }
 0xdd6   : >> { %v4685_v25 = vadd.f32 %v4669_v9, %v4653_v11 }
 0xdd8   : >> { %v4814_v1 = vsel %vm4798_vm15, %v4685_v25, %v7545_v56 }
 0xdd9   : >> { %4830 = vst [vmem:[#allocation26 + $0x78] sm:$0xff] %v4814_v1 }
 0xdda   :  { %373 = sbr.rel (!%p371_p3) target bundleno = 315 (0x13b), region = 278  ;;  %s7972_s19 = smov (%p371_p3), [#allocation26]  }
 0xddb   :  { %s4836_s14 = sshll.u32 (%p371_p3), %s7972_s19, 4  ;;  %s4837_s14 = int_to_ptr.vmem [resolvable:$true] %s4836_s14 }
 0xddc   :  { %s7854_s26 = scalar_lea.vmem (%p371_p3), %s4837_s14, 2048  ;;  %p7859_p5 = scmp.lt.s32.totalorder (%p371_p3), %s4837_s14, %s4837_s14 }
 0xddd   :  { %p7855_p4 = scmp.ne.s32.totalorder (%p371_p3), %s4837_s14, %s7854_s26  ;;  %p7860_p6 = scmp.lt.s32.totalorder (%p371_p3), %s7854_s26, %s7854_s26 }
 0xddf   :  { %p7861_p7 = por (%p371_p3), %p7860_p6, %p7859_p5 }
 0xde1   :  { %p7862_p8 = pnand %p7861_p7, %p7855_p4 }
 0xde3   :  { %7865 = shalt.err (!%p7862_p8)
}
 0xde4   :  { %s7866_s12 = scalar_lea.hbm %s8136_s17, 2048 }
 0xde5   :  { %p7867_p9 = scmp.ne.s32.totalorder %s8136_s17, %s7866_s12  ;;  %p7870_p10 = scmp.lt.u32.totalorder %s7866_s12, %s8136_s17 }
 0xde7   :  { %p7872_p11 = pnand %p7870_p10, %p7867_p9 }
 0xde9   :  { %7875 = shalt.err (!%p7872_p11)
}
 0xdea   :  { %4842 = dma.vmem_to_hbm [thread:$0]  %s4837_s14, 2048, %s8136_s17, [#allocation5], %s7951_s2, %s7951_s2, %s7952_s7  }
 0xdeb   :  { %7904 = dma.done.wait [#allocation5], 2048  }
 0xdec   :  { %7905 = vsyncadd [#allocation5], 4294965248 }
 0xded   :  { %4846 = vsyncpa [#allocation4], 1 }
 0xdee   :  { %4847 = vsyncpa [#allocation7], 1 }
 0xdef   :  { %4848 = vsyncpa [#allocation10], 1 }
 0xdf0   :  { %4849 = vsyncpa [#allocation13], 1 }
 0xdf1   :  { %4850 = vsyncpa [#allocation16], 1 }
 0xdf2   :  { %4851 = vsyncpa [#allocation19], 1 }
 0xdf3   :  { %4852 = vsyncpa [#allocation22], 1 }
 0xdf4   :  { %4853 = vsyncpa [#allocation25], 1 }
 0xdf5   :  { %4854 = vsyncpa [#allocation5], 1 }

</bundles_post_ra>
